<compile_context>
chip_gen: v7x
topology: tpu7x:2x2x1
jax: 0.10.0
libtpu: 0.0.40
codegen_flags: <defaults>
</compile_context>

<pallas_src>
from functools import partial

import numpy as np
import jax
import jax.numpy as jnp
from jax.experimental import pallas as pl
from jax.experimental.pallas import tpu as pltpu

NEG_INF = -1.2676506002282294e30   # -2**100: exactly representable in f32 AND bf16
BIG = -NEG_INF
LEAKY_SLOPE = 0.2                  # PyG GeneralConv default negative_slope
EPS = 1e-16                        # torch_geometric.utils.softmax epsilon


def general_encoder_kernel(
    ts_ref, gs_ref,                                   # scalar prefetch (SMEM)
    ea_ref, src_ref, dstm_ref, x_ref, xb_ref, gp_ref,
    wmsg_ref, bme_ref, wedge_ref, att_ref, hexp_ref,
    wself_ref, bself_ref, w1_ref, b1_ref, w2_ref,
    out_ref,
    runmax_ref, den_ref, agg_ref, *, heads, hidden):
  nb = pl.program_id(0)
  t = pl.program_id(1)
  n_block = dstm_ref.shape[0]
  edge_tile = dstm_ref.shape[1]

  @pl.when(t == 0)
  def _init():
    runmax_ref[...] = jnp.full_like(runmax_ref, NEG_INF)
    den_ref[...] = jnp.zeros_like(den_ref)
    agg_ref[...] = jnp.zeros_like(agg_ref)

  # ---- messages for this edge tile: lin_msg(x_j) + lin_edge(edge_attr) ------
  # Narrow bf16 gather of x per edge, then bf16 x bf16 matmuls, f32 accumulate.
  x_src = jnp.dot(src_ref[...], x_ref[...],
                  preferred_element_type=jnp.float32)            # [Te, F]
  m = (jnp.dot(x_src.astype(jnp.bfloat16), wmsg_ref[...],
               preferred_element_type=jnp.float32)
       + jax.lax.dot_general(ea_ref[...], wedge_ref[...],
                             (((0,), (0,)), ((), ())),
                             preferred_element_type=jnp.float32)
       + bme_ref[...])                                           # [Te, heads*hidden]

  # ---- additive attention logits: ONE matmul, [heads, Te] orientation --------
  lg = jax.lax.dot_general(att_ref[...], m.astype(jnp.bfloat16),
                           (((1,), (1,)), ((), ())),
                           preferred_element_type=jnp.float32)   # [heads, Te]
  lg = jnp.where(lg > 0, lg, LEAKY_SLOPE * lg)                   # leaky_relu (once)
  # Mask pad / overflow edges of this destination-node block to NEG_INF so
  # exp() below can never overflow into the scatter matmuls.
  rem = gs_ref[nb] - t * edge_tile
  valid = jax.lax.broadcasted_iota(jnp.int32, lg.shape, 1) < rem
  lg = jnp.where(valid, lg, NEG_INF)

  # ---- per-destination running max (online segment softmax, node block only) -
  dst_b = dstm_ref[...]                                          # [NB, Te] bf16 0/1
  addmask = (dst_b.astype(jnp.float32) - 1.0) * BIG              # 0 / NEG_INF additive
  head_col = jax.lax.broadcasted_iota(jnp.int32, (n_block, heads), 1)
  tile_max = jnp.full((n_block, heads), NEG_INF, jnp.float32)
  for h in range(heads):                                         # heads is small & static
    mx_h = jnp.max(lg[h:h + 1, :] + addmask, axis=1, keepdims=True)   # [NB, 1]
    tile_max = jnp.where(head_col == h, mx_h, tile_max)
  # bf16-rounded max, stored back and reused everywhere so the shift cancels exactly.
  new_max_b = jnp.maximum(runmax_ref[...], tile_max).astype(jnp.bfloat16)
  new_max = new_max_b.astype(jnp.float32)
  scale = jnp.exp(runmax_ref[...] - new_max)                     # [NB, heads], <= 1
  runmax_ref[...] = new_max

  # Gather the per-edge shift from the same mask block (no dst one-hot input).
  edge_max = jax.lax.dot_general(new_max_b, dst_b, (((0,), (0,)), ((), ())),
                                 preferred_element_type=jnp.float32)   # [heads, Te]
  p = jnp.exp(lg - edge_max).astype(jnp.bfloat16)                # [heads, Te]

  # ---- scatter-add into the node block (bf16 operands, f32 accumulation) -----
  den_ref[...] = den_ref[...] * scale + jax.lax.dot_general(
      dst_b, p, (((1,), (1,)), ((), ())), preferred_element_type=jnp.float32)
  hexp = hexp_ref[...]                                           # [heads, heads*hidden]
  p_full = jax.lax.dot_general(p, hexp, (((0,), (0,)), ((), ())),
                               preferred_element_type=jnp.float32)      # [Te, H*h]
  weighted = (m * p_full).astype(jnp.bfloat16)
  scale_full = jnp.dot(scale.astype(jnp.bfloat16), hexp,
                       preferred_element_type=jnp.float32)              # [NB, H*h]
  agg_ref[...] = agg_ref[...] * scale_full + jnp.dot(
      dst_b, weighted, preferred_element_type=jnp.float32)

  # ---- finalize this node block: normalize, head-mean, self term, MLP, pool --
  @pl.when(t == pl.num_programs(1) - 1)
  def _finalize():
    inv_den = pl.reciprocal(den_ref[...] + EPS, approx=True)            # [NB, heads]
    inv_full = jnp.dot(inv_den, hexp.astype(jnp.float32),
                       preferred_element_type=jnp.float32)              # [NB, H*h]
    normalized = agg_ref[...] * inv_full
    acc = jnp.zeros((n_block, hidden), jnp.float32)
    for h in range(heads):                                       # aligned 128-lane slices
      acc = acc + normalized[:, h * hidden:(h + 1) * hidden]
    conv = (acc * (1.0 / heads)
            + jnp.dot(xb_ref[...], wself_ref[...],
                      preferred_element_type=jnp.float32)
            + bself_ref[...])
    # MLP head; nn.Dropout(p=0.01) is identity at inference.
    h1 = jnp.maximum(jnp.dot(conv, w1_ref[...],
                             preferred_element_type=jnp.float32) + b1_ref[...], 0.0)
    # Partial global_mean_pool restricted to this node block (pooling is linear,
    # so per-block partials summed in the wrapper are exact).
    pooled = jax.lax.dot_general(gp_ref[...], h1, (((0,), (0,)), ((), ())),
                                 preferred_element_type=jnp.float32)    # [G, d_lin]
    out_ref[0] = jnp.dot(pooled, w2_ref[...], preferred_element_type=jnp.float32)


def _pad2(shape, itemsize):
  s = list(shape)
  s[-1] = max(-(-s[-1] // 128) * 128, 128)
  if len(s) >= 2:
    s[-2] = max(-(-s[-2] // 8) * 8, 8)
  n = 1
  for d in s:
    n *= int(d)
  return n * itemsize


def general_encoder_forward(x, edge_attr, src_idx, dst_idx, batch_vec, params, *,
                            heads, hidden, num_graphs, edge_tile=256, node_block=16):
  x = np.asarray(x, np.float32)
  edge_attr = np.asarray(edge_attr, np.float32)
  src_idx = np.asarray(src_idx, np.int64)
  dst_idx = np.asarray(dst_idx, np.int64)
  batch_vec = np.asarray(batch_vec, np.int64)

  n_nodes, d_features = x.shape
  n_edges, d_edges = edge_attr.shape
  hh = heads * hidden
  d_lin = int(params["w1"].shape[1])
  d_out = int(params["w2"].shape[1])
  assert edge_tile % 128 == 0 and node_block % 8 == 0

  # ---- host-side preprocessing: node padding + destination-block grouping ----
  n_pad = int(np.ceil(n_nodes / node_block) * node_block)
  num_nb = n_pad // node_block
  x_pad = np.zeros((n_pad, d_features), np.float32)
  x_pad[:n_nodes] = x

  blk = dst_idx // node_block
  order = np.argsort(blk, kind="stable")           # stable keeps per-dst tile spread
  src_s, dst_s, ea_s = src_idx[order], dst_idx[order], edge_attr[order]
  counts = np.bincount(blk, minlength=num_nb).astype(np.int64)
  tiles_per = (counts + edge_tile - 1) // edge_tile
  total_tiles = max(int(tiles_per.sum()), 1)
  max_tiles = max(int(tiles_per.max()) if num_nb > 0 else 1, 1)
  tile_start = np.zeros(num_nb, np.int64)
  if num_nb > 1:
    tile_start[1:] = np.cumsum(tiles_per)[:-1]
  e_pad = total_tiles * edge_tile

  group_off = np.zeros(num_nb + 1, np.int64)
  group_off[1:] = np.cumsum(counts)
  pos = np.zeros(n_edges, np.int64)
  for b in range(num_nb):
    s, c = int(group_off[b]), int(counts[b])
    pos[s:s + c] = tile_start[b] * edge_tile + np.arange(c)

  ea_t = np.zeros((d_edges, e_pad), np.float32)
  src_oh = np.zeros((e_pad, n_pad), np.float32)
  dst_mask = np.zeros((n_pad, e_pad), np.float32)
  if n_edges > 0:
    ea_t[:, pos] = ea_s.T
    src_oh[pos, src_s] = 1.0
    dst_mask[dst_s, pos] = 1.0

  gpool_t = np.zeros((n_pad, num_graphs), np.float32)
  counts_g = np.maximum(np.bincount(batch_vec, minlength=num_graphs), 1).astype(np.float32)
  gpool_t[np.arange(n_nodes), batch_vec] = 1.0 / counts_g[batch_vec]

  # ---- fused / reshaped parameters ----
  head_expand = np.kron(np.eye(heads, dtype=np.float32),
                        np.ones((1, hidden), np.float32))          # [H, H*h]
  att_np = np.asarray(params["att"], np.float32)
  att_sel = head_expand * np.tile(att_np, (1, heads))               # [H, H*h]
  b_me = np.asarray(params["b_msg"], np.float32) + np.asarray(params["b_edge"], np.float32)

  # bf16 for the hot-loop MXU operands; f32 for biases / finalize-only weights.
  ea_b = jnp.asarray(ea_t, jnp.bfloat16)
  src_b = jnp.asarray(src_oh, jnp.bfloat16)
  dstm_b = jnp.asarray(dst_mask, jnp.bfloat16)
  x_b = jnp.asarray(x_pad, jnp.bfloat16)
  x_f = jnp.asarray(x_pad, jnp.float32)
  gp_j = jnp.asarray(gpool_t, jnp.float32)
  wmsg_b = jnp.asarray(params["w_msg"], jnp.bfloat16)
  wedge_b = jnp.asarray(params["w_edge"], jnp.bfloat16)
  att_b = jnp.asarray(att_sel, jnp.bfloat16)
  hexp_b = jnp.asarray(head_expand, jnp.bfloat16)
  bme_j = jnp.asarray(b_me, jnp.float32)
  wself_j = jnp.asarray(params["w_self"], jnp.float32)
  bself_j = jnp.asarray(params["b_self"], jnp.float32)
  w1_j = jnp.asarray(params["w1"], jnp.float32)
  b1_j = jnp.asarray(params["b1"], jnp.float32)
  w2_j = jnp.asarray(params["w2"], jnp.float32)

  last_tile = total_tiles - 1

  def _tile(nbi, ti, ts, gs):
    # clamp so groups with fewer tiles re-read a valid tile (masked in-kernel)
    return jnp.minimum(ts[nbi] + ti, last_tile)

  grid_spec = pltpu.PrefetchScalarGridSpec(
      num_scalar_prefetch=2,
      grid=(num_nb, max_tiles),
      in_specs=[
          pl.BlockSpec((d_edges, edge_tile), lambda i, j, ts, gs: (0, _tile(i, j, ts, gs))),
          pl.BlockSpec((edge_tile, n_pad), lambda i, j, ts, gs: (_tile(i, j, ts, gs), 0)),
          pl.BlockSpec((node_block, edge_tile), lambda i, j, ts, gs: (i, _tile(i, j, ts, gs))),
          pl.BlockSpec((n_pad, d_features), lambda i, j, ts, gs: (0, 0)),        # x (gather)
          pl.BlockSpec((node_block, d_features), lambda i, j, ts, gs: (i, 0)),   # x (self term)
          pl.BlockSpec((node_block, num_graphs), lambda i, j, ts, gs: (i, 0)),   # gpool^T block
          pl.BlockSpec((d_features, hh), lambda i, j, ts, gs: (0, 0)),           # w_msg
          pl.BlockSpec((1, hh), lambda i, j, ts, gs: (0, 0)),                    # b_msg + b_edge
          pl.BlockSpec((d_edges, hh), lambda i, j, ts, gs: (0, 0)),              # w_edge
          pl.BlockSpec((heads, hh), lambda i, j, ts, gs: (0, 0)),                # att_sel
          pl.BlockSpec((heads, hh), lambda i, j, ts, gs: (0, 0)),                # head_expand
          pl.BlockSpec((d_features, hidden), lambda i, j, ts, gs: (0, 0)),       # w_self
          pl.BlockSpec((1, hidden), lambda i, j, ts, gs: (0, 0)),                # b_self
          pl.BlockSpec((hidden, d_lin), lambda i, j, ts, gs: (0, 0)),            # w1
          pl.BlockSpec((1, d_lin), lambda i, j, ts, gs: (0, 0)),                 # b1
          pl.BlockSpec((d_lin, d_out), lambda i, j, ts, gs: (0, 0)),             # w2
      ],
      out_specs=pl.BlockSpec((1, num_graphs, d_out), lambda i, j, ts, gs: (i, 0, 0)),
      scratch_shapes=[
          pltpu.VMEM((node_block, heads), jnp.float32),   # running max
          pltpu.VMEM((node_block, heads), jnp.float32),   # softmax denominator
          pltpu.VMEM((node_block, hh), jnp.float32),      # weighted-message accumulator
      ])

  # VMEM budget derived from actual buffer sizes (capped at 40 MiB).
  vmem_bytes = (
      2 * (_pad2((d_edges, edge_tile), 2) + _pad2((edge_tile, n_pad), 2)
           + _pad2((node_block, edge_tile), 2))                  # streamed, double-buffered
      + _pad2((n_pad, d_features), 2) + _pad2((node_block, d_features), 4)
      + _pad2((node_block, num_graphs), 4)
      + _pad2((d_features, hh), 2) + _pad2((1, hh), 4) + _pad2((d_edges, hh), 2)
      + 2 * _pad2((heads, hh), 2)
      + _pad2((d_features, hidden), 4) + _pad2((1, hidden), 4)
      + _pad2((hidden, d_lin), 4) + _pad2((1, d_lin), 4) + _pad2((d_lin, d_out), 4)
      + _pad2((1, num_graphs, d_out), 4)
      + 2 * _pad2((node_block, heads), 4) + _pad2((node_block, hh), 4))
  vmem_limit = int(min(40 * 1024 * 1024, max(16 * 1024 * 1024, 3 * vmem_bytes)))

  out_part = pl.pallas_call(
      partial(general_encoder_kernel, heads=heads, hidden=hidden),
      out_shape=jax.ShapeDtypeStruct((num_nb, num_graphs, d_out), jnp.float32),
      grid_spec=grid_spec,
      compiler_params=pltpu.CompilerParams(
          dimension_semantics=("parallel", "arbitrary"),
          vmem_limit_bytes=vmem_limit),
  )(jnp.asarray(tile_start, jnp.int32), jnp.asarray(counts, jnp.int32),
    ea_b, src_b, dstm_b, x_b, x_f, gp_j,
    wmsg_b, bme_j, wedge_b, att_b, hexp_b,
    wself_j, bself_j, w1_j, b1_j, w2_j)

  return out_part.sum(axis=0) + jnp.asarray(params["b2"], jnp.float32)


# ---------------------------- pure-JAX reference -----------------------------
def reference_forward(x, edge_attr, src_idx, dst_idx, batch_vec, params,
                      *, heads, hidden, num_graphs):
  n = x.shape[0]
  e = src_idx.shape[0]
  h_node = x @ params["w_msg"] + params["b_msg"]
  m = h_node[src_idx] + edge_attr @ params["w_edge"] + params["b_edge"]
  m3 = m.reshape(e, heads, hidden)
  logits = (m3 * params["att"][None]).sum(-1)                       # [E, heads]
  logits = jnp.where(logits > 0, logits, LEAKY_SLOPE * logits)
  seg_max = jax.ops.segment_max(logits, dst_idx, num_segments=n)
  ex = jnp.exp(logits - seg_max[dst_idx])
  seg_sum = jax.ops.segment_sum(ex, dst_idx, num_segments=n)
  alpha = ex / (seg_sum[dst_idx] + EPS)
  weighted = (m3 * alpha[:, :, None]).reshape(e, heads * hidden)
  agg = jax.ops.segment_sum(weighted, dst_idx, num_segments=n)
  conv = agg.reshape(n, heads, hidden).mean(axis=1) + x @ params["w_self"] + params["b_self"]
  h1 = jnp.maximum(conv @ params["w1"] + params["b1"], 0.0)
  h2 = h1 @ params["w2"] + params["b2"]
  pooled = jax.ops.segment_sum(h2, batch_vec, num_segments=num_graphs)
  counts = jax.ops.segment_sum(jnp.ones((n, 1), jnp.float32), batch_vec,
                               num_segments=num_graphs)
  return pooled / counts


def _linear_init(kw, kb, fan_in, fan_out):
  bound = 1.0 / np.sqrt(fan_in)
  w = jax.random.uniform(kw, (fan_in, fan_out), jnp.float32, -bound, bound)
  b = jax.random.uniform(kb, (1, fan_out), jnp.float32, -bound, bound)
  return w, b


if __name__ == "__main__":
  # Small shapes consistent with the module.
  d_features, d_edges, d_out = 16, 8, 8
  d_hidden, heads = 128, 3
  d_linear = 256                          # d_linear_layers = [256]
  num_graphs, nodes_per_graph = 2, 32
  n_nodes = num_graphs * nodes_per_graph  # 64

  # Two fully-connected directed graphs (with self loops): E = 2 * 32 * 32 = 2048.
  # Source-major ordering within each destination block spreads every node's
  # incoming edges across multiple 256-edge tiles, exercising the online-softmax
  # merge path as well as multiple node blocks.
  src_list, dst_list = [], []
  for g in range(num_graphs):
    base = g * nodes_per_graph
    for j in range(nodes_per_graph):       # source (outer)
      for i in range(nodes_per_graph):     # destination (inner)
        src_list.append(base + j)
        dst_list.append(base + i)
  src_idx = np.array(src_list, np.int32)
  dst_idx = np.array(dst_list, np.int32)
  batch_vec = np.repeat(np.arange(num_graphs), nodes_per_graph).astype(np.int32)
  n_edges = src_idx.shape[0]

  key = jax.random.PRNGKey(0)
  ks = jax.random.split(key, 12)
  x = jax.random.normal(ks[0], (n_nodes, d_features), jnp.float32)
  edge_attr = jax.random.normal(ks[1], (n_edges, d_edges), jnp.float32)

  w_msg, b_msg = _linear_init(ks[2], ks[3], d_features, heads * d_hidden)
  w_edge, b_edge = _linear_init(ks[4], ks[5], d_edges, heads * d_hidden)
  w_self, b_self = _linear_init(ks[6], ks[7], d_features, d_hidden)
  w1, b1 = _linear_init(ks[8], ks[9], d_hidden, d_linear)
  w2, b2 = _linear_init(ks[10], ks[11], d_linear, d_out)
  att = jax.random.normal(jax.random.PRNGKey(1), (heads, d_hidden), jnp.float32) * 0.1

  params = dict(w_msg=w_msg, b_msg=b_msg, w_edge=w_edge, b_edge=b_edge,
                w_self=w_self, b_self=b_self, w1=w1, b1=b1, w2=w2, b2=b2, att=att)

  out = general_encoder_forward(
      x, edge_attr, src_idx, dst_idx, batch_vec, params,
      heads=heads, hidden=d_hidden, num_graphs=num_graphs,
      edge_tile=256, node_block=16)
  out = jax.block_until_ready(out)

  ref = reference_forward(x, edge_attr, jnp.asarray(src_idx), jnp.asarray(dst_idx),
                          jnp.asarray(batch_vec), params,
                          heads=heads, hidden=d_hidden, num_graphs=num_graphs)
  ref = jax.block_until_ready(ref)
  np.testing.assert_allclose(np.asarray(out), np.asarray(ref), rtol=5e-2, atol=5e-2)

  print("KERNEL_OK")
</pallas_src>

<mosaic_0001>
module attributes {stable_mosaic.version = 11 : i64} {
  func.func @general_encoder_kernel(%arg0: i32, %arg1: i32, %arg2: memref<4xi32, #tpu.memory_space<smem>>, %arg3: memref<4xi32, #tpu.memory_space<smem>>, %arg4: memref<8x256xbf16, #tpu.memory_space<vmem>>, %arg5: memref<256x64xbf16, #tpu.memory_space<vmem>>, %arg6: memref<16x256xbf16, #tpu.memory_space<vmem>>, %arg7: memref<64x16xbf16, #tpu.memory_space<vmem>>, %arg8: memref<16x16xf32, #tpu.memory_space<vmem>>, %arg9: memref<16x2xf32, #tpu.memory_space<vmem>>, %arg10: memref<16x384xbf16, #tpu.memory_space<vmem>>, %arg11: memref<1x384xf32, #tpu.memory_space<vmem>>, %arg12: memref<8x384xbf16, #tpu.memory_space<vmem>>, %arg13: memref<3x384xbf16, #tpu.memory_space<vmem>>, %arg14: memref<3x384xbf16, #tpu.memory_space<vmem>>, %arg15: memref<16x128xf32, #tpu.memory_space<vmem>>, %arg16: memref<1x128xf32, #tpu.memory_space<vmem>>, %arg17: memref<128x256xf32, #tpu.memory_space<vmem>>, %arg18: memref<1x256xf32, #tpu.memory_space<vmem>>, %arg19: memref<256x8xf32, #tpu.memory_space<vmem>>, %arg20: memref<1x2x8xf32, #tpu.memory_space<vmem>>, %arg21: memref<16x3xf32, #tpu.memory_space<vmem>>, %arg22: memref<16x3xf32, #tpu.memory_space<vmem>>, %arg23: memref<16x384xf32, #tpu.memory_space<vmem>>) attributes {dimension_semantics = [#tpu.dimension_semantics<parallel>, #tpu.dimension_semantics<arbitrary>], iteration_bounds = array<i64: 4, 2>, scalar_prefetch = 2 : i64, scratch_operands = 3 : i64, tpu.core_type = #tpu.core_type<tc>, window_params = [{transform_indices = @transform_0, window_bounds = array<i64: 8, 256>}, {transform_indices = @transform_1, window_bounds = array<i64: 256, 64>}, {transform_indices = @transform_2, window_bounds = array<i64: 16, 256>}, {pipeline_mode = #tpu.pipeline_mode<synchronous>, transform_indices = @transform_3, window_bounds = array<i64: 64, 16>}, {transform_indices = @transform_4, window_bounds = array<i64: 16, 16>}, {transform_indices = @transform_5, window_bounds = array<i64: 16, 2>}, {pipeline_mode = #tpu.pipeline_mode<synchronous>, transform_indices = @transform_6, window_bounds = array<i64: 16, 384>}, {pipeline_mode = #tpu.pipeline_mode<synchronous>, transform_indices = @transform_7, window_bounds = array<i64: 1, 384>}, {pipeline_mode = #tpu.pipeline_mode<synchronous>, transform_indices = @transform_8, window_bounds = array<i64: 8, 384>}, {pipeline_mode = #tpu.pipeline_mode<synchronous>, transform_indices = @transform_9, window_bounds = array<i64: 3, 384>}, {pipeline_mode = #tpu.pipeline_mode<synchronous>, transform_indices = @transform_10, window_bounds = array<i64: 3, 384>}, {pipeline_mode = #tpu.pipeline_mode<synchronous>, transform_indices = @transform_11, window_bounds = array<i64: 16, 128>}, {pipeline_mode = #tpu.pipeline_mode<synchronous>, transform_indices = @transform_12, window_bounds = array<i64: 1, 128>}, {pipeline_mode = #tpu.pipeline_mode<synchronous>, transform_indices = @transform_13, window_bounds = array<i64: 128, 256>}, {pipeline_mode = #tpu.pipeline_mode<synchronous>, transform_indices = @transform_14, window_bounds = array<i64: 1, 256>}, {pipeline_mode = #tpu.pipeline_mode<synchronous>, transform_indices = @transform_15, window_bounds = array<i64: 256, 8>}, {transform_indices = @transform_16, window_bounds = array<i64: 1, 2, 8>}]} {
    %c0_i32 = arith.constant 0 : i32
    %0 = arith.cmpi eq, %arg1, %c0_i32 : i32
    %1 = arith.extui %0 : i1 to i32
    %c0_i32_0 = arith.constant 0 : i32
    %2 = arith.cmpi ne, %1, %c0_i32_0 : i32
    scf.if %2 {
      %cst_52 = arith.constant -1.2676506E+30 : f32
      %102 = vector.broadcast %cst_52 : f32 to vector<16x3xf32>
      %c0_53 = arith.constant 0 : index
      %c0_54 = arith.constant 0 : index
      %103 = vector.load %arg21[%c0_53, %c0_54] : memref<16x3xf32, #tpu.memory_space<vmem>>, vector<16x3xf32>
      tpu.vector_store %arg21[%c0_53, %c0_54], %102 {strides = array<i32>} : memref<16x3xf32, #tpu.memory_space<vmem>>, vector<16x3xf32>,
      %cst_55 = arith.constant 0.000000e+00 : f32
      %104 = vector.broadcast %cst_55 : f32 to vector<16x3xf32>
      %c0_56 = arith.constant 0 : index
      %c0_57 = arith.constant 0 : index
      %105 = vector.load %arg22[%c0_56, %c0_57] : memref<16x3xf32, #tpu.memory_space<vmem>>, vector<16x3xf32>
      tpu.vector_store %arg22[%c0_56, %c0_57], %104 {strides = array<i32>} : memref<16x3xf32, #tpu.memory_space<vmem>>, vector<16x3xf32>,
      %cst_58 = arith.constant 0.000000e+00 : f32
      %106 = vector.broadcast %cst_58 : f32 to vector<16x384xf32>
      %c0_59 = arith.constant 0 : index
      %c0_60 = arith.constant 0 : index
      %107 = vector.load %arg23[%c0_59, %c0_60] : memref<16x384xf32, #tpu.memory_space<vmem>>, vector<16x384xf32>
      tpu.vector_store %arg23[%c0_59, %c0_60], %106 {strides = array<i32>} : memref<16x384xf32, #tpu.memory_space<vmem>>, vector<16x384xf32>,
    } else {
    }
    %c0 = arith.constant 0 : index
    %c0_1 = arith.constant 0 : index
    %3 = vector.load %arg5[%c0, %c0_1] : memref<256x64xbf16, #tpu.memory_space<vmem>>, vector<256x64xbf16>
    %c0_2 = arith.constant 0 : index
    %c0_3 = arith.constant 0 : index
    %4 = vector.load %arg7[%c0_2, %c0_3] : memref<64x16xbf16, #tpu.memory_space<vmem>>, vector<64x16xbf16>
    %cst = arith.constant dense<0.000000e+00> : vector<256x16xf32>
    %5 = tpu.matmul %3, %4, %cst {dimension_numbers = #tpu.dot_dimension_numbers<[1], [0], [0], [1], [0, 0, 1, 1], [], []>} : vector<256x64xbf16>, vector<64x16xbf16>, vector<256x16xf32> -> vector<256x16xf32>
    %6 = arith.truncf %5 : vector<256x16xf32> to vector<256x16xbf16>
    %c0_4 = arith.constant 0 : index
    %c0_5 = arith.constant 0 : index
    %7 = vector.load %arg10[%c0_4, %c0_5] : memref<16x384xbf16, #tpu.memory_space<vmem>>, vector<16x384xbf16>
    %cst_6 = arith.constant dense<0.000000e+00> : vector<256x384xf32>
    %8 = tpu.matmul %6, %7, %cst_6 {dimension_numbers = #tpu.dot_dimension_numbers<[1], [0], [0], [1], [0, 0, 1, 1], [], []>} : vector<256x16xbf16>, vector<16x384xbf16>, vector<256x384xf32> -> vector<256x384xf32>
    %c0_7 = arith.constant 0 : index
    %c0_8 = arith.constant 0 : index
    %9 = vector.load %arg4[%c0_7, %c0_8] : memref<8x256xbf16, #tpu.memory_space<vmem>>, vector<8x256xbf16>
    %c0_9 = arith.constant 0 : index
    %c0_10 = arith.constant 0 : index
    %10 = vector.load %arg12[%c0_9, %c0_10] : memref<8x384xbf16, #tpu.memory_space<vmem>>, vector<8x384xbf16>
    %cst_11 = arith.constant dense<0.000000e+00> : vector<256x384xf32>
    %11 = tpu.matmul %9, %10, %cst_11 {dimension_numbers = #tpu.dot_dimension_numbers<[0], [0], [1], [1], [0, 1, 1, 1], [], []>} : vector<8x256xbf16>, vector<8x384xbf16>, vector<256x384xf32> -> vector<256x384xf32>
    %12 = arith.addf %8, %11 : vector<256x384xf32>
    %c0_12 = arith.constant 0 : index
    %c0_13 = arith.constant 0 : index
    %13 = vector.load %arg11[%c0_12, %c0_13] : memref<1x384xf32, #tpu.memory_space<vmem>>, vector<1x384xf32>
    %14 = vector.broadcast %13 : vector<1x384xf32> to vector<256x384xf32>
    %15 = arith.addf %12, %14 : vector<256x384xf32>
    %c0_14 = arith.constant 0 : index
    %c0_15 = arith.constant 0 : index
    %16 = vector.load %arg13[%c0_14, %c0_15] : memref<3x384xbf16, #tpu.memory_space<vmem>>, vector<3x384xbf16>
    %17 = arith.truncf %15 : vector<256x384xf32> to vector<256x384xbf16>
    %cst_16 = arith.constant dense<0.000000e+00> : vector<3x256xf32>
    %18 = tpu.matmul %16, %17, %cst_16 {dimension_numbers = #tpu.dot_dimension_numbers<[1], [1], [0], [0], [0, 0, 1, 0], [], []>} : vector<3x384xbf16>, vector<256x384xbf16>, vector<3x256xf32> -> vector<3x256xf32>
    %cst_17 = arith.constant 0.000000e+00 : f32
    %19 = vector.broadcast %cst_17 : f32 to vector<3x256xf32>
    %20 = arith.cmpf ogt, %18, %19 : vector<3x256xf32>
    %cst_18 = arith.constant 2.000000e-01 : f32
    %21 = vector.broadcast %cst_18 : f32 to vector<3x256xf32>
    %22 = arith.mulf %21, %18 : vector<3x256xf32>
    %23 = arith.select %20, %18, %22 : vector<3x256xi1>, vector<3x256xf32>
    %24 = arith.index_cast %arg0 : i32 to index
    %25 = memref.load %arg3[%24] : memref<4xi32, #tpu.memory_space<smem>>
    %c256_i32 = arith.constant 256 : i32
    %26 = arith.muli %arg1, %c256_i32 : i32
    %27 = arith.subi %25, %26 : i32
    %28 = tpu.iota {dimensions = array<i32: 1>} : vector<3x256xi32>
    %29 = vector.broadcast %27 : i32 to vector<3x256xi32>
    %30 = arith.cmpi slt, %28, %29 : vector<3x256xi32>
    %cst_19 = arith.constant -1.2676506E+30 : f32
    %31 = vector.broadcast %cst_19 : f32 to vector<3x256xf32>
    %32 = arith.select %30, %23, %31 : vector<3x256xi1>, vector<3x256xf32>
    %c0_20 = arith.constant 0 : index
    %c0_21 = arith.constant 0 : index
    %33 = vector.load %arg6[%c0_20, %c0_21] : memref<16x256xbf16, #tpu.memory_space<vmem>>, vector<16x256xbf16>
    %34 = arith.extf %33 : vector<16x256xbf16> to vector<16x256xf32>
    %cst_22 = arith.constant 1.000000e+00 : f32
    %35 = vector.broadcast %cst_22 : f32 to vector<16x256xf32>
    %36 = arith.subf %34, %35 : vector<16x256xf32>
    %cst_23 = arith.constant 1.2676506E+30 : f32
    %37 = vector.broadcast %cst_23 : f32 to vector<16x256xf32>
    %38 = arith.mulf %36, %37 : vector<16x256xf32>
    %39 = tpu.iota {dimensions = array<i32: 1>} : vector<16x3xi32>
    %cst_24 = arith.constant -1.2676506E+30 : f32
    %40 = vector.broadcast %cst_24 : f32 to vector<16x3xf32>
    %41 = vector.extract_strided_slice %32 {offsets = [0, 0], sizes = [1, 256], strides = [1, 1]} : vector<3x256xf32> to vector<1x256xf32>
    %42 = vector.broadcast %41 : vector<1x256xf32> to vector<16x256xf32>
    %43 = arith.addf %42, %38 : vector<16x256xf32>
    %cst_25 = arith.constant dense<0xFF800000> : vector<16xf32>
    %44 = vector.multi_reduction <maximumf>, %43, %cst_25 [1] : vector<16x256xf32> to vector<16xf32>
    %45 = vector.shape_cast %44 : vector<16xf32> to vector<16x1xf32>
    %c0_i32_26 = arith.constant 0 : i32
    %46 = vector.broadcast %c0_i32_26 : i32 to vector<16x3xi32>
    %47 = arith.cmpi eq, %39, %46 : vector<16x3xi32>
    %48 = vector.shape_cast %45 : vector<16x1xf32> to vector<16x1xf32>
    %49 = vector.broadcast %48 : vector<16x1xf32> to vector<16x3xf32>
    %50 = arith.select %47, %49, %40 : vector<16x3xi1>, vector<16x3xf32>
    %51 = vector.extract_strided_slice %32 {offsets = [1, 0], sizes = [1, 256], strides = [1, 1]} : vector<3x256xf32> to vector<1x256xf32>
    %52 = vector.broadcast %51 : vector<1x256xf32> to vector<16x256xf32>
    %53 = arith.addf %52, %38 : vector<16x256xf32>
    %cst_27 = arith.constant dense<0xFF800000> : vector<16xf32>
    %54 = vector.multi_reduction <maximumf>, %53, %cst_27 [1] : vector<16x256xf32> to vector<16xf32>
    %55 = vector.shape_cast %54 : vector<16xf32> to vector<16x1xf32>
    %c1_i32 = arith.constant 1 : i32
    %56 = vector.broadcast %c1_i32 : i32 to vector<16x3xi32>
    %57 = arith.cmpi eq, %39, %56 : vector<16x3xi32>
    %58 = vector.shape_cast %55 : vector<16x1xf32> to vector<16x1xf32>
    %59 = vector.broadcast %58 : vector<16x1xf32> to vector<16x3xf32>
    %60 = arith.select %57, %59, %50 : vector<16x3xi1>, vector<16x3xf32>
    %61 = vector.extract_strided_slice %32 {offsets = [2, 0], sizes = [1, 256], strides = [1, 1]} : vector<3x256xf32> to vector<1x256xf32>
    %62 = vector.broadcast %61 : vector<1x256xf32> to vector<16x256xf32>
    %63 = arith.addf %62, %38 : vector<16x256xf32>
    %cst_28 = arith.constant dense<0xFF800000> : vector<16xf32>
    %64 = vector.multi_reduction <maximumf>, %63, %cst_28 [1] : vector<16x256xf32> to vector<16xf32>
    %65 = vector.shape_cast %64 : vector<16xf32> to vector<16x1xf32>
    %c2_i32 = arith.constant 2 : i32
    %66 = vector.broadcast %c2_i32 : i32 to vector<16x3xi32>
    %67 = arith.cmpi eq, %39, %66 : vector<16x3xi32>
    %68 = vector.shape_cast %65 : vector<16x1xf32> to vector<16x1xf32>
    %69 = vector.broadcast %68 : vector<16x1xf32> to vector<16x3xf32>
    %70 = arith.select %67, %69, %60 : vector<16x3xi1>, vector<16x3xf32>
    %c0_29 = arith.constant 0 : index
    %c0_30 = arith.constant 0 : index
    %71 = vector.load %arg21[%c0_29, %c0_30] : memref<16x3xf32, #tpu.memory_space<vmem>>, vector<16x3xf32>
    %72 = arith.maximumf %71, %70 : vector<16x3xf32>
    %73 = arith.truncf %72 : vector<16x3xf32> to vector<16x3xbf16>
    %74 = arith.extf %73 : vector<16x3xbf16> to vector<16x3xf32>
    %c0_31 = arith.constant 0 : index
    %c0_32 = arith.constant 0 : index
    %75 = vector.load %arg21[%c0_31, %c0_32] : memref<16x3xf32, #tpu.memory_space<vmem>>, vector<16x3xf32>
    %76 = arith.subf %75, %74 : vector<16x3xf32>
    %77 = math.exp %76 : vector<16x3xf32>
    %c0_33 = arith.constant 0 : index
    %c0_34 = arith.constant 0 : index
    %78 = vector.load %arg21[%c0_33, %c0_34] : memref<16x3xf32, #tpu.memory_space<vmem>>, vector<16x3xf32>
    tpu.vector_store %arg21[%c0_33, %c0_34], %74 {strides = array<i32>} : memref<16x3xf32, #tpu.memory_space<vmem>>, vector<16x3xf32>,
    %cst_35 = arith.constant dense<0.000000e+00> : vector<3x256xf32>
    %79 = tpu.matmul %73, %33, %cst_35 {dimension_numbers = #tpu.dot_dimension_numbers<[0], [0], [1], [1], [0, 1, 1, 1], [], []>} : vector<16x3xbf16>, vector<16x256xbf16>, vector<3x256xf32> -> vector<3x256xf32>
    %80 = arith.subf %32, %79 : vector<3x256xf32>
    %81 = math.exp %80 : vector<3x256xf32>
    %82 = arith.truncf %81 : vector<3x256xf32> to vector<3x256xbf16>
    %c0_36 = arith.constant 0 : index
    %c0_37 = arith.constant 0 : index
    %83 = vector.load %arg22[%c0_36, %c0_37] : memref<16x3xf32, #tpu.memory_space<vmem>>, vector<16x3xf32>
    %84 = arith.mulf %83, %77 : vector<16x3xf32>
    %cst_38 = arith.constant dense<0.000000e+00> : vector<16x3xf32>
    %85 = tpu.matmul %33, %82, %cst_38 {dimension_numbers = #tpu.dot_dimension_numbers<[1], [1], [0], [0], [0, 0, 1, 0], [], []>} : vector<16x256xbf16>, vector<3x256xbf16>, vector<16x3xf32> -> vector<16x3xf32>
    %86 = arith.addf %84, %85 : vector<16x3xf32>
    %c0_39 = arith.constant 0 : index
    %c0_40 = arith.constant 0 : index
    %87 = vector.load %arg22[%c0_39, %c0_40] : memref<16x3xf32, #tpu.memory_space<vmem>>, vector<16x3xf32>
    tpu.vector_store %arg22[%c0_39, %c0_40], %86 {strides = array<i32>} : memref<16x3xf32, #tpu.memory_space<vmem>>, vector<16x3xf32>,
    %c0_41 = arith.constant 0 : index
    %c0_42 = arith.constant 0 : index
    %88 = vector.load %arg14[%c0_41, %c0_42] : memref<3x384xbf16, #tpu.memory_space<vmem>>, vector<3x384xbf16>
    %cst_43 = arith.constant dense<0.000000e+00> : vector<256x384xf32>
    %89 = tpu.matmul %82, %88, %cst_43 {dimension_numbers = #tpu.dot_dimension_numbers<[0], [0], [1], [1], [0, 1, 1, 1], [], []>} : vector<3x256xbf16>, vector<3x384xbf16>, vector<256x384xf32> -> vector<256x384xf32>
    %90 = arith.mulf %15, %89 : vector<256x384xf32>
    %91 = arith.truncf %90 : vector<256x384xf32> to vector<256x384xbf16>
    %92 = arith.truncf %77 : vector<16x3xf32> to vector<16x3xbf16>
    %cst_44 = arith.constant dense<0.000000e+00> : vector<16x384xf32>
    %93 = tpu.matmul %92, %88, %cst_44 {dimension_numbers = #tpu.dot_dimension_numbers<[1], [0], [0], [1], [0, 0, 1, 1], [], []>} : vector<16x3xbf16>, vector<3x384xbf16>, vector<16x384xf32> -> vector<16x384xf32>
    %c0_45 = arith.constant 0 : index
    %c0_46 = arith.constant 0 : index
    %94 = vector.load %arg23[%c0_45, %c0_46] : memref<16x384xf32, #tpu.memory_space<vmem>>, vector<16x384xf32>
    %95 = arith.mulf %94, %93 : vector<16x384xf32>
    %cst_47 = arith.constant dense<0.000000e+00> : vector<16x384xf32>
    %96 = tpu.matmul %33, %91, %cst_47 {dimension_numbers = #tpu.dot_dimension_numbers<[1], [0], [0], [1], [0, 0, 1, 1], [], []>} : vector<16x256xbf16>, vector<256x384xbf16>, vector<16x384xf32> -> vector<16x384xf32>
    %97 = arith.addf %95, %96 : vector<16x384xf32>
    %c0_48 = arith.constant 0 : index
    %c0_49 = arith.constant 0 : index
    %98 = vector.load %arg23[%c0_48, %c0_49] : memref<16x384xf32, #tpu.memory_space<vmem>>, vector<16x384xf32>
    tpu.vector_store %arg23[%c0_48, %c0_49], %97 {strides = array<i32>} : memref<16x384xf32, #tpu.memory_space<vmem>>, vector<16x384xf32>,
    %c1_i32_50 = arith.constant 1 : i32
    %99 = arith.cmpi eq, %arg1, %c1_i32_50 : i32
    %100 = arith.extui %99 : i1 to i32
    %c0_i32_51 = arith.constant 0 : i32
    %101 = arith.cmpi ne, %100, %c0_i32_51 : i32
    scf.if %101 {
      %c0_52 = arith.constant 0 : index
      %c0_53 = arith.constant 0 : index
      %102 = vector.load %arg22[%c0_52, %c0_53] : memref<16x3xf32, #tpu.memory_space<vmem>>, vector<16x3xf32>
      %cst_54 = arith.constant 1.000000e-16 : f32
      %103 = vector.broadcast %cst_54 : f32 to vector<16x3xf32>
      %104 = arith.addf %102, %103 : vector<16x3xf32>
      %105 = tpu.reciprocal %104 {approx = true} : vector<16x3xf32> -> vector<16x3xf32>
      %106 = arith.extf %88 : vector<3x384xbf16> to vector<3x384xf32>
      %cst_55 = arith.constant dense<0.000000e+00> : vector<16x384xf32>
      %107 = tpu.matmul %105, %106, %cst_55 {dimension_numbers = #tpu.dot_dimension_numbers<[1], [0], [0], [1], [0, 0, 1, 1], [], []>} : vector<16x3xf32>, vector<3x384xf32>, vector<16x384xf32> -> vector<16x384xf32>
      %c0_56 = arith.constant 0 : index
      %c0_57 = arith.constant 0 : index
      %108 = vector.load %arg23[%c0_56, %c0_57] : memref<16x384xf32, #tpu.memory_space<vmem>>, vector<16x384xf32>
      %109 = arith.mulf %108, %107 : vector<16x384xf32>
      %cst_58 = arith.constant 0.000000e+00 : f32
      %110 = vector.broadcast %cst_58 : f32 to vector<16x128xf32>
      %111 = vector.extract_strided_slice %109 {offsets = [0, 0], sizes = [16, 128], strides = [1, 1]} : vector<16x384xf32> to vector<16x128xf32>
      %112 = arith.addf %110, %111 : vector<16x128xf32>
      %113 = vector.extract_strided_slice %109 {offsets = [0, 128], sizes = [16, 128], strides = [1, 1]} : vector<16x384xf32> to vector<16x128xf32>
      %114 = arith.addf %112, %113 : vector<16x128xf32>
      %115 = vector.extract_strided_slice %109 {offsets = [0, 256], sizes = [16, 128], strides = [1, 1]} : vector<16x384xf32> to vector<16x128xf32>
      %116 = arith.addf %114, %115 : vector<16x128xf32>
      %cst_59 = arith.constant 0.333333343 : f32
      %117 = vector.broadcast %cst_59 : f32 to vector<16x128xf32>
      %118 = arith.mulf %116, %117 : vector<16x128xf32>
      %c0_60 = arith.constant 0 : index
      %c0_61 = arith.constant 0 : index
      %119 = vector.load %arg8[%c0_60, %c0_61] : memref<16x16xf32, #tpu.memory_space<vmem>>, vector<16x16xf32>
      %c0_62 = arith.constant 0 : index
      %c0_63 = arith.constant 0 : index
      %120 = vector.load %arg15[%c0_62, %c0_63] : memref<16x128xf32, #tpu.memory_space<vmem>>, vector<16x128xf32>
      %cst_64 = arith.constant dense<0.000000e+00> : vector<16x128xf32>
      %121 = tpu.matmul %119, %120, %cst_64 {dimension_numbers = #tpu.dot_dimension_numbers<[1], [0], [0], [1], [0, 0, 1, 1], [], []>} : vector<16x16xf32>, vector<16x128xf32>, vector<16x128xf32> -> vector<16x128xf32>
      %122 = arith.addf %118, %121 : vector<16x128xf32>
      %c0_65 = arith.constant 0 : index
      %c0_66 = arith.constant 0 : index
      %123 = vector.load %arg16[%c0_65, %c0_66] : memref<1x128xf32, #tpu.memory_space<vmem>>, vector<1x128xf32>
      %124 = vector.broadcast %123 : vector<1x128xf32> to vector<16x128xf32>
      %125 = arith.addf %122, %124 : vector<16x128xf32>
      %c0_67 = arith.constant 0 : index
      %c0_68 = arith.constant 0 : index
      %126 = vector.load %arg17[%c0_67, %c0_68] : memref<128x256xf32, #tpu.memory_space<vmem>>, vector<128x256xf32>
      %cst_69 = arith.constant dense<0.000000e+00> : vector<16x256xf32>
      %127 = tpu.matmul %125, %126, %cst_69 {dimension_numbers = #tpu.dot_dimension_numbers<[1], [0], [0], [1], [0, 0, 1, 1], [], []>} : vector<16x128xf32>, vector<128x256xf32>, vector<16x256xf32> -> vector<16x256xf32>
      %c0_70 = arith.constant 0 : index
      %c0_71 = arith.constant 0 : index
      %128 = vector.load %arg18[%c0_70, %c0_71] : memref<1x256xf32, #tpu.memory_space<vmem>>, vector<1x256xf32>
      %129 = vector.broadcast %128 : vector<1x256xf32> to vector<16x256xf32>
      %130 = arith.addf %127, %129 : vector<16x256xf32>
      %cst_72 = arith.constant 0.000000e+00 : f32
      %131 = vector.broadcast %cst_72 : f32 to vector<16x256xf32>
      %132 = arith.maximumf %130, %131 : vector<16x256xf32>
      %c0_73 = arith.constant 0 : index
      %c0_74 = arith.constant 0 : index
      %133 = vector.load %arg9[%c0_73, %c0_74] : memref<16x2xf32, #tpu.memory_space<vmem>>, vector<16x2xf32>
      %cst_75 = arith.constant dense<0.000000e+00> : vector<2x256xf32>
      %134 = tpu.matmul %133, %132, %cst_75 {dimension_numbers = #tpu.dot_dimension_numbers<[0], [0], [1], [1], [0, 1, 1, 1], [], []>} : vector<16x2xf32>, vector<16x256xf32>, vector<2x256xf32> -> vector<2x256xf32>
      %c0_76 = arith.constant 0 : index
      %c0_77 = arith.constant 0 : index
      %135 = vector.load %arg19[%c0_76, %c0_77] : memref<256x8xf32, #tpu.memory_space<vmem>>, vector<256x8xf32>
      %cst_78 = arith.constant dense<0.000000e+00> : vector<2x8xf32>
      %136 = tpu.matmul %134, %135, %cst_78 {dimension_numbers = #tpu.dot_dimension_numbers<[1], [0], [0], [1], [0, 0, 1, 1], [], []>} : vector<2x256xf32>, vector<256x8xf32>, vector<2x8xf32> -> vector<2x8xf32>
      %c0_79 = arith.constant 0 : index
      %c0_80 = arith.constant 0 : index
      %c0_81 = arith.constant 0 : index
      %137 = vector.load %arg20[%c0_79, %c0_80, %c0_81] : memref<1x2x8xf32, #tpu.memory_space<vmem>>, vector<1x2x8xf32>
      %138 = vector.shape_cast %137 : vector<1x2x8xf32> to vector<2x8xf32>
      %139 = vector.shape_cast %136 : vector<2x8xf32> to vector<1x2x8xf32>
      tpu.vector_store %arg20[%c0_79, %c0_80, %c0_81], %139 {strides = array<i32>} : memref<1x2x8xf32, #tpu.memory_space<vmem>>, vector<1x2x8xf32>,
    } else {
    }
    return
  }
  func.func @transform_0(%arg0: i32, %arg1: i32, %arg2: memref<4xi32, #tpu.memory_space<smem>>, %arg3: memref<4xi32, #tpu.memory_space<smem>>) -> (i32, i32) {
    %0 = arith.index_cast %arg0 : i32 to index
    %1 = memref.load %arg2[%0] : memref<4xi32, #tpu.memory_space<smem>>
    %2 = arith.addi %1, %arg1 : i32
    %c7_i32 = arith.constant 7 : i32
    %3 = arith.minsi %2, %c7_i32 : i32
    %c0_i32 = arith.constant 0 : i32
    %c0_i32_0 = arith.constant 0 : i32
    return %c0_i32, %3 : i32, i32
  }
  func.func @transform_1(%arg0: i32, %arg1: i32, %arg2: memref<4xi32, #tpu.memory_space<smem>>, %arg3: memref<4xi32, #tpu.memory_space<smem>>) -> (i32, i32) {
    %0 = arith.index_cast %arg0 : i32 to index
    %1 = memref.load %arg2[%0] : memref<4xi32, #tpu.memory_space<smem>>
    %2 = arith.addi %1, %arg1 : i32
    %c7_i32 = arith.constant 7 : i32
    %3 = arith.minsi %2, %c7_i32 : i32
    %c0_i32 = arith.constant 0 : i32
    %c0_i32_0 = arith.constant 0 : i32
    return %3, %c0_i32 : i32, i32
  }
  func.func @transform_2(%arg0: i32, %arg1: i32, %arg2: memref<4xi32, #tpu.memory_space<smem>>, %arg3: memref<4xi32, #tpu.memory_space<smem>>) -> (i32, i32) {
    %0 = arith.index_cast %arg0 : i32 to index
    %1 = memref.load %arg2[%0] : memref<4xi32, #tpu.memory_space<smem>>
    %2 = arith.addi %1, %arg1 : i32
    %c7_i32 = arith.constant 7 : i32
    %3 = arith.minsi %2, %c7_i32 : i32
    %c0_i32 = arith.constant 0 : i32
    return %arg0, %3 : i32, i32
  }
  func.func @transform_3(%arg0: i32, %arg1: i32, %arg2: memref<4xi32, #tpu.memory_space<smem>>, %arg3: memref<4xi32, #tpu.memory_space<smem>>) -> (i32, i32) {
    %c0_i32 = arith.constant 0 : i32
    %c0_i32_0 = arith.constant 0 : i32
    %c0_i32_1 = arith.constant 0 : i32
    return %c0_i32, %c0_i32_0 : i32, i32
  }
  func.func @transform_4(%arg0: i32, %arg1: i32, %arg2: memref<4xi32, #tpu.memory_space<smem>>, %arg3: memref<4xi32, #tpu.memory_space<smem>>) -> (i32, i32) {
    %c0_i32 = arith.constant 0 : i32
    %c0_i32_0 = arith.constant 0 : i32
    return %arg0, %c0_i32 : i32, i32
  }
  func.func @transform_5(%arg0: i32, %arg1: i32, %arg2: memref<4xi32, #tpu.memory_space<smem>>, %arg3: memref<4xi32, #tpu.memory_space<smem>>) -> (i32, i32) {
    %c0_i32 = arith.constant 0 : i32
    %c0_i32_0 = arith.constant 0 : i32
    return %arg0, %c0_i32 : i32, i32
  }
  func.func @transform_6(%arg0: i32, %arg1: i32, %arg2: memref<4xi32, #tpu.memory_space<smem>>, %arg3: memref<4xi32, #tpu.memory_space<smem>>) -> (i32, i32) {
    %c0_i32 = arith.constant 0 : i32
    %c0_i32_0 = arith.constant 0 : i32
    %c0_i32_1 = arith.constant 0 : i32
    return %c0_i32, %c0_i32_0 : i32, i32
  }
  func.func @transform_7(%arg0: i32, %arg1: i32, %arg2: memref<4xi32, #tpu.memory_space<smem>>, %arg3: memref<4xi32, #tpu.memory_space<smem>>) -> (i32, i32) {
    %c0_i32 = arith.constant 0 : i32
    %c0_i32_0 = arith.constant 0 : i32
    %c0_i32_1 = arith.constant 0 : i32
    return %c0_i32, %c0_i32_0 : i32, i32
  }
  func.func @transform_8(%arg0: i32, %arg1: i32, %arg2: memref<4xi32, #tpu.memory_space<smem>>, %arg3: memref<4xi32, #tpu.memory_space<smem>>) -> (i32, i32) {
    %c0_i32 = arith.constant 0 : i32
    %c0_i32_0 = arith.constant 0 : i32
    %c0_i32_1 = arith.constant 0 : i32
    return %c0_i32, %c0_i32_0 : i32, i32
  }
  func.func @transform_9(%arg0: i32, %arg1: i32, %arg2: memref<4xi32, #tpu.memory_space<smem>>, %arg3: memref<4xi32, #tpu.memory_space<smem>>) -> (i32, i32) {
    %c0_i32 = arith.constant 0 : i32
    %c0_i32_0 = arith.constant 0 : i32
    %c0_i32_1 = arith.constant 0 : i32
    return %c0_i32, %c0_i32_0 : i32, i32
  }
  func.func @transform_10(%arg0: i32, %arg1: i32, %arg2: memref<4xi32, #tpu.memory_space<smem>>, %arg3: memref<4xi32, #tpu.memory_space<smem>>) -> (i32, i32) {
    %c0_i32 = arith.constant 0 : i32
    %c0_i32_0 = arith.constant 0 : i32
    %c0_i32_1 = arith.constant 0 : i32
    return %c0_i32, %c0_i32_0 : i32, i32
  }
  func.func @transform_11(%arg0: i32, %arg1: i32, %arg2: memref<4xi32, #tpu.memory_space<smem>>, %arg3: memref<4xi32, #tpu.memory_space<smem>>) -> (i32, i32) {
    %c0_i32 = arith.constant 0 : i32
    %c0_i32_0 = arith.constant 0 : i32
    %c0_i32_1 = arith.constant 0 : i32
    return %c0_i32, %c0_i32_0 : i32, i32
  }
  func.func @transform_12(%arg0: i32, %arg1: i32, %arg2: memref<4xi32, #tpu.memory_space<smem>>, %arg3: memref<4xi32, #tpu.memory_space<smem>>) -> (i32, i32) {
    %c0_i32 = arith.constant 0 : i32
    %c0_i32_0 = arith.constant 0 : i32
    %c0_i32_1 = arith.constant 0 : i32
    return %c0_i32, %c0_i32_0 : i32, i32
  }
  func.func @transform_13(%arg0: i32, %arg1: i32, %arg2: memref<4xi32, #tpu.memory_space<smem>>, %arg3: memref<4xi32, #tpu.memory_space<smem>>) -> (i32, i32) {
    %c0_i32 = arith.constant 0 : i32
    %c0_i32_0 = arith.constant 0 : i32
    %c0_i32_1 = arith.constant 0 : i32
    return %c0_i32, %c0_i32_0 : i32, i32
  }
  func.func @transform_14(%arg0: i32, %arg1: i32, %arg2: memref<4xi32, #tpu.memory_space<smem>>, %arg3: memref<4xi32, #tpu.memory_space<smem>>) -> (i32, i32) {
    %c0_i32 = arith.constant 0 : i32
    %c0_i32_0 = arith.constant 0 : i32
    %c0_i32_1 = arith.constant 0 : i32
    return %c0_i32, %c0_i32_0 : i32, i32
  }
  func.func @transform_15(%arg0: i32, %arg1: i32, %arg2: memref<4xi32, #tpu.memory_space<smem>>, %arg3: memref<4xi32, #tpu.memory_space<smem>>) -> (i32, i32) {
    %c0_i32 = arith.constant 0 : i32
    %c0_i32_0 = arith.constant 0 : i32
    %c0_i32_1 = arith.constant 0 : i32
    return %c0_i32, %c0_i32_0 : i32, i32
  }
  func.func @transform_16(%arg0: i32, %arg1: i32, %arg2: memref<4xi32, #tpu.memory_space<smem>>, %arg3: memref<4xi32, #tpu.memory_space<smem>>) -> (i32, i32, i32) {
    %c0_i32 = arith.constant 0 : i32
    %c0_i32_0 = arith.constant 0 : i32
    %c0_i32_1 = arith.constant 0 : i32
    return %arg0, %c0_i32, %c0_i32_0 : i32, i32, i32
  }
}

</mosaic_0001>

<bundles_post_ra>
// kernel: tpu_custom_call.1
= control target key start
LH: loop header
LB: loop body
LE: loop exit
PB: predicated region body
PF: predicated region fallthrough
CT: control target
= control target key end

     0   :  { %s6478_s0 = inlined_call_operand.vmem [shape: s32[4], index: 0, kind: input, shape index: {}]   ;;  %s6479_s2 = inlined_call_operand.vmem [shape: bf16[8,2048], index: 2, kind: input, shape index: {}]   ;;  %s6480_s3 = inlined_call_operand.vmem [shape: bf16[2048,64], index: 3, kind: input, shape index: {}]   ;;  %s6481_s4 = inlined_call_operand.vmem [shape: bf16[64,2048], index: 4, kind: input, shape index: {}]   ;;  %s6482_s5 = inlined_call_operand.vmem [shape: bf16[64,16], index: 5, kind: input, shape index: {}]   ;;  %s6483_s6 = inlined_call_operand.vmem [shape: f32[64,16], index: 6, kind: input, shape index: {}]   ;;  %s6484_s7 = inlined_call_operand.vmem [shape: f32[64,2], index: 7, kind: input, shape index: {}]   ;;  %s6485_s8 = inlined_call_operand.vmem [shape: bf16[16,384], index: 8, kind: input, shape index: {}]   ;;  %s6486_s9 = inlined_call_operand.vmem [shape: f32[1,384], index: 9, kind: input, shape index: {}]   ;;  %s6487_s10 = inlined_call_operand.vmem [shape: bf16[8,384], index: 10, kind: input, shape index: {}]   ;;  %s6488_s11 = inlined_call_operand.vmem [shape: bf16[3,384], index: 11, kind: input, shape index: {}]   ;;  %s6489_s12 = inlined_call_operand.vmem [shape: bf16[3,384], index: 12, kind: input, shape index: {}]   ;;  %s6490_s13 = inlined_call_operand.vmem [shape: f32[16,128], index: 13, kind: input, shape index: {}]   ;;  %s6491_s14 = inlined_call_operand.vmem [shape: f32[1,128], index: 14, kind: input, shape index: {}]   ;;  %s6492_s15 = inlined_call_operand.vmem [shape: f32[128,256], index: 15, kind: input, shape index: {}]   ;;  %s6493_s16 = inlined_call_operand.vmem [shape: f32[1,256], index: 16, kind: input, shape index: {}]   ;;  %s6494_s17 = inlined_call_operand.vmem [shape: f32[256,8], index: 17, kind: input, shape index: {}]   ;;  %s6495_s18 = inlined_call_operand.hbm [shape: f32[4,2,8], index: 18, kind: output, shape index: {}]   ;;  %s6496_s1 = inlined_call_operand.vmem [shape: s32[4], index: 1, kind: input, shape index: {}]  }
   0x1   :  { %6574 = sst [smem:[#allocation84_spill]] %s6478_s0  ;;  %s27_s19 = sshll.u32 %s6496_s1, 4  ;;  %s28_s19 = int_to_ptr.vmem [resolvable:$true] %s27_s19 }
   0x2   :  { %6575 = sst [smem:[#allocation85_spill]] %s6479_s2  ;;  %s6588_s29 = sld [smem:[#allocation84_spill]] }
   0x3   :  { %6576 = sst [smem:[#allocation86_spill]] %s6480_s3 }
   0x4   :  { %6577 = sst [smem:[#allocation87_spill]] %s6481_s4 }
   0x5   :  { %6578 = sst [smem:[#allocation88_spill]] %s6483_s6 }
   0x6   :  { %6579 = sst [smem:[#allocation89_spill]] %s6486_s9 }
   0x7   :  { %6580 = sst [smem:[#allocation90_spill]] %s6488_s11 }
   0x8   :  { %6581 = sst [smem:[#allocation91_spill]] %s6489_s12 }
   0x9   :  { %6582 = sst [smem:[#allocation92_spill]] %s6490_s13  ;;  %s23_s13 = sshll.u32 %s6588_s29, 4  ;;  %s24_s13 = int_to_ptr.vmem [resolvable:$true] %s23_s13 }
   0xa   :  { %6583 = sst [smem:[#allocation93_spill]] %s6491_s14  ;;  %s4919_s2 = scalar_lea.vmem %s24_s13, 16 }
   0xb   :  { %6584 = sst [smem:[#allocation94_spill]] %s6492_s15  ;;  %p4920_p0 = scmp.ne.s32.totalorder %s24_s13, %s4919_s2 }
   0xc   :  { %6585 = sst [smem:[#allocation95_spill]] %s6493_s16  ;;  %p4924_p1 = scmp.lt.s32.totalorder %s24_s13, %s24_s13 }
   0xd   :  { %6586 = sst [smem:[#allocation96_spill]] %s6494_s17  ;;  %p4925_p2 = scmp.lt.s32.totalorder %s4919_s2, %s4919_s2 }
   0xe   :  { %6587 = sst [smem:[#allocation97_spill]] %s6495_s18 }
   0xf   :  { %p4926_p3 = por %p4925_p2, %p4924_p1 }
  0x11   :  { %p4927_p4 = pnand %p4926_p3, %p4920_p0 }
  0x13   :  { %4930 = shalt.err (!%p4927_p4)  }
  0x14   :  { %s5057_s20 = smov [#allocation6]   ;;  %s4931_s21 = scalar_lea.vmem %s28_s19, 16 }
  0x15   :  { %26 = dma.vmem_to_smem %s24_s13, 16, %s5057_s20, [#allocation5] }
  0x16   :  { %p4932_p5 = scmp.ne.s32.totalorder %s28_s19, %s4931_s21  ;;  %p4936_p6 = scmp.lt.s32.totalorder %s28_s19, %s28_s19 }
  0x17   :  { %p4937_p7 = scmp.lt.s32.totalorder %s4931_s21, %s4931_s21 }
  0x19   :  { %p4938_p8 = por %p4937_p7, %p4936_p6 }
  0x1b   :  { %p4939_p9 = pnand %p4938_p8, %p4932_p5 }
  0x1d   :  { %4942 = shalt.err (!%p4939_p9)  }
  0x1e   :  { %s5058_s22 = smov [#allocation7]  }
  0x1f   :  { %30 = dma.vmem_to_smem %s28_s19, 16, %s5058_s22, [#allocation5] }
  0x20   :  { %5011 = dma.done.wait [#allocation5], 32 }
  0x21   :  { %5012 = vsyncadd [#allocation5], 4294967264 }
  0x22   :  { %32 = sfence }
  0x23   :  { %33 = vsyncpa [#allocation10], 0 }
  0x24   :  { %35 = vsyncpa [#allocation10 + $0x1], 0  ;;  %s5169_s1 = smov 0   ;;  %s5171_s3 = smov 0  }
  0x25   :  { %s5173_s23 = smov 0   ;;  %s5175_s13 = smov 0  }
  0x26   :  { %s5177_s24 = smov 0   ;;  %s5179_s25 = smov 0  }
  0x27   :  { %s5181_s26 = smov 0   ;;  %s5183_s27 = smov 0  }
  0x28   :  { %s5185_s28 = smov 0   ;;  %s5187_s29 = smov 0  }
  0x29 LB: > { %6589 = sst [smem:[#allocation13_spill]] %s5027_s23  ;;  %s4102_s30 = sadd.s32 4294967295, %s5055_s29   ;;  %s5055_s29 = sphi %s5187_s29, %s41_s29   ;;  %s5051_s28 = sphi %s5185_s28, %s6751_s28   ;;  %s5047_s27 = sphi %s5183_s27, %s6750_s27   ;;  %s5043_s26 = sphi %s5181_s26, %s6749_s26   ;;  %s5039_s25 = sphi %s5179_s25, %s6754_s25   ;;  %s5035_s24 = sphi %s5177_s24, %s6747_s24   ;;  %s5031_s13 = sphi %s5175_s13, %s6746_s13   ;;  %s5027_s23 = sphi %s5173_s23, %s6745_s23   ;;  %s5023_s3 = sphi %s5171_s3, %s6753_s3   ;;  %s5019_s1 = sphi %s5169_s1, %s6752_s1  }
  0x2a   : > { %6590 = sst [smem:[#allocation14_spill]] %s5035_s24  ;;  %s50_s0 = sadd.s32 1, %s5047_s27 }
  0x2b   : > { %6591 = sst [smem:[#allocation15_spill]] %s5047_s27  ;;  %s53_s19 = sadd.s32 1, %s5051_s28 }
  0x2c   : > { %6592 = sst [smem:[#allocation16_spill]] %s5051_s28  ;;  %p51_p10 = scmp.ge.s32.totalorder %s50_s0, 2 }
  0x2d   : > { %s125_s2 = sld [smem:[#allocation6 + %s5051_s28]]  ;;  %s4103_s20 = sadd.s32 4294967294, %s5055_s29  }
  0x2e   : > { %p145_p11 = scmp.ne.s32.totalorder %s5035_s24, %s5031_s13  ;;  %s6756_s0 = smov (%p51_p10, %s50_s0), 0 }
  0x2f   : > { %6593 = sst [smem:[#allocation17_spill]] %s6756_s0  ;;  %s6758_s19 = smov (!%p51_p10, %s53_s19), %s5051_s28 }
  0x30   : > { %p146_p12 = scmp.eq.s32.totalorder %s5055_s29, 0  ;;  %s447_s21 = sadd.s32 1, %s5027_s23 }
  0x31   : > { %p55_p13 = scmp.ge.s32.totalorder %s6758_s19, 4  ;;  %p457_p0 = scmp.ne.s32.totalorder %s5027_s23, %s5023_s3 }
  0x32   : > { %p5234_p1 = por %p146_p12, %p145_p11  ;;  %p458_p3 = scmp.eq.s32.totalorder %s4102_s30, 7 }
  0x33   : > { %s126_s22 = sadd.s32 %s5047_s27, %s125_s2  ;;  %s6760_s19 = smov (%p55_p13, %s6758_s19), 0 }
  0x34   : > { %6595 = sst [smem:[#allocation18_spill]] %s6760_s19  ;;  %p127_p2 = scmp.lt.s32.totalorder %s126_s22, 7 }
  0x35   : > { %s129_s17 = sld [smem:[#allocation6 + %s6760_s19]]  ;;  %s133_s16 = ssub.s32 %s5051_s28, %s6760_s19 }
  0x36   : > { %s6762_s22 = smov (!%p127_p2, %s126_s22), 7  ;;  %p445_p4 = scmp.eq.s32.totalorder %s133_s16, 0 }
  0x37   : > { %p5243_p5 = por %p458_p3, %p457_p0  ;;  %p463_p6 = scmp.ne.s32.totalorder %s5023_s3, %s5019_s1 }
  0x38   : > { %p464_p7 = scmp.eq.s32.totalorder %s4103_s20, 7  ;;  %s138_s19 = sadd.s32 1, %s5035_s24 }
  0x39   : > { %s5250_s2 = scalar_select %p445_p4, %s5027_s23, %s447_s21  }
  0x3a   : > { %p5252_p8 = por %p464_p7, %p463_p6  ;;  %p4105_p11 = scmp.ge.s32.totalorder %s5055_s29, 8 }
  0x3b   : > { %6597 = sst [smem:[#allocation19_spill]] %s5250_s2  ;;  %s130_s12 = sadd.s32 %s129_s17, %s6756_s0 }
  0x3c   : > { %s6598_s15 = scalar_select %p5252_p8, 1, 0 }
  0x3d   : > { %p131_p9 = scmp.lt.s32.totalorder %s130_s12, 7 }
  0x3e   : > { %6599 = sst [smem:[#allocation20_spill]] %s6598_s15 }
  0x3f   : > { %s6764_s12 = smov (!%p131_p9, %s130_s12), 7 }
  0x40   : > { %s134_s30 = ssub.s32 %s6762_s22, %s6764_s12  ;;  %513 = sbr.rel (%p4105_p11) target bundleno = 88 (0x58), region = 60 }
  0x41   : > { %s135_s11 = sor.u32 %s134_s30, %s133_s16 }
  0x42   : > { %p136_p10 = scmp.eq.s32.totalorder %s135_s11, 0 }
  0x44   : > { %s5259_s9 = scalar_select %p136_p10, %s5035_s24, %s138_s19  }
  0x46   : > { %6600 = sst [smem:[#allocation21_spill]] %s5259_s9 }
  0x47   : > { %550 = sbr.rel (!%p5234_p1) target bundleno = 88 (0x58), region = 72  ;;  %s555_s20 = sld [smem:[#allocation6 + %s5051_s28]] (%p5234_p1) }
  0x48   : > { %s552_s21 = sand.u32 (%p5234_p1), 1, %s5035_s24   ;;  %s4290_s12 = sshll.u32 (%p5234_p1), %s5051_s28, 5 }
  0x49   : > { %s4106_s16 = sshll.u32 (%p5234_p1), %s552_s21, 4  ;;  %s6601_s4 = sld [smem:[#allocation87_spill]] (%p5234_p1) }
  0x4a   : > { %s554_s18 = scalar_lea.vmem (%p5234_p1), [#allocation8], %s4106_s16 }
  0x4d   : > { %s556_s17 = sadd.s32 (%p5234_p1), %s5047_s27, %s555_s20 }
  0x4e   : > { %p557_p12 = scmp.lt.s32.totalorder %s556_s17, 7 }
  0x50   : > { %s6766_s17 = smov (!%p557_p12, %s556_s17), 7 }
  0x51   : > { %s4108_s11 = sshll.u32 %s6766_s17, 1 }
  0x52   : > { %s562_s19 = sadd.s32 %s4290_s12, %s4108_s11 }
  0x53   : > { %s4110_s22 = sshll.u32 %s562_s19, 2 }
  0x54   : > { %s564_s9 = scalar_lea.vmem %s6601_s4, %s4110_s22 }
  0x55   : > { %v594_v0 = vld [vmem:[%s564_s9] sm:$0xff] }
  0x56   : > { %v596_v1 = vld [vmem:[%s564_s9 + $0x40] sm:$0xff]  ;;  %595 = vst [vmem:[%s554_s18] sm:$0xff] %v594_v0 }
  0x57   : > { %597 = vst [vmem:[%s554_s18 + $0x8] sm:$0xff] %v596_v1 }
  0x58 PF: > { %p4111_p13 = scmp.ge.s32.totalorder %s5055_s29, 1  ;;  %p620_p0 = scmp.lt.s32.totalorder %s5055_s29, 9 }
  0x5a   : > { %p621_p1 = pnand %p4111_p13, %p620_p0 }
  0x5c   : > { %624 = sbr.rel (%p621_p1) target bundleno = 2853 (0xb25), region = 118 }
  0x63   : > { %s627_s9 = sand.u32 1, %s5031_s13   ;;  %s6503_s0 = sand.u32 1, %s5023_s3  }
  0x64   : > { %s5275_s20 = sshll.u32 %s627_s9, 4  ;;  %s5279_s17 = sshll.u32 %s6503_s0, 1 }
  0x65   : > { %s704_s21 = sld [smem:[#allocation6 + %s5043_s26]]  ;;  %s4118_s16 = sshll.u32 %s5043_s26, 1 }
  0x66   : > { %s718_s12 = sld [smem:[#allocation6 + %s5043_s26]]  ;;  %p739_p2 = scmp.lt.s32.totalorder %s4118_s16, 7 }
  0x67   : > { %s6602_s6 = sld [smem:[#allocation88_spill]]  ;;  %s6603_s24 = sld [smem:[#allocation85_spill]] }
  0x68   : > { %s6768_s16 = smov (!%p739_p2, %s4118_s16), 7  ;;  %s6604_s18 = sld [smem:[#allocation86_spill]] }
  0x69   : > { %s4119_s22 = sshll.u32 %s6768_s16, 3  ;;  %s703_s15 = scalar_lea.vmem [#allocation9], %s5279_s17 }
  0x6a   : > { %p4122_p9 = scmp.ne.s32.totalorder %s5039_s25, 0 }
  0x6b   : > { %s705_s11 = sadd.s32 %s5039_s25, %s704_s21  ;;  %s5294_s21 = scalar_lea.vmem %s6484_s7, %s4119_s22  ;;  %vm755_vm0 = vcmask (!%p4122_p9), 23552   ;;  %v5059_v2 = vmov (!%p4122_p9), -1.2676506e+30   ;;  %v5060_v3 = vmov (!%p4122_p9), 0.0  }
  0x6c   : > { %s719_s19 = sadd.s32 %s5039_s25, %s718_s12  ;;  %p706_p3 = scmp.lt.s32.totalorder %s705_s11, 7  ;;  %756 = vst.msk [vmem:[#allocation2] sm:$0xff] (!%p4122_p9), %vm755_vm0, %v5059_v2  ;;  %757 = vst.msk [vmem:[#allocation2 + $0x8] sm:$0xff] (!%p4122_p9), %vm755_vm0, %v5059_v2 }
  0x6d   : > { %p720_p4 = scmp.lt.s32.totalorder %s719_s19, 7  ;;  %s5289_s9 = scalar_lea.vmem %s6602_s6, %s4119_s22  ;;  %758 = vst.msk [vmem:[#allocation3] sm:$0xff] (!%p4122_p9), %vm755_vm0, %v5060_v3  ;;  %759 = vst.msk [vmem:[#allocation3 + $0x8] sm:$0xff] (!%p4122_p9), %vm755_vm0, %v5060_v3 }
  0x6e   : > { %s6770_s11 = smov (!%p706_p3, %s705_s11), 7  ;;  %760 = vst [vmem:[#allocation4] sm:$0xff] (!%p4122_p9), %v5060_v3  ;;  %761 = vst [vmem:[#allocation4 + $0x8] sm:$0xff] (!%p4122_p9), %v5060_v3 }
  0x6f   : > { %s6772_s19 = smov (!%p720_p4, %s719_s19), 7  ;;  %s4114_s13 = sshll.u32 %s6770_s11, 1  ;;  %762 = vst [vmem:[#allocation4 + $0x10] sm:$0xff] (!%p4122_p9), %v5060_v3  ;;  %763 = vst [vmem:[#allocation4 + $0x18] sm:$0xff] (!%p4122_p9), %v5060_v3 }
  0x70   : > { %p709_p6 = scmp.lt.s32.totalorder %s4114_s13, 15  ;;  %s4116_s0 = sshll.u32 %s6772_s19, 5  ;;  %764 = vst [vmem:[#allocation4 + $0x20] sm:$0xff] (!%p4122_p9), %v5060_v3  ;;  %765 = vst [vmem:[#allocation4 + $0x28] sm:$0xff] (!%p4122_p9), %v5060_v3 }
  0x71   : > { %p723_p7 = scmp.lt.s32.totalorder %s4116_s0, 255  ;;  %s629_s19 = scalar_lea.vmem [#allocation8], %s5275_s20 }
  0x72   : > { %s6774_s13 = smov (!%p709_p6, %s4114_s13), 15  ;;  %754 = sbr.rel (%p4122_p9) target bundleno = 121 (0x79), region = 126 }
  0x73   : > { %s6776_s0 = smov (!%p723_p7, %s4116_s0), 255  ;;  %s4115_s12 = sshll.u32 %s6774_s13, 2 }
  0x74   : > { %s712_s11 = scalar_lea.vmem %s6603_s24, %s4115_s12  ;;  %s4117_s2 = sshll.u32 %s6776_s0, 2 }
  0x75   : > { %s5302_s6 = scalar_lea.vmem %s6604_s18, %s4117_s2 }
  0x79 PF: > { %v4876_v4 = vld [vmem:[%s6482_s5] sm:$0xff]   ;;  %v4878_v7 = vld [vmem:[%s6482_s5 + $0x8] sm:$0xff]   ;;  %v6509_v8 = vmov 0   ;;  %v4879_v9 = vld [vmem:[%s6482_s5 + $0x10] sm:$0xff]   ;;  %vm910_vm1 = vcmask 523264   ;;  %vm1239_vm2 = vcmask 1043456  }
  0x7a   : > { %v1140_v5 = vld [vmem:[%s712_s11] sm:$0xff]  ;;  %4446 = vmatprep.subr.bf16.mxu0 %v4876_v4  ;;  %1281 = vmatprep.mubr.bf16.mxu1 %v6509_v8  ;;  %v4880_v11 = vld [vmem:[%s6482_s5 + $0x18] sm:$0xff]   ;;  %v4882_v12 = vld [vmem:[%s5302_s6 + $0x8] sm:$0xff]   ;;  %vm1190_vm3 = vcmask 64512   ;;  %vm1619_vm4 = vcmask 130048   ;;  %s6605_s2 = sld [smem:[#allocation89_spill]] }
  0x7b   : > { %v4159_v6 = vcombine.low %v1140_v5, %v1140_v5  ;;  %4447 = vmatpush3.bf16.msra.mxu0 %v4876_v4  ;;  %v4881_v10 = vld [vmem:[%s5302_s6] sm:$0xff]   ;;  %v4883_v13 = vld [vmem:[%s5302_s6 + $0x10] sm:$0xff]   ;;  %v4884_v15 = vld [vmem:[%s5302_s6 + $0x18] sm:$0xff]   ;;  %v4160_v23 = vcombine.high %v1140_v5, %v1140_v5  ;;  %s6606_s13 = sld [smem:[#allocation90_spill]]  ;;  %s4232_s16 = sshll.u32 %s5039_s25, 8  ;;  %vm2393_vm12 = vcmask 23552  }
  0x7c   : > { %4448 = vmatprep.subr.bf16.mxu0 %v4878_v7  ;;  %4454 = vmatprep.mubr.msk.bf16.mxu0 %vm910_vm1, %v4881_v10  ;;  %v1141_v14 = vld [vmem:[%s6487_s10] sm:$0xff]  ;;  %v4903_v19 = vld [vmem:[%s6487_s10 + $0x8] ss:$0 sps:$4 sm:$0xff]   ;;  %v4887_v25 = vld [vmem:[%s5302_s6 + $0x30] sm:$0xff]   ;;  %s2292_s12 = sld [smem:[#allocation7 + %s5043_s26]]  ;;  %vm2621_vm13 = vcmask 1040384  }
  0x7d   : > { %1150 = vxpose.xlu0.c.b16.start.end [1/1] (short) %v4159_v6, 128  ;;  %v4162_v16 = vcombine.high %v1141_v14, %v1141_v14  ;;  %v4161_v17 = vcombine.low %v1141_v14, %v1141_v14  ;;  %v4902_v18 = vld [vmem:[%s6485_s8 + $0x4] ss:$12 sps:$4 sm:$0xff]   ;;  %v1247_v22 = vsel %vm1239_vm2, %v4903_v19, 0  ;;  %v4886_v24 = vld [vmem:[%s5302_s6 + $0x28] sm:$0xff]   ;;  %v4888_v26 = vld [vmem:[%s5302_s6 + $0x38] sm:$0xff]   ;;  %s6670_s30 = sld [smem:[#allocation91_spill]] }
  0x7e   : > { %v4885_v20 = vld [vmem:[%s5302_s6 + $0x20] sm:$0xff]   ;;  %v4890_v28 = vld [vmem:[%s5302_s6 + $0x48] sm:$0xff]   ;;  %v4891_v29 = vld [vmem:[%s5302_s6 + $0x50] sm:$0xff]   ;;  %vm2622_vm14 = vcmask 1041408   ;;  %vm5065_vm15 = vmmov 0   ;;  %p4274_p10 = scmp.ne.s32.totalorder %s5039_s25, 1 }
  0x7f   : > { %4449 = vmatpush3.bf16.msra.mxu0 %v4878_v7  ;;  %4164 = vmatprep.subr.msk.bf16.mxu1 %vm1239_vm2, %v4162_v16  ;;  %v1241_v21 = vsel %vm1239_vm2, %v4161_v17, 0  ;;  %v4889_v27 = vld [vmem:[%s5302_s6 + $0x40] sm:$0xff]   ;;  %v4892_v30 = vld [vmem:[%s5302_s6 + $0x58] sm:$0xff]   ;;  %v4894_v32 = vld [vmem:[%s5302_s6 + $0x68] sm:$0xff]   ;;  %vm3349_vm0 = vcmask (!%p4274_p10), 1042432   ;;  %s6734_s23 = sld [smem:[#allocation92_spill]] (!%p4274_p10) }
  0x80   : > { %4450 = vmatprep.subr.bf16.mxu0 %v4879_v9  ;;  %1250 = vmatpush1.bf16.msra.mxu1 %v1241_v21  ;;  %v4893_v31 = vld [vmem:[%s5302_s6 + $0x60] sm:$0xff]   ;;  %v4896_v33 = vld [vmem:[%s5302_s6 + $0x70] sm:$0xff]   ;;  %v4897_v34 = vld [vmem:[%s5302_s6 + $0x78] sm:$0xff]   ;;  %s6737_s24 = sld [smem:[#allocation93_spill]] (!%p4274_p10)  ;;  %s6738_s28 = sld [smem:[#allocation95_spill]] (!%p4274_p10) }
  0x81   : > { %1668 = vmatprep.subr.bf16.mxu1 %v4902_v18  ;;  %v4904_v35 = vld [vmem:[%s6485_s8 + $0x8] ss:$12 sps:$4 sm:$0xff]   ;;  %v4900_v36 = vld [vmem:[%s6485_s8] ss:$12 sps:$4 sm:$0xff]  }
  0x82   : > { %s2294_s11 = ssub.s32 %s2292_s12, %s4232_s16 }
  0x83   : > { %4451 = vmatpush3.bf16.msra.mxu0 %v4879_v9 }
  0x84   : > { %4452 = vmatprep.subr.bf16.mxu0 %v4880_v11 }
  0x85   : > { %s6735_s6 = smov (!%p4274_p10), %s6734_s23 }
  0x87   : > { %4453 = vmatpush3.bf16.msra.mxu0 %v4880_v11 }
  0x88   : > { %4778 = vmatprep.subr.msk.bf16.mxu0 %vm1239_vm2, %v4903_v19 }
  0x8a   : > { %4455 = vmatmul.mubr.msk.bf16.vlgmr.msra.gmra.mrb[0].mxu0 %vm910_vm1, %v4882_v12 }
  0x8b   : > { %4458 = vmatprep.mubr.msk.bf16.mxu0 %vm910_vm1, %v4883_v13  ;;  %4487 = vmatpush3.bf16.msra.mxu0 %v1247_v22 }
  0x8c   : > { %4520 = vmatprep.subr.bf16.mxu0 %v4904_v35 }
  0x92   : > { %4459 = vmatmul.mubr.msk.bf16.gmra.mrb[4].mxu0 %vm910_vm1, %v4884_v15 }
  0x93   : > { %4462 = vmatprep.mubr.msk.bf16.mxu0 %vm910_vm1, %v4885_v20 }
  0x9a   : > { %1166 = vxpose.xlu0.c.b16.start.end [1/1] (short) %v4160_v23, 128  ;;  %4463 = vmatmul.mubr.msk.bf16.gmra.mrb[8].mxu0 %vm910_vm1, %v4886_v24 }
  0x9b   : > { %4466 = vmatprep.mubr.msk.bf16.mxu0 %vm910_vm1, %v4887_v25 }
  0xa2   : > { %4467 = vmatmul.mubr.msk.bf16.gmra.mrb[12].mxu0 %vm910_vm1, %v4888_v26 }
  0xa3   : > { %4470 = vmatprep.mubr.msk.bf16.mxu0 %vm910_vm1, %v4889_v27 }
  0xaa   : > { %4471 = vmatmul.mubr.msk.bf16.gmra.mrb[16].mxu0 %vm910_vm1, %v4890_v28 }
  0xab   : > { %4474 = vmatprep.mubr.msk.bf16.mxu0 %vm910_vm1, %v4891_v29 }
  0xb2   : > { %4475 = vmatmul.mubr.msk.bf16.gmra.mrb[20].mxu0 %vm910_vm1, %v4892_v30 }
  0xb3   : > { %4478 = vmatprep.mubr.msk.bf16.mxu0 %vm910_vm1, %v4893_v31 }
  0xba   : > { %4479 = vmatmul.mubr.msk.bf16.gmra.mrb[24].mxu0 %vm910_vm1, %v4894_v32 }
  0xbb   : > { %4482 = vmatprep.mubr.msk.bf16.mxu0 %vm910_vm1, %v4896_v33 }
  0xc2   : > { %4483 = vmatmul.mubr.msk.bf16.gmra.mrb[28].mxu0 %vm910_vm1, %v4897_v34  ;;  %vm3959_vm1 = vcmask (!%p4274_p10), 58368  }
  0xe3   : > { %v1158_v37 = vpop.trf.xlu0 }
  0xe4   : > { %4165 = vmatmul.mubr.msk.bf16.vlgmr.msra.gmra.mrb[0].mxu1 %vm1190_vm3, %v1158_v37  ;;  %4488 = vmatprep.mubr.msk.bf16.mxu0 %vm1190_vm3, %v1158_v37 }
  0xe5   : > { %1669 = vmatpush1.bf16.msra.mxu1 %v4900_v36  ;;  %1291 = vmatprep.mubr.bf16.mxu1 %v6509_v8 }
  0xe7   : > { %v1159_v38 = vpop.trf.xlu0 }
  0xe8   : > { %4489 = vmatmul.mubr.msk.bf16.vlgmr.msra.gmra.mrb[32].mxu0 %vm1190_vm3, %v1159_v38 }
  0xe9   : > { %4521 = vmatpush3.bf16.msra.mxu0 %v4904_v35 }
  0xeb   : > { %v1160_v39 = vpop.trf.xlu0 }
  0xec   : > { %4166 = vmatmul.mubr.msk.bf16.gmra.mrb[4].mxu1 %vm1190_vm3, %v1159_v38  ;;  %4492 = vmatprep.mubr.msk.bf16.mxu0 %vm1190_vm3, %v1160_v39  ;;  %v6511_v38 = vlaneseq }
  0xed   : > { %1301 = vmatprep.mubr.bf16.mxu1 %v6509_v8 }
  0xef   : > { %v1161_v40 = vpop.trf.xlu0 }
  0xf0   : > { %4493 = vmatmul.mubr.msk.bf16.gmra.mrb[36].mxu0 %vm1190_vm3, %v1161_v40 }
  0xf3   : > { %v1162_v41 = vpop.trf.xlu0 }
  0xf4   : > { %4167 = vmatmul.mubr.msk.bf16.gmra.mrb[8].mxu1 %vm1190_vm3, %v1160_v39  ;;  %4496 = vmatprep.mubr.msk.bf16.mxu0 %vm1190_vm3, %v1162_v41  ;;  %v2025_v39 = vshrl.u32 %v6511_v38, 7 }
  0xf5   : > { %1311 = vmatprep.mubr.bf16.mxu1 %v6509_v8 }
  0xf7   : > { %v1163_v42 = vpop.trf.xlu0 }
  0xf8   : > { %4497 = vmatmul.mubr.msk.bf16.gmra.mrb[40].mxu0 %vm1190_vm3, %v1163_v42 }
  0xfb   : > { %v1164_v43 = vpop.trf.xlu0 }
  0xfc   : > { %4168 = vmatmul.mubr.msk.bf16.gmra.mrb[12].mxu1 %vm1190_vm3, %v1161_v40  ;;  %4500 = vmatprep.mubr.msk.bf16.mxu0 %vm1190_vm3, %v1164_v43  ;;  %v5464_v40 = vsub.s32 2, %v2025_v39 }
  0xfd   : > { %1321 = vmatprep.mubr.bf16.mxu1 %v6509_v8 }
  0xff   : > { %v1165_v44 = vpop.trf.xlu0 }
 0x100   : > { %4501 = vmatmul.mubr.msk.bf16.gmra.mrb[44].mxu0 %vm1190_vm3, %v1165_v44 }
 0x103   : > { %v1174_v45 = vpop.trf.xlu0 }
 0x104   : > { %4169 = vmatmul.mubr.msk.bf16.gmra.mrb[16].mxu1 %vm1190_vm3, %v1162_v41  ;;  %4504 = vmatprep.mubr.msk.bf16.mxu0 %vm1190_vm3, %v1174_v45  ;;  %v2022_v41 = vld [vmem:[%s6605_s2] sm:$0x7]  ;;  %s6736_s2 = sld [smem:[#allocation94_spill]] (!%p4274_p10) }
 0x105   : > { %1331 = vmatprep.mubr.bf16.mxu1 %v6509_v8 }
 0x107   : > { %v1175_v46 = vpop.trf.xlu0 }
 0x108   : > { %4505 = vmatmul.mubr.msk.bf16.gmra.mrb[48].mxu0 %vm1190_vm3, %v1175_v46 }
 0x10b   : > { %v1176_v47 = vpop.trf.xlu0 }
 0x10c   : > { %4170 = vmatmul.mubr.msk.bf16.gmra.mrb[20].mxu1 %vm1190_vm3, %v1163_v42  ;;  %4508 = vmatprep.mubr.msk.bf16.mxu0 %vm1190_vm3, %v1176_v47  ;;  %v5469_v42 = vsub.s32 1, %v2025_v39 }
 0x10d   : > { %1341 = vmatprep.mubr.bf16.mxu1 %v6509_v8 }
 0x10f   : > { %v1177_v48 = vpop.trf.xlu0 }
 0x110   : > { %4509 = vmatmul.mubr.msk.bf16.gmra.mrb[52].mxu0 %vm1190_vm3, %v1177_v48 }
 0x113   : > { %v1178_v49 = vpop.trf.xlu0 }
 0x114   : > { %4171 = vmatmul.mubr.msk.bf16.gmra.mrb[24].mxu1 %vm1190_vm3, %v1164_v43  ;;  %4512 = vmatprep.mubr.msk.bf16.mxu0 %vm1190_vm3, %v1178_v49  ;;  %v5471_v43 = vsub.s32 0, %v2025_v39 }
 0x115   : > { %1351 = vmatprep.mubr.bf16.mxu1 %v6509_v8 }
 0x117   : > { %v1179_v50 = vpop.trf.xlu0 }
 0x118   : > { %4513 = vmatmul.mubr.msk.bf16.gmra.mrb[56].mxu0 %vm1190_vm3, %v1179_v50 }
 0x11b   : > { %v1180_v51 = vpop.trf.xlu0 }
 0x11c   : > { %4172 = vmatmul.mubr.msk.bf16.gmra.mrb[28].mxu1 %vm1190_vm3, %v1165_v44  ;;  %4516 = vmatprep.mubr.msk.bf16.mxu0 %vm1190_vm3, %v1180_v51  ;;  %v5474_v44 = vrot.slane %v2022_v41, %v5464_v40 }
 0x11d   : > { %1361 = vmatprep.mubr.bf16.mxu1 %v6509_v8 }
 0x11f   : > { %v1181_v52 = vpop.trf.xlu0 }
 0x120   : > { %4517 = vmatmul.mubr.msk.bf16.gmra.mrb[60].mxu0 %vm1190_vm3, %v1181_v52 }
 0x124   : > { %4173 = vmatmul.mubr.msk.bf16.gmra.mrb[32].mxu1 %vm1190_vm3, %v1174_v45  ;;  %v5062_v45 = vmov 1983009808  }
 0x125   : > { %1371 = vmatprep.mubr.bf16.mxu1 %v6509_v8 }
 0x12c   : > { %4174 = vmatmul.mubr.msk.bf16.gmra.mrb[36].mxu1 %vm1190_vm3, %v1175_v46  ;;  %v2187_v46 = vunpack.c.l.s4 %v5062_v45 }
 0x12d   : > { %1381 = vmatprep.mubr.bf16.mxu1 %v6509_v8 }
 0x134   : > { %4175 = vmatmul.mubr.msk.bf16.gmra.mrb[40].mxu1 %vm1190_vm3, %v1176_v47 }
 0x135   : > { %1391 = vmatprep.mubr.bf16.mxu1 %v6509_v8 }
 0x13c   : > { %4176 = vmatmul.mubr.msk.bf16.gmra.mrb[44].mxu1 %vm1190_vm3, %v1177_v48  ;;  %v5477_v48 = vrot.slane %v2022_v41, %v5469_v42 }
 0x13d   : > { %1401 = vmatprep.mubr.bf16.mxu1 %v6509_v8 }
 0x144   : > { %4177 = vmatmul.mubr.msk.bf16.gmra.mrb[48].mxu1 %vm1190_vm3, %v1178_v49  ;;  %v2188_v49 = vunpack.c.0.s8 %v2187_v46 }
 0x145   : > { %1411 = vmatprep.mubr.bf16.mxu1 %v6509_v8 }
 0x14c   : > { %4178 = vmatmul.mubr.msk.bf16.gmra.mrb[52].mxu1 %vm1190_vm3, %v1179_v50  ;;  %v5480_v50 = vrot.slane %v2022_v41, %v5471_v43 }
 0x14d   : > { %1421 = vmatprep.mubr.bf16.mxu1 %v6509_v8 }
 0x154   : > { %4179 = vmatmul.mubr.msk.bf16.gmra.mrb[56].mxu1 %vm1190_vm3, %v1180_v51 }
 0x155   : > { %1431 = vmatprep.mubr.bf16.mxu1 %v6509_v8 }
 0x15c   : > { %4180 = vmatmul.mubr.msk.bf16.gmra.mrb[60].mxu1 %vm1190_vm3, %v1181_v52 }
 0x15d   : > { %1700 = vmatprep.mubr.bf16.mxu1 %v6509_v8  ;;  %v4456_v53 = vpop.f32.mrb[0].mxu0 }
 0x15e   : > { %v993_v54 = vpop.f32.mrb[1].mxu0 }
 0x15f   : > { %v4457_v55 = vpop.f32.mrb[2].mxu0 }
 0x160   : > { %v1121_v56 = vpack.c.bf16 %v4457_v55, %v4456_v53  ;;  %v996_v57 = vpop.f32.mrb[3].mxu0 }
 0x161   : > { %v1120_v58 = vpack.c.bf16 %v996_v57, %v993_v54  ;;  %v5490_v57 = vsub.s32 %v2188_v49, %v2025_v39 }
 0x163   : > { %4522 = vmatprep.mubr.msk.bf16.mxu0 %vm1619_vm4, %v1120_v58 }
 0x164   : > { %4200 = vmatmul.mubr.msk.bf16.vlgmr.msra.gmra.mrb[0].mxu1 %vm1619_vm4, %v1120_v58  ;;  %4523 = vmatmul.mubr.msk.bf16.vlgmr.msra.gmra.mrb[32].mxu0 %vm1619_vm4, %v1121_v56 }
 0x165   : > { %1710 = vmatprep.mubr.bf16.mxu1 %v6509_v8  ;;  %v4460_v59 = vpop.f32.mrb[4].mxu0 }
 0x166   : > { %v1009_v60 = vpop.f32.mrb[5].mxu0 }
 0x167   : > { %v4461_v61 = vpop.f32.mrb[6].mxu0 }
 0x168   : > { %v1123_v62 = vpack.c.bf16 %v4461_v61, %v4460_v59  ;;  %v1012_v63 = vpop.f32.mrb[7].mxu0 }
 0x169   : > { %v1122_v0 = vpack.c.bf16 %v1012_v63, %v1009_v60 }
 0x16b   : > { %4526 = vmatprep.mubr.msk.bf16.mxu0 %vm1619_vm4, %v1122_v0 }
 0x16c   : > { %4201 = vmatmul.mubr.msk.bf16.gmra.mrb[4].mxu1 %vm1619_vm4, %v1121_v56  ;;  %4527 = vmatmul.mubr.msk.bf16.gmra.mrb[36].mxu0 %vm1619_vm4, %v1123_v62  ;;  %v5488_v56 = vld [vmem:[%s6606_s13] sm:$0x3f]  ;;  %s6739_s13 = sld [smem:[#allocation96_spill]] (!%p4274_p10) }
 0x16d   : > { %1720 = vmatprep.mubr.bf16.mxu1 %v6509_v8  ;;  %v4464_v1 = vpop.f32.mrb[8].mxu0 }
 0x16e   : > { %v1025_v2 = vpop.f32.mrb[9].mxu0 }
 0x16f   : > { %v4465_v3 = vpop.f32.mrb[10].mxu0 }
 0x170   : > { %v1125_v4 = vpack.c.bf16 %v4465_v3, %v4464_v1  ;;  %v1028_v5 = vpop.f32.mrb[11].mxu0 }
 0x171   : > { %v1124_v6 = vpack.c.bf16 %v1028_v5, %v1025_v2  ;;  %v5509_v2 = vrot.slane %v5488_v56, %v5490_v57 }
 0x172   : > { %s6740_s12 = smov (!%p4274_p10), %s6739_s13 }
 0x173   : > { %4530 = vmatprep.mubr.msk.bf16.mxu0 %vm1619_vm4, %v1124_v6 }
 0x174   : > { %4202 = vmatmul.mubr.msk.bf16.gmra.mrb[8].mxu1 %vm1619_vm4, %v1122_v0  ;;  %4531 = vmatmul.mubr.msk.bf16.gmra.mrb[40].mxu0 %vm1619_vm4, %v1125_v4 }
 0x175   : > { %1730 = vmatprep.mubr.bf16.mxu1 %v6509_v8  ;;  %v4468_v7 = vpop.f32.mrb[12].mxu0 }
 0x176   : > { %v1041_v9 = vpop.f32.mrb[13].mxu0 }
 0x177   : > { %v4469_v10 = vpop.f32.mrb[14].mxu0 }
 0x178   : > { %v1127_v11 = vpack.c.bf16 %v4469_v10, %v4468_v7  ;;  %v1044_v12 = vpop.f32.mrb[15].mxu0 }
 0x179   : > { %v1126_v13 = vpack.c.bf16 %v1044_v12, %v1041_v9 }
 0x17b   : > { %4534 = vmatprep.mubr.msk.bf16.mxu0 %vm1619_vm4, %v1126_v13 }
 0x17c   : > { %4203 = vmatmul.mubr.msk.bf16.gmra.mrb[12].mxu1 %vm1619_vm4, %v1123_v62  ;;  %4535 = vmatmul.mubr.msk.bf16.gmra.mrb[44].mxu0 %vm1619_vm4, %v1127_v11 }
 0x17d   : > { %1740 = vmatprep.mubr.bf16.mxu1 %v6509_v8  ;;  %v4472_v14 = vpop.f32.mrb[16].mxu0 }
 0x17e   : > { %v1057_v15 = vpop.f32.mrb[17].mxu0 }
 0x17f   : > { %v4473_v16 = vpop.f32.mrb[18].mxu0 }
 0x180   : > { %v1129_v17 = vpack.c.bf16 %v4473_v16, %v4472_v14  ;;  %v1060_v18 = vpop.f32.mrb[19].mxu0 }
 0x181   : > { %v1128_v19 = vpack.c.bf16 %v1060_v18, %v1057_v15 }
 0x183   : > { %4538 = vmatprep.mubr.msk.bf16.mxu0 %vm1619_vm4, %v1128_v19 }
 0x184   : > { %4204 = vmatmul.mubr.msk.bf16.gmra.mrb[16].mxu1 %vm1619_vm4, %v1124_v6  ;;  %4539 = vmatmul.mubr.msk.bf16.gmra.mrb[48].mxu0 %vm1619_vm4, %v1129_v17  ;;  %v2200_v6 = vcombine.high %v5509_v2, %v5509_v2 }
 0x185   : > { %1750 = vmatprep.mubr.bf16.mxu1 %v6509_v8  ;;  %v4476_v20 = vpop.f32.mrb[20].mxu0 }
 0x186   : > { %v1073_v21 = vpop.f32.mrb[21].mxu0 }
 0x187   : > { %v4477_v22 = vpop.f32.mrb[22].mxu0 }
 0x188   : > { %v1131_v23 = vpack.c.bf16 %v4477_v22, %v4476_v20  ;;  %v1076_v24 = vpop.f32.mrb[23].mxu0 }
 0x189   : > { %v1130_v25 = vpack.c.bf16 %v1076_v24, %v1073_v21 }
 0x18b   : > { %4542 = vmatprep.mubr.msk.bf16.mxu0 %vm1619_vm4, %v1130_v25 }
 0x18c   : > { %4205 = vmatmul.mubr.msk.bf16.gmra.mrb[20].mxu1 %vm1619_vm4, %v1125_v4  ;;  %4543 = vmatmul.mubr.msk.bf16.gmra.mrb[52].mxu0 %vm1619_vm4, %v1131_v23 }
 0x18d   : > { %1760 = vmatprep.mubr.bf16.mxu1 %v6509_v8  ;;  %v4480_v26 = vpop.f32.mrb[24].mxu0 }
 0x18e   : > { %v1089_v27 = vpop.f32.mrb[25].mxu0 }
 0x18f   : > { %v4481_v28 = vpop.f32.mrb[26].mxu0 }
 0x190   : > { %v1133_v29 = vpack.c.bf16 %v4481_v28, %v4480_v26  ;;  %v1092_v30 = vpop.f32.mrb[27].mxu0 }
 0x191   : > { %v1132_v31 = vpack.c.bf16 %v1092_v30, %v1089_v27 }
 0x193   : > { %4546 = vmatprep.mubr.msk.bf16.mxu0 %vm1619_vm4, %v1132_v31 }
 0x194   : > { %4206 = vmatmul.mubr.msk.bf16.gmra.mrb[24].mxu1 %vm1619_vm4, %v1126_v13  ;;  %4547 = vmatmul.mubr.msk.bf16.gmra.mrb[56].mxu0 %vm1619_vm4, %v1133_v29 }
 0x195   : > { %1770 = vmatprep.mubr.bf16.mxu1 %v6509_v8  ;;  %v4484_v32 = vpop.f32.mrb[28].mxu0 }
 0x196   : > { %v1105_v33 = vpop.f32.mrb[29].mxu0 }
 0x197   : > { %v4485_v34 = vpop.f32.mrb[30].mxu0 }
 0x198   : > { %v1135_v35 = vpack.c.bf16 %v4485_v34, %v4484_v32  ;;  %v1108_v36 = vpop.f32.mrb[31].mxu0 }
 0x199   : > { %v1134_v37 = vpack.c.bf16 %v1108_v36, %v1105_v33 }
 0x19b   : > { %4550 = vmatprep.mubr.msk.bf16.mxu0 %vm1619_vm4, %v1134_v37 }
 0x19c   : > { %4207 = vmatmul.mubr.msk.bf16.gmra.mrb[28].mxu1 %vm1619_vm4, %v1127_v11  ;;  %4551 = vmatmul.mubr.msk.bf16.gmra.mrb[60].mxu0 %vm1619_vm4, %v1135_v35 }
 0x19d   : > { %1780 = vmatprep.mubr.bf16.mxu1 %v6509_v8  ;;  %2457 = vmatprep.mubr.bf16.mxu0 %v6509_v8 }
 0x1a4   : > { %4208 = vmatmul.mubr.msk.bf16.gmra.mrb[32].mxu1 %vm1619_vm4, %v1128_v19 }
 0x1a5   : > { %1790 = vmatprep.mubr.bf16.mxu1 %v6509_v8 }
 0x1ac   : > { %4209 = vmatmul.mubr.msk.bf16.gmra.mrb[36].mxu1 %vm1619_vm4, %v1129_v17 }
 0x1ad   : > { %1800 = vmatprep.mubr.bf16.mxu1 %v6509_v8 }
 0x1b4   : > { %4210 = vmatmul.mubr.msk.bf16.gmra.mrb[40].mxu1 %vm1619_vm4, %v1130_v25 }
 0x1b5   : > { %1810 = vmatprep.mubr.bf16.mxu1 %v6509_v8 }
 0x1bc   : > { %4211 = vmatmul.mubr.msk.bf16.gmra.mrb[44].mxu1 %vm1619_vm4, %v1131_v23 }
 0x1bd   : > { %1820 = vmatprep.mubr.bf16.mxu1 %v6509_v8 }
 0x1c4   : > { %4212 = vmatmul.mubr.msk.bf16.gmra.mrb[48].mxu1 %vm1619_vm4, %v1132_v31 }
 0x1c5   : > { %1830 = vmatprep.mubr.bf16.mxu1 %v6509_v8 }
 0x1cc   : > { %4213 = vmatmul.mubr.msk.bf16.gmra.mrb[52].mxu1 %vm1619_vm4, %v1133_v29 }
 0x1cd   : > { %1840 = vmatprep.mubr.bf16.mxu1 %v6509_v8 }
 0x1d4   : > { %4214 = vmatmul.mubr.msk.bf16.gmra.mrb[56].mxu1 %vm1619_vm4, %v1134_v37 }
 0x1d5   : > { %1850 = vmatprep.mubr.bf16.mxu1 %v6509_v8 }
 0x1dc   : > { %4215 = vmatmul.mubr.msk.bf16.gmra.mrb[60].mxu1 %vm1619_vm4, %v1135_v35 }
 0x1dd   : > { %2236 = vmatprep.mubr.bf16.mxu1 %v2200_v6 }
 0x237   : > { %v1702_v47 = vpop.f32.mrb[0].mxu1  ;;  %v4524_v52 = vpop.f32.mrb[32].mxu0 }
 0x238   : > { %v1704_v51 = vpop.f32.mrb[1].mxu1  ;;  %v5483_v53 = vadd.f32 %v4524_v52, %v5474_v44  ;;  %v1895_v55 = vpop.f32.mrb[33].mxu0  ;;  %v5512_v3 = vadd.f32 %v5480_v50, %v1702_v47 }
 0x239   : > { %v1706_v54 = vpop.f32.mrb[2].mxu1  ;;  %v5496_v59 = vadd.f32 %v5474_v44, %v1895_v55  ;;  %v4525_v61 = vpop.f32.mrb[34].mxu0  ;;  %v5499_v62 = vadd.f32 %v5477_v48, %v1704_v51 }
 0x23a   : > { %v5493_v58 = vadd.f32 %v5480_v50, %v1706_v54  ;;  %v1708_v60 = vpop.f32.mrb[3].mxu1  ;;  %v5505_v0 = vadd.f32 %v4525_v61, %v5474_v44  ;;  %v1898_v1 = vpop.f32.mrb[35].mxu0 }
 0x23b   : > { %v5502_v63 = vadd.f32 %v5477_v48, %v1708_v60  ;;  %v5515_v4 = vadd.f32 %v5474_v44, %v1898_v1 }
 0x23c   : > { %v2136_v7 = vpack.c.bf16 %v5493_v58, %v5512_v3 }
 0x23d   : > { %v2137_v5 = vpack.c.bf16 %v5502_v63, %v5499_v62 }
 0x23f   : > { %v1712_v9 = vpop.f32.mrb[4].mxu1  ;;  %2204 = vmatprep.subr.bf16.mxu1 %v2137_v5  ;;  %v4528_v11 = vpop.f32.mrb[36].mxu0 }
 0x240   : > { %v1714_v10 = vpop.f32.mrb[5].mxu1  ;;  %2205 = vmatpush1.bf16.xpose.msra.mxu1 %v2136_v7  ;;  %v5524_v12 = vadd.f32 %v4528_v11, %v5474_v44  ;;  %v1911_v14 = vpop.f32.mrb[37].mxu0  ;;  %v5542_v23 = vadd.f32 %v5480_v50, %v1712_v9 }
 0x241   : > { %v1716_v13 = vpop.f32.mrb[6].mxu1  ;;  %v5530_v16 = vadd.f32 %v5474_v44, %v1911_v14  ;;  %v4529_v18 = vpop.f32.mrb[38].mxu0  ;;  %v5533_v19 = vadd.f32 %v5477_v48, %v1714_v10 }
 0x242   : > { %v5527_v15 = vadd.f32 %v5480_v50, %v1716_v13  ;;  %v1718_v17 = vpop.f32.mrb[7].mxu1  ;;  %v5539_v21 = vadd.f32 %v4529_v18, %v5474_v44  ;;  %v1914_v22 = vpop.f32.mrb[39].mxu0 }
 0x243   : > { %v5536_v20 = vadd.f32 %v5477_v48, %v1718_v17  ;;  %v5545_v24 = vadd.f32 %v5474_v44, %v1914_v22 }
 0x244   : > { %v2139_v26 = vpack.c.bf16 %v5527_v15, %v5542_v23 }
 0x245   : > { %v2140_v25 = vpack.c.bf16 %v5536_v20, %v5533_v19 }
 0x247   : > { %v1722_v27 = vpop.f32.mrb[8].mxu1  ;;  %2206 = vmatprep.subr.bf16.mxu1 %v2140_v25  ;;  %v4532_v29 = vpop.f32.mrb[40].mxu0 }
 0x248   : > { %v1724_v28 = vpop.f32.mrb[9].mxu1  ;;  %2207 = vmatpush1.bf16.xpose.msra.mxu1 %v2139_v26  ;;  %v5552_v30 = vadd.f32 %v4532_v29, %v5474_v44  ;;  %v1927_v32 = vpop.f32.mrb[41].mxu0  ;;  %v5570_v46 = vadd.f32 %v5480_v50, %v1722_v27 }
 0x249   : > { %v1726_v31 = vpop.f32.mrb[10].mxu1  ;;  %v5558_v34 = vadd.f32 %v5474_v44, %v1927_v32  ;;  %v4533_v36 = vpop.f32.mrb[42].mxu0  ;;  %v5561_v37 = vadd.f32 %v5477_v48, %v1724_v28 }
 0x24a   : > { %v5555_v33 = vadd.f32 %v5480_v50, %v1726_v31  ;;  %v1728_v35 = vpop.f32.mrb[11].mxu1  ;;  %v5567_v41 = vadd.f32 %v4533_v36, %v5474_v44  ;;  %v1930_v45 = vpop.f32.mrb[43].mxu0 }
 0x24b   : > { %6607 = vst [vmem:[#allocation22_spill] sm:$0xff] %v5561_v37  ;;  %v5564_v39 = vadd.f32 %v5477_v48, %v1728_v35  ;;  %v5573_v47 = vadd.f32 %v5474_v44, %v1930_v45 }
 0x24c   : > { %v2142_v51 = vpack.c.bf16 %v5555_v33, %v5570_v46 }
 0x24d   : > { %6608 = vst [vmem:[#allocation23_spill] sm:$0xff] %v5564_v39  ;;  %v2143_v49 = vpack.c.bf16 %v5564_v39, %v5561_v37 }
 0x24f   : > { %v1732_v52 = vpop.f32.mrb[12].mxu1  ;;  %2208 = vmatprep.subr.bf16.mxu1 %v2143_v49  ;;  %v4536_v55 = vpop.f32.mrb[44].mxu0 }
 0x250   : > { %v1734_v54 = vpop.f32.mrb[13].mxu1  ;;  %2209 = vmatpush1.bf16.xpose.msra.mxu1 %v2142_v51  ;;  %v5580_v60 = vadd.f32 %v4536_v55, %v5474_v44  ;;  %v1943_v1 = vpop.f32.mrb[45].mxu0  ;;  %v5598_v17 = vadd.f32 %v5480_v50, %v1732_v52 }
 0x251   : > { %v1736_v61 = vpop.f32.mrb[14].mxu1  ;;  %v5586_v6 = vadd.f32 %v5474_v44, %v1943_v1  ;;  %v4537_v9 = vpop.f32.mrb[46].mxu0  ;;  %v5589_v10 = vadd.f32 %v5477_v48, %v1734_v54 }
 0x252   : > { %v5583_v5 = vadd.f32 %v5480_v50, %v1736_v61  ;;  %v1738_v7 = vpop.f32.mrb[15].mxu1  ;;  %v5595_v13 = vadd.f32 %v4537_v9, %v5474_v44  ;;  %v1946_v14 = vpop.f32.mrb[47].mxu0  ;;  %6612 = vst [vmem:[#allocation27_spill] sm:$0xff] %v5598_v17 }
 0x253   : > { %6610 = vst [vmem:[#allocation25_spill] sm:$0xff] %v5589_v10  ;;  %v5592_v11 = vadd.f32 %v5477_v48, %v1738_v7  ;;  %v5601_v18 = vadd.f32 %v5474_v44, %v1946_v14 }
 0x254   : > { %6609 = vst [vmem:[#allocation24_spill] sm:$0xff] %v5583_v5  ;;  %v2145_v25 = vpack.c.bf16 %v5583_v5, %v5598_v17 }
 0x255   : > { %6611 = vst [vmem:[#allocation26_spill] sm:$0xff] %v5592_v11  ;;  %v2146_v22 = vpack.c.bf16 %v5592_v11, %v5589_v10 }
 0x257   : > { %v1742_v26 = vpop.f32.mrb[16].mxu1  ;;  %2210 = vmatprep.subr.bf16.mxu1 %v2146_v22  ;;  %v4540_v28 = vpop.f32.mrb[48].mxu0 }
 0x258   : > { %v1744_v27 = vpop.f32.mrb[17].mxu1  ;;  %2211 = vmatpush1.bf16.xpose.msra.mxu1 %v2145_v25  ;;  %v5608_v29 = vadd.f32 %v4540_v28, %v5474_v44  ;;  %v1959_v32 = vpop.f32.mrb[49].mxu0  ;;  %v5626_v61 = vadd.f32 %v5480_v50, %v1742_v26 }
 0x259   : > { %v1746_v31 = vpop.f32.mrb[18].mxu1  ;;  %v5614_v36 = vadd.f32 %v5474_v44, %v1959_v32  ;;  %v4541_v49 = vpop.f32.mrb[50].mxu0  ;;  %v5617_v51 = vadd.f32 %v5477_v48, %v1744_v27 }
 0x25a   : > { %v5611_v35 = vadd.f32 %v5480_v50, %v1746_v31  ;;  %v1748_v45 = vpop.f32.mrb[19].mxu1  ;;  %v5623_v54 = vadd.f32 %v4541_v49, %v5474_v44  ;;  %v1962_v55 = vpop.f32.mrb[51].mxu0  ;;  %6616 = vst [vmem:[#allocation31_spill] sm:$0xff] %v5626_v61 }
 0x25b   : > { %6614 = vst [vmem:[#allocation29_spill] sm:$0xff] %v5617_v51  ;;  %v5620_v52 = vadd.f32 %v5477_v48, %v1748_v45  ;;  %v5629_v1 = vadd.f32 %v5474_v44, %v1962_v55 }
 0x25c   : > { %6613 = vst [vmem:[#allocation28_spill] sm:$0xff] %v5611_v35  ;;  %v2148_v9 = vpack.c.bf16 %v5611_v35, %v5626_v61 }
 0x25d   : > { %6615 = vst [vmem:[#allocation30_spill] sm:$0xff] %v5620_v52  ;;  %v2149_v7 = vpack.c.bf16 %v5620_v52, %v5617_v51 }
 0x25f   : > { %v1752_v14 = vpop.f32.mrb[20].mxu1  ;;  %2212 = vmatprep.subr.bf16.mxu1 %v2149_v7  ;;  %v4544_v25 = vpop.f32.mrb[52].mxu0 }
 0x260   : > { %v1754_v22 = vpop.f32.mrb[21].mxu1  ;;  %2213 = vmatpush1.bf16.xpose.msra.mxu1 %v2148_v9  ;;  %v5636_v27 = vadd.f32 %v4544_v25, %v5474_v44  ;;  %v1975_v26 = vpop.f32.mrb[53].mxu0  ;;  %v5654_v8 = vadd.f32 %v5480_v50, %v1752_v14 }
 0x261   : > { %v1756_v28 = vpop.f32.mrb[22].mxu1  ;;  %v5642_v32 = vadd.f32 %v5474_v44, %v1975_v26  ;;  %v4545_v49 = vpop.f32.mrb[54].mxu0  ;;  %v5645_v55 = vadd.f32 %v5477_v48, %v1754_v22 }
 0x262   : > { %v5639_v31 = vadd.f32 %v5480_v50, %v1756_v28  ;;  %v1758_v45 = vpop.f32.mrb[23].mxu1  ;;  %v5651_v9 = vadd.f32 %v4545_v49, %v5474_v44  ;;  %v1978_v25 = vpop.f32.mrb[55].mxu0  ;;  %6620 = vst [vmem:[#allocation35_spill] sm:$0xff] %v5654_v8 }
 0x263   : > { %6618 = vst [vmem:[#allocation33_spill] sm:$0xff] %v5645_v55  ;;  %v5648_v7 = vadd.f32 %v5477_v48, %v1758_v45  ;;  %v5657_v28 = vadd.f32 %v5474_v44, %v1978_v25 }
 0x264   : > { %6617 = vst [vmem:[#allocation32_spill] sm:$0xff] %v5639_v31  ;;  %v2151_v22 = vpack.c.bf16 %v5639_v31, %v5654_v8 }
 0x265   : > { %6619 = vst [vmem:[#allocation34_spill] sm:$0xff] %v5648_v7  ;;  %v2152_v26 = vpack.c.bf16 %v5648_v7, %v5645_v55 }
 0x267   : > { %v1762_v38 = vpop.f32.mrb[24].mxu1  ;;  %2214 = vmatprep.subr.bf16.mxu1 %v2152_v26  ;;  %v4548_v52 = vpop.f32.mrb[56].mxu0 }
 0x268   : > { %v1764_v45 = vpop.f32.mrb[25].mxu1  ;;  %2215 = vmatpush1.bf16.xpose.msra.mxu1 %v2151_v22  ;;  %v5664_v49 = vadd.f32 %v4548_v52, %v5474_v44  ;;  %v1991_v14 = vpop.f32.mrb[57].mxu0  ;;  %v5682_v8 = vadd.f32 %v5480_v50, %v1762_v38 }
 0x269   : > { %v1766_v51 = vpop.f32.mrb[26].mxu1  ;;  %v5670_v25 = vadd.f32 %v5474_v44, %v1991_v14  ;;  %v4549_v55 = vpop.f32.mrb[58].mxu0  ;;  %v5673_v31 = vadd.f32 %v5477_v48, %v1764_v45 }
 0x26a   : > { %6621 = vst [vmem:[#allocation36_spill] sm:$0xff] %v5664_v49  ;;  %v5667_v35 = vadd.f32 %v5480_v50, %v1766_v51  ;;  %v1768_v7 = vpop.f32.mrb[27].mxu1  ;;  %v5679_v22 = vadd.f32 %v4549_v55, %v5474_v44  ;;  %v1994_v52 = vpop.f32.mrb[59].mxu0  ;;  %6627 = vst [vmem:[#allocation42_spill] sm:$0xff] %v5682_v8 }
 0x26b   : > { %6623 = vst [vmem:[#allocation38_spill] sm:$0xff] %v5670_v25  ;;  %6624 = vst [vmem:[#allocation39_spill] sm:$0xff] %v5673_v31  ;;  %v5676_v26 = vadd.f32 %v5477_v48, %v1768_v7  ;;  %v5685_v51 = vadd.f32 %v5474_v44, %v1994_v52 }
 0x26c   : > { %6622 = vst [vmem:[#allocation37_spill] sm:$0xff] %v5667_v35  ;;  %6626 = vst [vmem:[#allocation41_spill] sm:$0xff] %v5679_v22  ;;  %v2154_v45 = vpack.c.bf16 %v5667_v35, %v5682_v8 }
 0x26d   : > { %6625 = vst [vmem:[#allocation40_spill] sm:$0xff] %v5676_v26  ;;  %6628 = vst [vmem:[#allocation43_spill] sm:$0xff] %v5685_v51  ;;  %v2155_v14 = vpack.c.bf16 %v5676_v26, %v5673_v31 }
 0x26f   : > { %v1772_v61 = vpop.f32.mrb[28].mxu1  ;;  %2216 = vmatprep.subr.bf16.mxu1 %v2155_v14  ;;  %v4552_v11 = vpop.f32.mrb[60].mxu0 }
 0x270   : > { %v1774_v7 = vpop.f32.mrb[29].mxu1  ;;  %2217 = vmatpush1.bf16.xpose.msra.mxu1 %v2154_v45  ;;  %v5692_v55 = vadd.f32 %v4552_v11, %v5474_v44  ;;  %v2007_v38 = vpop.f32.mrb[61].mxu0  ;;  %v5710_v8 = vadd.f32 %v5480_v50, %v1772_v61 }
 0x271   : > { %v1776_v10 = vpop.f32.mrb[30].mxu1  ;;  %v5698_v52 = vadd.f32 %v5474_v44, %v2007_v38  ;;  %v4553_v31 = vpop.f32.mrb[62].mxu0  ;;  %v5701_v35 = vadd.f32 %v5477_v48, %v1774_v7 }
 0x272   : > { %6629 = vst [vmem:[#allocation44_spill] sm:$0xff] %v5692_v55  ;;  %v5695_v5 = vadd.f32 %v5480_v50, %v1776_v10  ;;  %v1778_v26 = vpop.f32.mrb[31].mxu1  ;;  %v5707_v45 = vadd.f32 %v4553_v31, %v5474_v44  ;;  %v2010_v11 = vpop.f32.mrb[63].mxu0  ;;  %6635 = vst [vmem:[#allocation50_spill] sm:$0xff] %v5710_v8 }
 0x273   : > { %6631 = vst [vmem:[#allocation46_spill] sm:$0xff] %v5698_v52  ;;  %6632 = vst [vmem:[#allocation47_spill] sm:$0xff] %v5701_v35  ;;  %v5704_v14 = vadd.f32 %v5477_v48, %v1778_v26  ;;  %v5713_v10 = vadd.f32 %v5474_v44, %v2010_v11 }
 0x274   : > { %6630 = vst [vmem:[#allocation45_spill] sm:$0xff] %v5695_v5  ;;  %6634 = vst [vmem:[#allocation49_spill] sm:$0xff] %v5707_v45  ;;  %v2157_v7 = vpack.c.bf16 %v5695_v5, %v5710_v8 }
 0x275   : > { %6633 = vst [vmem:[#allocation48_spill] sm:$0xff] %v5704_v14  ;;  %6636 = vst [vmem:[#allocation51_spill] sm:$0xff] %v5713_v10  ;;  %v2158_v38 = vpack.c.bf16 %v5704_v14, %v5701_v35 }
 0x277   : > { %v1782_v17 = vpop.f32.mrb[32].mxu1  ;;  %2218 = vmatprep.subr.bf16.mxu1 %v2158_v38 }
 0x278   : > { %v1784_v26 = vpop.f32.mrb[33].mxu1  ;;  %2219 = vmatpush1.bf16.xpose.msra.mxu1 %v2157_v7  ;;  %v5729_v11 = vadd.f32 %v5480_v50, %v1782_v17 }
 0x279   : > { %v1786_v39 = vpop.f32.mrb[34].mxu1  ;;  %v5723_v61 = vadd.f32 %v5477_v48, %v1784_v26 }
 0x27a   : > { %v5720_v31 = vadd.f32 %v5480_v50, %v1786_v39  ;;  %v1788_v37 = vpop.f32.mrb[35].mxu1  ;;  %6640 = vst [vmem:[#allocation55_spill] sm:$0xff] %v5729_v11 }
 0x27b   : > { %6638 = vst [vmem:[#allocation53_spill] sm:$0xff] %v5723_v61  ;;  %v5726_v44 = vadd.f32 %v5477_v48, %v1788_v37 }
 0x27c   : > { %6637 = vst [vmem:[#allocation52_spill] sm:$0xff] %v5720_v31  ;;  %v2160_v38 = vpack.c.bf16 %v5720_v31, %v5729_v11 }
 0x27d   : > { %6639 = vst [vmem:[#allocation54_spill] sm:$0xff] %v5726_v44  ;;  %v2161_v14 = vpack.c.bf16 %v5726_v44, %v5723_v61 }
 0x27f   : > { %v1792_v7 = vpop.f32.mrb[36].mxu1  ;;  %2220 = vmatprep.subr.bf16.mxu1 %v2161_v14 }
 0x280   : > { %v1794_v39 = vpop.f32.mrb[37].mxu1  ;;  %2221 = vmatpush1.bf16.xpose.msra.mxu1 %v2160_v38  ;;  %v5745_v44 = vadd.f32 %v5480_v50, %v1792_v7 }
 0x281   : > { %v1796_v35 = vpop.f32.mrb[38].mxu1  ;;  %v5739_v37 = vadd.f32 %v5477_v48, %v1794_v39 }
 0x282   : > { %v5736_v26 = vadd.f32 %v5480_v50, %v1796_v35  ;;  %v1798_v5 = vpop.f32.mrb[39].mxu1  ;;  %6644 = vst [vmem:[#allocation59_spill] sm:$0xff] %v5745_v44 }
 0x283   : > { %6642 = vst [vmem:[#allocation57_spill] sm:$0xff] %v5739_v37  ;;  %v5742_v17 = vadd.f32 %v5477_v48, %v1798_v5 }
 0x284   : > { %6641 = vst [vmem:[#allocation56_spill] sm:$0xff] %v5736_v26  ;;  %v2163_v14 = vpack.c.bf16 %v5736_v26, %v5745_v44 }
 0x285   : > { %6643 = vst [vmem:[#allocation58_spill] sm:$0xff] %v5742_v17  ;;  %v2164_v61 = vpack.c.bf16 %v5742_v17, %v5739_v37 }
 0x287   : > { %v1802_v38 = vpop.f32.mrb[40].mxu1  ;;  %2222 = vmatprep.subr.bf16.mxu1 %v2164_v61 }
 0x288   : > { %v1804_v35 = vpop.f32.mrb[41].mxu1  ;;  %2223 = vmatpush1.bf16.xpose.msra.mxu1 %v2163_v14  ;;  %v5761_v17 = vadd.f32 %v5480_v50, %v1802_v38 }
 0x289   : > { %v1806_v31 = vpop.f32.mrb[42].mxu1  ;;  %v5755_v5 = vadd.f32 %v5477_v48, %v1804_v35 }
 0x28a   : > { %v5752_v39 = vadd.f32 %v5480_v50, %v1806_v31  ;;  %v1808_v11 = vpop.f32.mrb[43].mxu1  ;;  %6648 = vst [vmem:[#allocation63_spill] sm:$0xff] %v5761_v17 }
 0x28b   : > { %6646 = vst [vmem:[#allocation61_spill] sm:$0xff] %v5755_v5  ;;  %v5758_v7 = vadd.f32 %v5477_v48, %v1808_v11 }
 0x28c   : > { %6645 = vst [vmem:[#allocation60_spill] sm:$0xff] %v5752_v39  ;;  %v2166_v61 = vpack.c.bf16 %v5752_v39, %v5761_v17 }
 0x28d   : > { %6647 = vst [vmem:[#allocation62_spill] sm:$0xff] %v5758_v7  ;;  %v2167_v37 = vpack.c.bf16 %v5758_v7, %v5755_v5 }
 0x28f   : > { %v1812_v14 = vpop.f32.mrb[44].mxu1  ;;  %2224 = vmatprep.subr.bf16.mxu1 %v2167_v37 }
 0x290   : > { %v1814_v31 = vpop.f32.mrb[45].mxu1  ;;  %2225 = vmatpush1.bf16.xpose.msra.mxu1 %v2166_v61  ;;  %v5777_v7 = vadd.f32 %v5480_v50, %v1812_v14 }
 0x291   : > { %v1816_v26 = vpop.f32.mrb[46].mxu1  ;;  %v5771_v11 = vadd.f32 %v5477_v48, %v1814_v31 }
 0x292   : > { %v5768_v35 = vadd.f32 %v5480_v50, %v1816_v26  ;;  %v1818_v44 = vpop.f32.mrb[47].mxu1  ;;  %6652 = vst [vmem:[#allocation67_spill] sm:$0xff] %v5777_v7 }
 0x293   : > { %6650 = vst [vmem:[#allocation65_spill] sm:$0xff] %v5771_v11  ;;  %v5774_v38 = vadd.f32 %v5477_v48, %v1818_v44 }
 0x294   : > { %6649 = vst [vmem:[#allocation64_spill] sm:$0xff] %v5768_v35  ;;  %v2169_v37 = vpack.c.bf16 %v5768_v35, %v5777_v7 }
 0x295   : > { %6651 = vst [vmem:[#allocation66_spill] sm:$0xff] %v5774_v38  ;;  %v2170_v5 = vpack.c.bf16 %v5774_v38, %v5771_v11 }
 0x297   : > { %v1822_v61 = vpop.f32.mrb[48].mxu1  ;;  %2226 = vmatprep.subr.bf16.mxu1 %v2170_v5 }
 0x298   : > { %v1824_v26 = vpop.f32.mrb[49].mxu1  ;;  %2227 = vmatpush1.bf16.xpose.msra.mxu1 %v2169_v37  ;;  %v5793_v38 = vadd.f32 %v5480_v50, %v1822_v61 }
 0x299   : > { %v1826_v39 = vpop.f32.mrb[50].mxu1  ;;  %v5787_v44 = vadd.f32 %v5477_v48, %v1824_v26 }
 0x29a   : > { %v5784_v31 = vadd.f32 %v5480_v50, %v1826_v39  ;;  %v1828_v17 = vpop.f32.mrb[51].mxu1  ;;  %6656 = vst [vmem:[#allocation71_spill] sm:$0xff] %v5793_v38 }
 0x29b   : > { %6654 = vst [vmem:[#allocation69_spill] sm:$0xff] %v5787_v44  ;;  %v5790_v14 = vadd.f32 %v5477_v48, %v1828_v17 }
 0x29c   : > { %6653 = vst [vmem:[#allocation68_spill] sm:$0xff] %v5784_v31  ;;  %v2172_v5 = vpack.c.bf16 %v5784_v31, %v5793_v38 }
 0x29d   : > { %6655 = vst [vmem:[#allocation70_spill] sm:$0xff] %v5790_v14  ;;  %v2173_v11 = vpack.c.bf16 %v5790_v14, %v5787_v44 }
 0x29f   : > { %v1832_v37 = vpop.f32.mrb[52].mxu1  ;;  %2228 = vmatprep.subr.bf16.mxu1 %v2173_v11 }
 0x2a0   : > { %v1834_v39 = vpop.f32.mrb[53].mxu1  ;;  %2229 = vmatpush1.bf16.xpose.msra.mxu1 %v2172_v5  ;;  %v5809_v14 = vadd.f32 %v5480_v50, %v1832_v37 }
 0x2a1   : > { %v1836_v35 = vpop.f32.mrb[54].mxu1  ;;  %v5803_v17 = vadd.f32 %v5477_v48, %v1834_v39 }
 0x2a2   : > { %v5800_v26 = vadd.f32 %v5480_v50, %v1836_v35  ;;  %v1838_v7 = vpop.f32.mrb[55].mxu1  ;;  %6660 = vst [vmem:[#allocation75_spill] sm:$0xff] %v5809_v14 }
 0x2a3   : > { %6658 = vst [vmem:[#allocation73_spill] sm:$0xff] %v5803_v17  ;;  %v5806_v61 = vadd.f32 %v5477_v48, %v1838_v7 }
 0x2a4   : > { %6657 = vst [vmem:[#allocation72_spill] sm:$0xff] %v5800_v26  ;;  %v2175_v11 = vpack.c.bf16 %v5800_v26, %v5809_v14 }
 0x2a5   : > { %6659 = vst [vmem:[#allocation74_spill] sm:$0xff] %v5806_v61  ;;  %v2176_v44 = vpack.c.bf16 %v5806_v61, %v5803_v17 }
 0x2a7   : > { %v1842_v5 = vpop.f32.mrb[56].mxu1  ;;  %2230 = vmatprep.subr.bf16.mxu1 %v2176_v44 }
 0x2a8   : > { %v1844_v35 = vpop.f32.mrb[57].mxu1  ;;  %2231 = vmatpush1.bf16.xpose.msra.mxu1 %v2175_v11  ;;  %v5825_v61 = vadd.f32 %v5480_v50, %v1842_v5 }
 0x2a9   : > { %v1846_v31 = vpop.f32.mrb[58].mxu1  ;;  %v5819_v7 = vadd.f32 %v5477_v48, %v1844_v35 }
 0x2aa   : > { %v5816_v39 = vadd.f32 %v5480_v50, %v1846_v31  ;;  %v1848_v38 = vpop.f32.mrb[59].mxu1  ;;  %6664 = vst [vmem:[#allocation79_spill] sm:$0xff] %v5825_v61 }
 0x2ab   : > { %6662 = vst [vmem:[#allocation77_spill] sm:$0xff] %v5819_v7  ;;  %v5822_v37 = vadd.f32 %v5477_v48, %v1848_v38 }
 0x2ac   : > { %6661 = vst [vmem:[#allocation76_spill] sm:$0xff] %v5816_v39  ;;  %v2178_v44 = vpack.c.bf16 %v5816_v39, %v5825_v61 }
 0x2ad   : > { %6663 = vst [vmem:[#allocation78_spill] sm:$0xff] %v5822_v37  ;;  %v2179_v17 = vpack.c.bf16 %v5822_v37, %v5819_v7 }
 0x2af   : > { %v1852_v11 = vpop.f32.mrb[60].mxu1  ;;  %2232 = vmatprep.subr.bf16.mxu1 %v2179_v17 }
 0x2b0   : > { %v1854_v31 = vpop.f32.mrb[61].mxu1  ;;  %2233 = vmatpush1.bf16.xpose.msra.mxu1 %v2178_v44  ;;  %v5841_v37 = vadd.f32 %v5480_v50, %v1852_v11  ;;  %v2185_v44 = vcombine.high %v5488_v56, %v5488_v56  ;;  %v2168_v56 = vpack.c.bf16 %v5657_v28, %v5642_v32  ;;  %v2144_v11 = vpack.c.bf16 %v5545_v24, %v5530_v16 }
 0x2b1   : > { %v1856_v26 = vpop.f32.mrb[62].mxu1  ;;  %v5835_v38 = vadd.f32 %v5477_v48, %v1854_v31  ;;  %v2171_v31 = vpack.c.bf16 %v5651_v9, %v5636_v27 }
 0x2b2   : > { %v5832_v35 = vadd.f32 %v5480_v50, %v1856_v26  ;;  %v1858_v14 = vpop.f32.mrb[63].mxu1  ;;  %6668 = vst [vmem:[#allocation83_spill] sm:$0xff] %v5841_v37  ;;  %v2162_v26 = vpack.c.bf16 %v5629_v1, %v5614_v36  ;;  %v2138_v50 = vpack.c.bf16 %v5515_v4, %v5496_v59 }
 0x2b3   : > { %6666 = vst [vmem:[#allocation81_spill] sm:$0xff] %v5835_v38  ;;  %v5838_v5 = vadd.f32 %v5477_v48, %v1858_v14  ;;  %v2199_v48 = vrot.slane %v2185_v44, %v5490_v57  ;;  %v2165_v14 = vpack.c.bf16 %v5623_v54, %v5608_v29  ;;  %v2177_v44 = vpack.c.bf16 %v5679_v22, %v5664_v49 }
 0x2b4   : > { %6665 = vst [vmem:[#allocation80_spill] sm:$0xff] %v5832_v35  ;;  %v2181_v17 = vpack.c.bf16 %v5832_v35, %v5841_v37 }
 0x2b5   : > { %6667 = vst [vmem:[#allocation82_spill] sm:$0xff] %v5838_v5  ;;  %v2182_v7 = vpack.c.bf16 %v5838_v5, %v5835_v38 }
 0x2b7   : > { %2234 = vmatprep.subr.bf16.mxu1 %v2182_v7  ;;  %v2141_v7 = vpack.c.bf16 %v5505_v0, %v5483_v53 }
 0x2b8   : > { %2235 = vmatpush1.bf16.xpose.msra.mxu1 %v2181_v17  ;;  %v2174_v17 = vpack.c.bf16 %v5685_v51, %v5670_v25 }
 0x2b9   : > { %4345 = vmatprep.subr.bf16.mxu1 %v2162_v26  ;;  %v2150_v26 = vpack.c.bf16 %v5573_v47, %v5558_v34 }
 0x2bf   : > { %2237 = vmatmul.mubr.bf16.vlgmr.msra.gmra.mrb[64].mxu1 %v5509_v2  ;;  %v2147_v2 = vpack.c.bf16 %v5539_v21, %v5524_v12 }
 0x2c0   : > { %4346 = vmatpush3.bf16.xpose.msra.mxu1 %v2138_v50  ;;  %4361 = vmatprep.mubr.bf16.mxu1 %v2199_v48  ;;  %v2153_v50 = vpack.c.bf16 %v5567_v41, %v5552_v30 }
 0x2c1   : > { %4347 = vmatprep.subr.bf16.mxu1 %v2165_v14  ;;  %v2180_v14 = vpack.c.bf16 %v5713_v10, %v5698_v52 }
 0x2c8   : > { %4348 = vmatpush3.bf16.xpose.msra.mxu1 %v2141_v7  ;;  %v2156_v7 = vpack.c.bf16 %v5601_v18, %v5586_v6 }
 0x2c9   : > { %4349 = vmatprep.subr.bf16.mxu1 %v2168_v56  ;;  %v2183_v56 = vpack.c.bf16 %v5707_v45, %v5692_v55 }
 0x2d0   : > { %4350 = vmatpush3.bf16.xpose.msra.mxu1 %v2144_v11  ;;  %v2159_v11 = vpack.c.bf16 %v5595_v13, %v5580_v60 }
 0x2d1   : > { %4351 = vmatprep.subr.bf16.mxu1 %v2171_v31  ;;  %v5887_v31 = vld [vmem:[%s629_s19] sm:$0xff] }
 0x2d8   : > { %4352 = vmatpush3.bf16.xpose.msra.mxu1 %v2147_v2  ;;  %v6669_v2 = vlaneseq }
 0x2d9   : > { %4353 = vmatprep.subr.bf16.mxu1 %v2174_v17 }
 0x2da   : > { %v5890_v17 = vand.u32 127, %v6669_v2 }
 0x2dc   : > { %vm2335_vm9 = vcmp.eq.s32.totalorder %v5890_v17, 0  ;;  %vm2356_vm10 = vcmp.eq.s32.totalorder %v5890_v17, 1  ;;  %vm2377_vm11 = vcmp.eq.s32.totalorder %v5890_v17, 2 }
 0x2e0   : > { %4354 = vmatpush3.bf16.xpose.msra.mxu1 %v2150_v26  ;;  %v2304_v26 = vld [vmem:[%s629_s19 + $0x8] sm:$0xff] }
 0x2e1   : > { %4355 = vmatprep.subr.bf16.mxu1 %v2177_v44  ;;  %v2305_v44 = vunpack.c.l.bf16 %v5887_v31 }
 0x2e8   : > { %4356 = vmatpush3.bf16.xpose.msra.mxu1 %v2153_v50  ;;  %v2306_v50 = vunpack.c.h.bf16 %v5887_v31 }
 0x2e9   : > { %4357 = vmatprep.subr.bf16.mxu1 %v2180_v14  ;;  %v2307_v14 = vunpack.c.l.bf16 %v2304_v26 }
 0x2ea   : > { %v4234_v38 = vadd.f32 -1.0, %v2306_v50 }
 0x2eb   : > { %v4235_v37 = vadd.f32 -1.0, %v2307_v14 }
 0x2ed   : > { %v2315_v22 = vmul.f32 1.2676506e+30, %v4235_v37 }
 0x2f0   : > { %4358 = vmatpush3.bf16.xpose.msra.mxu1 %v2156_v7  ;;  %v2298_v7 = vstv %s2294_s11 }
 0x2f1   : > { %4359 = vmatprep.subr.bf16.mxu1 %v2183_v56  ;;  %v2297_v56 = vadd.s32 128, %v5890_v17  ;;  %vm2299_vm6 = vcmp.lt.s32.totalorder %v5890_v17, %v2298_v7 }
 0x2f3   : > { %vm2300_vm8 = vcmp.lt.s32.totalorder %v2297_v56, %v2298_v7 }
 0x2f8   : > { %4360 = vmatpush3.bf16.xpose.msra.mxu1 %v2159_v11  ;;  %v4233_v11 = vadd.f32 -1.0, %v2305_v44  ;;  %v2314_v44 = vmul.f32 1.2676506e+30, %v4234_v38 }
 0x2fa   : > { %v2313_v55 = vmul.f32 1.2676506e+30, %v4233_v11 }
 0x2ff   : > { %4362 = vmatmul.mubr.bf16.vlgmr.msra.gmra.mrb[64].mxu1 %v2199_v48  ;;  %v2308_v48 = vunpack.c.h.bf16 %v2304_v26 }
 0x301   : > { %v4236_v10 = vadd.f32 -1.0, %v2308_v48 }
 0x303   : > { %v2316_v49 = vmul.f32 1.2676506e+30, %v4236_v10 }
 0x3d2   : > { %v2279_v5 = vpop.f32.mrb[64].mxu1 }
 0x3d3   : > { %vm2286_vm5 = vcmp.gt.f32.partialorder %v2279_v5, 0.0  ;;  %v2288_v35 = vmul.f32 0.2, %v2279_v5  ;;  %v2281_v2 = vpop.f32.mrb[65].mxu1 }
 0x3d4   : > { %vm2287_vm7 = vcmp.gt.f32.partialorder %v2281_v2, 0.0  ;;  %v2289_v39 = vmul.f32 0.2, %v2281_v2  ;;  %v2283_v61 = vpop.f32.mrb[66].mxu1 }
 0x3d5   : > { %v2290_v52 = vsel %vm2286_vm5, %v2279_v5, %v2288_v35  ;;  %v2284_v45 = vpop.f32.mrb[67].mxu1 }
 0x3d6   : > { %v5898_v8 = vsel %vm2299_vm6, %v2290_v52, -1.2676506e+30  ;;  %v2291_v51 = vsel %vm2287_vm7, %v2281_v2, %v2289_v39 }
 0x3d7   : > { %v5900_v25 = vsel %vm2300_vm8, %v2291_v51, -1.2676506e+30  ;;  %v2320_v50 = vrot.slane %v5898_v8, %v5471_v43  ;;  %v2341_v45 = vrot.slane %v5898_v8, %v5469_v42  ;;  %v2362_v37 = vrot.slane %v5898_v8, %v5464_v40 }
 0x3d8   : > { %v2324_v14 = vrot.slane %v5900_v25, %v5471_v43  ;;  %v2345_v51 = vrot.slane %v5900_v25, %v5469_v42  ;;  %v2366_v2 = vrot.slane %v5900_v25, %v5464_v40 }
 0x3d9   : > { %v2325_v7 = vadd.f32 %v2320_v50, %v2313_v55  ;;  %v2327_v52 = vadd.f32 %v2320_v50, %v2315_v22  ;;  %v2346_v38 = vadd.f32 %v2341_v45, %v2313_v55  ;;  %v2348_v48 = vadd.f32 %v2341_v45, %v2315_v22 }
 0x3da   : > { %v2326_v61 = vadd.f32 %v2324_v14, %v2314_v44  ;;  %v2328_v5 = vadd.f32 %v2324_v14, %v2316_v49  ;;  %v2347_v56 = vadd.f32 %v2345_v51, %v2314_v44  ;;  %v2349_v11 = vadd.f32 %v2345_v51, %v2316_v49 }
 0x3db   : > { %v2367_v14 = vadd.f32 %v2362_v37, %v2313_v55  ;;  %v5918_v45 = vcombine.low %v5887_v31, %v2304_v26 }
 0x3dc   : > { %v2329_v35 = vmax.f32 %v2325_v7, %v2326_v61  ;;  %v2332_v39 = vmax.f32 %v2327_v52, %v2328_v5  ;;  %v2350_v10 = vmax.f32 %v2346_v38, %v2347_v56  ;;  %v2353_v50 = vmax.f32 %v2348_v48, %v2349_v11 }
 0x3dd   : > { %v2368_v7 = vadd.f32 %v2366_v2, %v2314_v44  ;;  %v2370_v52 = vadd.f32 %v2366_v2, %v2316_v49 }
 0x3de   : > { %2330 = vmax.xlane.f32.xlu1 %v2329_v35  ;;  %v2369_v35 = vadd.f32 %v2362_v37, %v2315_v22  ;;  %v2381_v37 = vld [vmem:[#allocation2 + $0x8] sm:$0xff] }
 0x3df   : > { %v2371_v61 = vmax.f32 %v2367_v14, %v2368_v7 }
 0x3e0   : > { %v2374_v5 = vmax.f32 %v2369_v35, %v2370_v52 }
 0x3e2   : > { %2333 = vmax.xlane.f32.xlu1 %v2332_v39  ;;  %v5915_v39 = vcombine.high %v5887_v31, %v2304_v26  ;;  %v2380_v31 = vld [vmem:[#allocation2] sm:$0xff] }
 0x3e4   : > { %2425 = vmatprep.subr.bf16.mxu0 %v5915_v39 }
 0x3e5   : > { %2426 = vmatpush1.bf16.msra.mxu0 %v5918_v45 }
 0x3e6   : > { %2351 = vmax.xlane.f32.xlu1 %v2350_v10 }
 0x3ea   : > { %2354 = vmax.xlane.f32.xlu1 %v2353_v50 }
 0x3ee   : > { %2372 = vmax.xlane.f32.xlu1 %v2371_v61 }
 0x3f2   : > { %2375 = vmax.xlane.f32.xlu1 %v2374_v5 }
 0x46b   : > { %v2331_v40 = vpop.xlane.xlu1 %2330 }
 0x46c   : > { %v2336_v22 = vsel %vm2335_vm9, %v2331_v40, -1.2676506e+30 }
 0x46f   : > { %v2334_v55 = vpop.xlane.xlu1 %2333 }
 0x470   : > { %v2337_v56 = vsel %vm2335_vm9, %v2334_v55, -1.2676506e+30 }
 0x473   : > { %v2352_v44 = vpop.xlane.xlu1 %2351 }
 0x474   : > { %v2357_v38 = vsel %vm2356_vm10, %v2352_v44, %v2336_v22  ;;  %v5063_v22 = vmov 65535  }
 0x477   : > { %v2355_v51 = vpop.xlane.xlu1 %2354 }
 0x478   : > { %v2358_v10 = vsel %vm2356_vm10, %v2355_v51, %v2337_v56 }
 0x47b   : > { %v2373_v49 = vpop.xlane.xlu1 %2372 }
 0x47c   : > { %v2378_v26 = vsel %vm2377_vm11, %v2373_v49, %v2357_v38  ;;  %v5940_v49 = vld [vmem:[%s6670_s30] sm:$0x3f]  ;;  %v2623_v38 = vsel %vm2621_vm13, 4294967295, %v5063_v22 }
 0x47d   : > { %v2382_v2 = vmax.f32 %v2380_v31, %v2378_v26  ;;  %v2557_v56 = vcombine.high %v5940_v49, %v5940_v49  ;;  %v2624_v26 = vsel %vm2622_vm14, %v2623_v38, 0 }
 0x47f   : > { %v2376_v48 = vpop.xlane.xlu1 %2375 }
 0x480   : > { %v2379_v11 = vsel %vm2377_vm11, %v2376_v48, %v2358_v10 }
 0x481   : > { %v2383_v50 = vmax.f32 %v2381_v37, %v2379_v11 }
 0x483   : > { %v2384_v14 = vpack.c.bf16 %v2383_v50, %v2382_v2 }
 0x485   : > { %2396 = vxpose.xlu1.c.b16.start.end [1/1] (short) (narrow) %v2384_v14, 16  ;;  %v2385_v7 = vunpack.c.l.bf16 %v2384_v14  ;;  %v2386_v61 = vunpack.c.h.bf16 %v2384_v14 }
 0x487   : > { %v2387_v35 = vsub.f32 %v2380_v31, %v2385_v7  ;;  %v2388_v52 = vsub.f32 %v2381_v37, %v2386_v61  ;;  %2394 = vst.msk [vmem:[#allocation2] sm:$0xff] %vm2393_vm12, %v2385_v7  ;;  %2395 = vst.msk [vmem:[#allocation2 + $0x8] sm:$0xff] %vm2393_vm12, %v2386_v61  ;;  %v2571_v31 = vrot.slane %v2557_v56, %v5490_v57 }
 0x489   : > { %v2389_v17 = vmul.f32 1.442695, %v2387_v35  ;;  %v2391_v5 = vmul.f32 1.442695, %v2388_v52  ;;  %v5945_v37 = vand.u32 %v2624_v26, %v2571_v31  ;;  %v2564_v35 = vrot.slane %v5940_v49, %v5490_v57 }
 0x48a   : > { %v5064_v57 = vmov 0.0  }
 0x48b   : > { %4907 = vpow2.f32 %v2389_v17  ;;  %4554 = vmatprep.subr.bf16.mxu1 %v5945_v37  ;;  %v2572_v52 = vcombine.high %v2564_v35, %v2564_v35 }
 0x48c   : > { %4909 = vpow2.f32 %v2391_v5  ;;  %4555 = vmatpush3.bf16.msra.mxu1 %v5945_v37 }
 0x48d   : > { %v2629_v38 = vand.u32 %v2624_v26, %v2572_v52 }
 0x495   : > { %v5927_v40 = vpop.eup %4907 }
 0x496   : > { %v5929_v55 = vpop.eup %4909 }
 0x497   : > { %v5933_v44 = vpack.c.bf16 %v5929_v55, %v5927_v40 }
 0x4eb   : > { %v2404_v51 = vpop.trf.xlu1 }
 0x4ec   : > { %4239 = vmatmul.mubr.msk.bf16.vlgmr.msra.gmra.mrb[64].mxu0 %vm1619_vm4, %v2404_v51 }
 0x4ed   : > { %2510 = vmatprep.mubr.bf16.mxu0 %v5915_v39 }
 0x5bf   : > { %v2459_v10 = vpop.f32.mrb[64].mxu0 }
 0x5c0   : > { %v2466_v48 = vsub.f32 %v5898_v8, %v2459_v10  ;;  %v2461_v11 = vpop.f32.mrb[65].mxu0  ;;  %v2626_v8 = vand.u32 %v2624_v26, %v2564_v35 }
 0x5c1   : > { %v2467_v2 = vsub.f32 %v5900_v25, %v2461_v11  ;;  %v2463_v50 = vpop.f32.mrb[66].mxu0  ;;  %v6671_v25 = vmov 0  }
 0x5c2   : > { %v2468_v14 = vmul.f32 1.442695, %v2466_v48  ;;  %v2464_v7 = vpop.f32.mrb[67].mxu0 }
 0x5c3   : > { %v2470_v61 = vmul.f32 1.442695, %v2467_v2 }
 0x5c4   : > { %4911 = vpow2.f32 %v2468_v14 }
 0x5c5   : > { %4913 = vpow2.f32 %v2470_v61 }
 0x5ce   : > { %v4912_v17 = vpop.eup %4911 }
 0x5cf   : > { %v4914_v5 = vpop.eup %4913  ;;  %v2472_v51 = vpack.c.bf16 %v4912_v17, %v4912_v17 }
 0x5d0   : > { %v2473_v22 = vpack.c.bf16 %v4914_v5, %v4914_v5 }
 0x5d1   : > { %2524 = vxpose.xlu0.c.b16.start.end [1/1] (short) %v2472_v51, 128 }
 0x5d2   : > { %2478 = vmatprep.subr.bf16.mxu0 %v2473_v22 }
 0x5d3   : > { %2479 = vmatpush1.bf16.xpose.msra.mxu0 %v2472_v51 }
 0x5d4   : > { %2634 = vmatprep.subr.bf16.mxu0 %v2629_v38 }
 0x5da   : > { %2511 = vmatmul.mubr.bf16.vlgmr.msra.gmra.mrb[68].mxu0 %v5918_v45 }
 0x5db   : > { %2635 = vmatpush1.bf16.msra.mxu0 %v2626_v8  ;;  %2666 = vmatprep.mubr.bf16.mxu0 %v6671_v25 }
 0x5dc   : > { %3136 = vmatprep.subr.bf16.mxu0 %v2629_v38  ;;  %v2475_v38 = vld [vmem:[#allocation3 + $0x8] sm:$0xff] }
 0x5ee   : > { %2540 = vxpose.xlu0.c.b16.start.end [1/1] (short) %v2473_v22, 128  ;;  %v2474_v22 = vld [vmem:[#allocation3] sm:$0xff] }
 0x637   : > { %v2532_v56 = vpop.trf.xlu0 }
 0x638   : > { %4240 = vmatmul.mubr.msk.bf16.vlgmr.msra.gmra.mrb[72].mxu0 %vm2393_vm12, %v2532_v56  ;;  %4556 = vmatprep.mubr.msk.bf16.mxu1 %vm2393_vm12, %v2532_v56 }
 0x639   : > { %2676 = vmatprep.mubr.bf16.mxu0 %v6671_v25  ;;  %3137 = vmatpush1.bf16.msra.mxu0 %v2626_v8  ;;  %v2476_v8 = vmul.f32 %v5927_v40, %v2474_v22 }
 0x63a   : > { %4588 = vmatprep.subr.bf16.mxu0 %v5064_v57 }
 0x63b   : > { %v2533_v31 = vpop.trf.xlu0 }
 0x63c   : > { %4557 = vmatmul.mubr.msk.bf16.vlgmr.msra.gmra.mrb[68].mxu1 %vm2393_vm12, %v2533_v31 }
 0x63f   : > { %v2534_v26 = vpop.trf.xlu0 }
 0x640   : > { %4241 = vmatmul.mubr.msk.bf16.gmra.mrb[76].mxu0 %vm2393_vm12, %v2533_v31  ;;  %4560 = vmatprep.mubr.msk.bf16.mxu1 %vm2393_vm12, %v2534_v26 }
 0x641   : > { %2686 = vmatprep.mubr.bf16.mxu0 %v6671_v25 }
 0x643   : > { %v2535_v10 = vpop.trf.xlu0 }
 0x644   : > { %4561 = vmatmul.mubr.msk.bf16.gmra.mrb[72].mxu1 %vm2393_vm12, %v2535_v10 }
 0x647   : > { %v2536_v48 = vpop.trf.xlu0 }
 0x648   : > { %4242 = vmatmul.mubr.msk.bf16.gmra.mrb[80].mxu0 %vm2393_vm12, %v2534_v26  ;;  %4564 = vmatprep.mubr.msk.bf16.mxu1 %vm2393_vm12, %v2536_v48 }
 0x649   : > { %2696 = vmatprep.mubr.bf16.mxu0 %v6671_v25 }
 0x64b   : > { %v2537_v11 = vpop.trf.xlu0 }
 0x64c   : > { %4565 = vmatmul.mubr.msk.bf16.gmra.mrb[76].mxu1 %vm2393_vm12, %v2537_v11 }
 0x64f   : > { %v2538_v2 = vpop.trf.xlu0 }
 0x650   : > { %4243 = vmatmul.mubr.msk.bf16.gmra.mrb[84].mxu0 %vm2393_vm12, %v2535_v10  ;;  %4568 = vmatprep.mubr.msk.bf16.mxu1 %vm2393_vm12, %v2538_v2  ;;  %v2477_v10 = vmul.f32 %v5929_v55, %v2475_v38 }
 0x651   : > { %2706 = vmatprep.mubr.bf16.mxu0 %v6671_v25 }
 0x653   : > { %v2539_v50 = vpop.trf.xlu0 }
 0x654   : > { %4569 = vmatmul.mubr.msk.bf16.gmra.mrb[80].mxu1 %vm2393_vm12, %v2539_v50 }
 0x657   : > { %v2548_v14 = vpop.trf.xlu0 }
 0x658   : > { %4244 = vmatmul.mubr.msk.bf16.gmra.mrb[88].mxu0 %vm2393_vm12, %v2536_v48  ;;  %4572 = vmatprep.mubr.msk.bf16.mxu1 %vm2393_vm12, %v2548_v14 }
 0x659   : > { %2716 = vmatprep.mubr.bf16.mxu0 %v6671_v25 }
 0x65b   : > { %v2549_v7 = vpop.trf.xlu0 }
 0x65c   : > { %4573 = vmatmul.mubr.msk.bf16.gmra.mrb[84].mxu1 %vm2393_vm12, %v2549_v7 }
 0x65f   : > { %v2550_v61 = vpop.trf.xlu0 }
 0x660   : > { %4245 = vmatmul.mubr.msk.bf16.gmra.mrb[92].mxu0 %vm2393_vm12, %v2537_v11  ;;  %4576 = vmatprep.mubr.msk.bf16.mxu1 %vm2393_vm12, %v2550_v61 }
 0x661   : > { %2726 = vmatprep.mubr.bf16.mxu0 %v6671_v25 }
 0x663   : > { %v2551_v35 = vpop.trf.xlu0 }
 0x664   : > { %4577 = vmatmul.mubr.msk.bf16.gmra.mrb[88].mxu1 %vm2393_vm12, %v2551_v35 }
 0x667   : > { %v2552_v52 = vpop.trf.xlu0 }
 0x668   : > { %4246 = vmatmul.mubr.msk.bf16.gmra.mrb[96].mxu0 %vm2393_vm12, %v2538_v2  ;;  %4580 = vmatprep.mubr.msk.bf16.mxu1 %vm2393_vm12, %v2552_v52 }
 0x669   : > { %2736 = vmatprep.mubr.bf16.mxu0 %v6671_v25 }
 0x66b   : > { %v2553_v17 = vpop.trf.xlu0 }
 0x66c   : > { %4581 = vmatmul.mubr.msk.bf16.gmra.mrb[92].mxu1 %vm2393_vm12, %v2553_v17 }
 0x66f   : > { %v2554_v5 = vpop.trf.xlu0 }
 0x670   : > { %4247 = vmatmul.mubr.msk.bf16.gmra.mrb[100].mxu0 %vm2393_vm12, %v2539_v50  ;;  %4584 = vmatprep.mubr.msk.bf16.mxu1 %vm2393_vm12, %v2554_v5 }
 0x671   : > { %2746 = vmatprep.mubr.bf16.mxu0 %v6671_v25 }
 0x673   : > { %v2555_v51 = vpop.trf.xlu0 }
 0x674   : > { %4585 = vmatmul.mubr.msk.bf16.gmra.mrb[96].mxu1 %vm2393_vm12, %v2555_v51 }
 0x675   : > { %3264 = vmatprep.mubr.bf16.mxu1 %v5915_v39 }
 0x678   : > { %4248 = vmatmul.mubr.msk.bf16.gmra.mrb[104].mxu0 %vm2393_vm12, %v2548_v14 }
 0x679   : > { %2756 = vmatprep.mubr.bf16.mxu0 %v6671_v25 }
 0x680   : > { %4249 = vmatmul.mubr.msk.bf16.gmra.mrb[108].mxu0 %vm2393_vm12, %v2549_v7 }
 0x681   : > { %2766 = vmatprep.mubr.bf16.mxu0 %v6671_v25 }
 0x688   : > { %4250 = vmatmul.mubr.msk.bf16.gmra.mrb[112].mxu0 %vm2393_vm12, %v2550_v61 }
 0x689   : > { %2776 = vmatprep.mubr.bf16.mxu0 %v6671_v25 }
 0x690   : > { %4251 = vmatmul.mubr.msk.bf16.gmra.mrb[116].mxu0 %vm2393_vm12, %v2551_v35 }
 0x691   : > { %2786 = vmatprep.mubr.bf16.mxu0 %v6671_v25 }
 0x698   : > { %4252 = vmatmul.mubr.msk.bf16.gmra.mrb[120].mxu0 %vm2393_vm12, %v2552_v52 }
 0x699   : > { %2796 = vmatprep.mubr.bf16.mxu0 %v6671_v25 }
 0x6a0   : > { %4253 = vmatmul.mubr.msk.bf16.gmra.mrb[124].mxu0 %vm2393_vm12, %v2553_v17 }
 0x6a1   : > { %2806 = vmatprep.mubr.bf16.mxu0 %v6671_v25 }
 0x6a8   : > { %4254 = vmatmul.mubr.msk.bf16.gmra.mrb[128].mxu0 %vm2393_vm12, %v2554_v5 }
 0x6a9   : > { %2816 = vmatprep.mubr.bf16.mxu0 %v6671_v25 }
 0x6ad   : > { %v2512_v56 = vpop.f32.mrb[68].mxu0 }
 0x6ae   : > { %v2519_v31 = vadd.f32 %v2512_v56, %v2476_v8  ;;  %v2514_v26 = vpop.f32.mrb[69].mxu0 }
 0x6af   : > { %v2515_v48 = vpop.f32.mrb[70].mxu0 }
 0x6b0   : > { %2521 = vst.msk [vmem:[#allocation3] sm:$0xff] %vm2393_vm12, %v2519_v31  ;;  %v2520_v11 = vadd.f32 %v2515_v48, %v2477_v10  ;;  %4255 = vmatmul.mubr.msk.bf16.gmra.mrb[132].mxu0 %vm2393_vm12, %v2555_v51  ;;  %v2517_v2 = vpop.f32.mrb[71].mxu0 }
 0x6b1   : > { %3168 = vmatprep.mubr.bf16.mxu0 %v6671_v25 }
 0x6b2   : > { %2522 = vst.msk [vmem:[#allocation3 + $0x8] sm:$0xff] %vm2393_vm12, %v2520_v11 }
 0x6b8   : > { %4272 = vmatmul.mubr.msk.bf16.vlgmr.msra.gmra.mrb[136].mxu0 %vm2393_vm12, %v5933_v44 }
 0x6b9   : > { %4589 = vmatpush3.bf16.msra.mxu0 %v5945_v37  ;;  %4590 = vmatprep.mubr.msk.bf16.mxu0 %vm5065_vm15, %v5064_v57 }
 0x6c0   : > { %4591 = vmatmul.mubr.msk.bf16.vlgmr.msra.gmra.mrb[140].mxu0 %vm2393_vm12, %v5933_v44 }
 0x6c1   : > { %3307 = vmatprep.mubr.bf16.mxu0 %v5915_v39 }
 0x70b   : > { %v2668_v40 = vpop.f32.mrb[72].mxu0 }
 0x70c   : > { %v2670_v55 = vpop.f32.mrb[73].mxu0  ;;  %v2988_v25 = vmul.f32 %v2668_v40, %v5512_v3 }
 0x70d   : > { %v2672_v50 = vpop.f32.mrb[74].mxu0  ;;  %v2989_v61 = vmul.f32 %v2670_v55, %v5499_v62 }
 0x70e   : > { %v2991_v14 = vmul.f32 %v2672_v50, %v5493_v58  ;;  %v2674_v7 = vpop.f32.mrb[75].mxu0 }
 0x70f   : > { %v2992_v37 = vmul.f32 %v2674_v7, %v5502_v63  ;;  %v4558_v35 = vpop.f32.mrb[68].mxu1  ;;  %v6672_v7 = vld [vmem:[#allocation22_spill] sm:$0xff] }
 0x710   : > { %v3084_v52 = vpack.c.bf16 %v2991_v14, %v2988_v25  ;;  %v2861_v57 = vpop.f32.mrb[69].mxu1  ;;  %v6021_v44 = vmul.f32 %v4558_v35, %v5483_v53 }
 0x711   : > { %v3085_v17 = vpack.c.bf16 %v2992_v37, %v2989_v61  ;;  %v4559_v5 = vpop.f32.mrb[70].mxu1  ;;  %v6027_v3 = vmul.f32 %v2861_v57, %v5496_v59 }
 0x712   : > { %v6024_v39 = vmul.f32 %v4559_v5, %v5505_v0  ;;  %v2864_v51 = vpop.f32.mrb[71].mxu1 }
 0x713   : > { %v6030_v58 = vmul.f32 %v2864_v51, %v5515_v4  ;;  %v2678_v62 = vpop.f32.mrb[76].mxu0  ;;  %3232 = vmatprep.subr.bf16.mxu1 %v3085_v17 }
 0x714   : > { %v3089_v63 = vpack.c.bf16 %v6024_v39, %v6021_v44  ;;  %v2680_v22 = vpop.f32.mrb[77].mxu0  ;;  %3233 = vmatpush1.bf16.msra.mxu1 %v3084_v52  ;;  %v2994_v0 = vmul.f32 %v2678_v62, %v5542_v23 }
 0x715   : > { %v3086_v53 = vpack.c.bf16 %v6030_v58, %v6027_v3  ;;  %v2682_v38 = vpop.f32.mrb[78].mxu0  ;;  %v2995_v56 = vmul.f32 %v2680_v22, %v5533_v19 }
 0x716   : > { %v2997_v8 = vmul.f32 %v2682_v38, %v5527_v15  ;;  %v2684_v59 = vpop.f32.mrb[79].mxu0 }
 0x717   : > { %v2998_v4 = vmul.f32 %v2684_v59, %v5536_v20  ;;  %v4562_v31 = vpop.f32.mrb[72].mxu1 }
 0x718   : > { %v3087_v26 = vpack.c.bf16 %v2997_v8, %v2994_v0  ;;  %v2877_v10 = vpop.f32.mrb[73].mxu1  ;;  %v6041_v2 = vmul.f32 %v4562_v31, %v5524_v12 }
 0x719   : > { %v3088_v48 = vpack.c.bf16 %v2998_v4, %v2995_v56  ;;  %v4563_v11 = vpop.f32.mrb[74].mxu1  ;;  %v6047_v23 = vmul.f32 %v2877_v10, %v5530_v16  ;;  %v6675_v4 = vld [vmem:[#allocation24_spill] sm:$0xff] }
 0x71a   : > { %v6044_v40 = vmul.f32 %v4563_v11, %v5539_v21  ;;  %v2880_v55 = vpop.f32.mrb[75].mxu1 }
 0x71b   : > { %v6050_v15 = vmul.f32 %v2880_v55, %v5545_v24  ;;  %v2688_v19 = vpop.f32.mrb[80].mxu0  ;;  %3234 = vmatprep.subr.bf16.mxu1 %v3088_v48  ;;  %v6673_v24 = vld [vmem:[#allocation23_spill] sm:$0xff] }
 0x71c   : > { %v3095_v20 = vpack.c.bf16 %v6044_v40, %v6041_v2  ;;  %v2690_v50 = vpop.f32.mrb[81].mxu0  ;;  %3235 = vmatpush1.bf16.msra.mxu1 %v3087_v26  ;;  %v3000_v21 = vmul.f32 %v2688_v19, %v5570_v46  ;;  %v6676_v26 = vld [vmem:[#allocation25_spill] sm:$0xff] }
 0x71d   : > { %v3092_v12 = vpack.c.bf16 %v6050_v15, %v6047_v23  ;;  %v2692_v25 = vpop.f32.mrb[82].mxu0  ;;  %v3001_v61 = vmul.f32 %v2690_v50, %v6672_v7 }
 0x71e   : > { %v3003_v14 = vmul.f32 %v2692_v25, %v5555_v33  ;;  %v2694_v16 = vpop.f32.mrb[83].mxu0 }
 0x71f   : > { %v3004_v37 = vmul.f32 %v2694_v16, %v6673_v24  ;;  %v4566_v35 = vpop.f32.mrb[76].mxu1 }
 0x720   : > { %v3090_v52 = vpack.c.bf16 %v3003_v14, %v3000_v21  ;;  %v2893_v57 = vpop.f32.mrb[77].mxu1  ;;  %v6061_v51 = vmul.f32 %v4566_v35, %v5552_v30 }
 0x721   : > { %v3091_v17 = vpack.c.bf16 %v3004_v37, %v3001_v61  ;;  %v4567_v5 = vpop.f32.mrb[78].mxu1  ;;  %v6067_v46 = vmul.f32 %v2893_v57, %v5558_v34 }
 0x722   : > { %v6064_v62 = vmul.f32 %v4567_v5, %v5567_v41  ;;  %v2896_v22 = vpop.f32.mrb[79].mxu1  ;;  %v6674_v41 = vld [vmem:[#allocation27_spill] sm:$0xff] }
 0x723   : > { %v6070_v33 = vmul.f32 %v2896_v22, %v5573_v47  ;;  %v2698_v38 = vpop.f32.mrb[84].mxu0  ;;  %3236 = vmatprep.subr.bf16.mxu1 %v3091_v17  ;;  %v6677_v47 = vld [vmem:[#allocation26_spill] sm:$0xff]  ;;  %v6679_v17 = vld [vmem:[#allocation28_spill] sm:$0xff]  ;;  %v6680_v22 = vld [vmem:[#allocation29_spill] sm:$0xff] }
 0x724   : > { %v3101_v0 = vpack.c.bf16 %v6064_v62, %v6061_v51  ;;  %v2700_v8 = vpop.f32.mrb[85].mxu0  ;;  %3237 = vmatpush1.bf16.msra.mxu1 %v3090_v52  ;;  %v3006_v56 = vmul.f32 %v2698_v38, %v6674_v41 }
 0x725   : > { %v3098_v30 = vpack.c.bf16 %v6070_v33, %v6067_v46  ;;  %v2702_v59 = vpop.f32.mrb[86].mxu0  ;;  %v3007_v10 = vmul.f32 %v2700_v8, %v6676_v26 }
 0x726   : > { %v3009_v31 = vmul.f32 %v2702_v59, %v6675_v4  ;;  %v2704_v34 = vpop.f32.mrb[87].mxu0 }
 0x727   : > { %v3010_v48 = vmul.f32 %v2704_v34, %v6677_v47  ;;  %v4570_v11 = vpop.f32.mrb[80].mxu1 }
 0x728   : > { %v3093_v55 = vpack.c.bf16 %v3009_v31, %v3006_v56  ;;  %v2909_v19 = vpop.f32.mrb[81].mxu1  ;;  %v6081_v21 = vmul.f32 %v4570_v11, %v5580_v60 }
 0x729   : > { %v3094_v50 = vpack.c.bf16 %v3010_v48, %v3007_v10  ;;  %v4571_v25 = vpop.f32.mrb[82].mxu1  ;;  %v6087_v7 = vmul.f32 %v2909_v19, %v5586_v6 }
 0x72a   : > { %v6084_v14 = vmul.f32 %v4571_v25, %v5595_v13  ;;  %v2912_v16 = vpop.f32.mrb[83].mxu1  ;;  %v6678_v13 = vld [vmem:[#allocation31_spill] sm:$0xff] }
 0x72b   : > { %v6090_v61 = vmul.f32 %v2912_v16, %v5601_v18  ;;  %v2708_v24 = vpop.f32.mrb[88].mxu0  ;;  %3238 = vmatprep.subr.bf16.mxu1 %v3094_v50  ;;  %v6681_v18 = vld [vmem:[#allocation30_spill] sm:$0xff]  ;;  %v6682_v16 = vld [vmem:[#allocation35_spill] sm:$0xff] }
 0x72c   : > { %v3107_v37 = vpack.c.bf16 %v6084_v14, %v6081_v21  ;;  %v2710_v35 = vpop.f32.mrb[89].mxu0  ;;  %3239 = vmatpush1.bf16.msra.mxu1 %v3093_v55  ;;  %v3012_v57 = vmul.f32 %v2708_v24, %v6678_v13  ;;  %v6710_v14 = vld [vmem:[#allocation63_spill] sm:$0xff] }
 0x72d   : > { %v3104_v60 = vpack.c.bf16 %v6090_v61, %v6087_v7  ;;  %v2712_v52 = vpop.f32.mrb[90].mxu0  ;;  %v3013_v38 = vmul.f32 %v2710_v35, %v6680_v22  ;;  %v6683_v35 = vld [vmem:[#allocation32_spill] sm:$0xff]  ;;  %v6709_v7 = vld [vmem:[#allocation58_spill] sm:$0xff] }
 0x72e   : > { %v3015_v5 = vmul.f32 %v2712_v52, %v6679_v17  ;;  %v2714_v6 = vpop.f32.mrb[91].mxu0 }
 0x72f   : > { %v3016_v8 = vmul.f32 %v2714_v6, %v6681_v18  ;;  %v4574_v59 = vpop.f32.mrb[84].mxu1 }
 0x730   : > { %v3096_v41 = vpack.c.bf16 %v3015_v5, %v3012_v57  ;;  %v2925_v56 = vpop.f32.mrb[85].mxu1  ;;  %v3044_v34 = vmul.f32 %v4574_v59, %v5608_v29  ;;  %v6684_v29 = vld [vmem:[#allocation33_spill] sm:$0xff] }
 0x731   : > { %v3097_v4 = vpack.c.bf16 %v3016_v8, %v3013_v38  ;;  %v4575_v31 = vpop.f32.mrb[86].mxu1  ;;  %v3038_v47 = vmul.f32 %v2925_v56, %v5614_v36 }
 0x732   : > { %v3047_v26 = vmul.f32 %v4575_v31, %v5623_v54  ;;  %v2928_v10 = vpop.f32.mrb[87].mxu1  ;;  %v6685_v54 = vld [vmem:[#allocation34_spill] sm:$0xff] }
 0x733   : > { %v3041_v48 = vmul.f32 %v2928_v10, %v5629_v1  ;;  %v2718_v11 = vpop.f32.mrb[92].mxu0  ;;  %3240 = vmatprep.subr.bf16.mxu1 %v3097_v4  ;;  %v6688_v10 = vld [vmem:[#allocation39_spill] sm:$0xff] }
 0x734   : > { %v3113_v55 = vpack.c.bf16 %v3047_v26, %v3044_v34  ;;  %v2720_v19 = vpop.f32.mrb[93].mxu0  ;;  %3241 = vmatpush1.bf16.msra.mxu1 %v3096_v41  ;;  %v3018_v24 = vmul.f32 %v2718_v11, %v6682_v16  ;;  %v6687_v34 = vld [vmem:[#allocation37_spill] sm:$0xff] }
 0x735   : > { %v3110_v50 = vpack.c.bf16 %v3041_v48, %v3038_v47  ;;  %v2722_v25 = vpop.f32.mrb[94].mxu0  ;;  %v3019_v57 = vmul.f32 %v2720_v19, %v6684_v29  ;;  %v6689_v47 = vld [vmem:[#allocation40_spill] sm:$0xff] }
 0x736   : > { %v3021_v52 = vmul.f32 %v2722_v25, %v6683_v35  ;;  %v2724_v13 = vpop.f32.mrb[95].mxu0 }
 0x737   : > { %v3022_v17 = vmul.f32 %v2724_v13, %v6685_v54  ;;  %v4578_v5 = vpop.f32.mrb[88].mxu1  ;;  %4382 = vmatprep.subr.bf16.mxu0 %v3110_v50  ;;  %v6691_v50 = vld [vmem:[#allocation41_spill] sm:$0xff] }
 0x738   : > { %v3099_v36 = vpack.c.bf16 %v3021_v52, %v3018_v24  ;;  %v2941_v1 = vpop.f32.mrb[89].mxu1  ;;  %4383 = vmatpush3.bf16.msra.mxu0 %v3086_v53  ;;  %v3056_v38 = vmul.f32 %v4578_v5, %v5636_v27  ;;  %v6686_v53 = vld [vmem:[#allocation42_spill] sm:$0xff]  ;;  %v6693_v52 = vld [vmem:[#allocation43_spill] sm:$0xff]  ;;  %v6695_v5 = vld [vmem:[#allocation45_spill] sm:$0xff] }
 0x739   : > { %v3100_v6 = vpack.c.bf16 %v3022_v17, %v3019_v57  ;;  %v4579_v22 = vpop.f32.mrb[90].mxu1  ;;  %4384 = vmatprep.subr.bf16.mxu0 %v3113_v55  ;;  %v3050_v59 = vmul.f32 %v2941_v1, %v5642_v32  ;;  %v6692_v24 = vld [vmem:[#allocation38_spill] sm:$0xff] }
 0x73a   : > { %v3059_v18 = vmul.f32 %v4579_v22, %v5651_v9  ;;  %v2944_v8 = vpop.f32.mrb[91].mxu1 }
 0x73b   : > { %v3053_v41 = vmul.f32 %v2944_v8, %v5657_v28  ;;  %v2728_v56 = vpop.f32.mrb[96].mxu0  ;;  %3242 = vmatprep.subr.bf16.mxu1 %v3100_v6  ;;  %v6696_v6 = vld [vmem:[#allocation47_spill] sm:$0xff] }
 0x73c   : > { %v3119_v4 = vpack.c.bf16 %v3059_v18, %v3056_v38  ;;  %v2730_v31 = vpop.f32.mrb[97].mxu0  ;;  %3243 = vmatpush1.bf16.msra.mxu1 %v3099_v36  ;;  %4385 = vmatpush3.bf16.msra.mxu0 %v3089_v63  ;;  %v3024_v27 = vmul.f32 %v2728_v56, %v6686_v53  ;;  %v6690_v63 = vld [vmem:[#allocation36_spill] sm:$0xff] }
 0x73d   : > { %v3116_v3 = vpack.c.bf16 %v3053_v41, %v3050_v59  ;;  %v2732_v58 = vpop.f32.mrb[98].mxu0  ;;  %v3025_v32 = vmul.f32 %v2730_v31, %v6688_v10  ;;  %v6697_v38 = vld [vmem:[#allocation48_spill] sm:$0xff] }
 0x73e   : > { %v3027_v9 = vmul.f32 %v2732_v58, %v6687_v34  ;;  %v2734_v26 = vpop.f32.mrb[99].mxu0  ;;  %v6700_v58 = vld [vmem:[#allocation46_spill] sm:$0xff] }
 0x73f   : > { %v3028_v28 = vmul.f32 %v2734_v26, %v6689_v47  ;;  %v4582_v48 = vpop.f32.mrb[92].mxu1  ;;  %4386 = vmatprep.subr.bf16.mxu0 %v3116_v3  ;;  %v6703_v47 = vld [vmem:[#allocation52_spill] sm:$0xff] }
 0x740   : > { %v3102_v11 = vpack.c.bf16 %v3027_v9, %v3024_v27  ;;  %v2957_v55 = vpop.f32.mrb[93].mxu1  ;;  %4387 = vmatpush3.bf16.msra.mxu0 %v3092_v12  ;;  %v3068_v19 = vmul.f32 %v4582_v48, %v6690_v63  ;;  %v6694_v12 = vld [vmem:[#allocation50_spill] sm:$0xff]  ;;  %v6701_v27 = vld [vmem:[#allocation51_spill] sm:$0xff] }
 0x741   : > { %v3103_v44 = vpack.c.bf16 %v3028_v28, %v3025_v32  ;;  %v4583_v39 = vpop.f32.mrb[94].mxu1  ;;  %4388 = vmatprep.subr.bf16.mxu0 %v3119_v4  ;;  %v3062_v35 = vmul.f32 %v2957_v55, %v6692_v24  ;;  %v6699_v4 = vld [vmem:[#allocation49_spill] sm:$0xff] }
 0x742   : > { %v3071_v25 = vmul.f32 %v4583_v39, %v6691_v50  ;;  %v2960_v16 = vpop.f32.mrb[95].mxu1  ;;  %v6706_v50 = vld [vmem:[#allocation59_spill] sm:$0xff] }
 0x743   : > { %v3065_v13 = vmul.f32 %v2960_v16, %v6693_v52  ;;  %v2738_v29 = vpop.f32.mrb[100].mxu0  ;;  %3244 = vmatprep.subr.bf16.mxu1 %v3103_v44  ;;  %v6705_v44 = vld [vmem:[#allocation54_spill] sm:$0xff]  ;;  %v6707_v16 = vld [vmem:[#allocation56_spill] sm:$0xff]  ;;  %v6708_v52 = vld [vmem:[#allocation57_spill] sm:$0xff] }
 0x744   : > { %v3125_v57 = vpack.c.bf16 %v3071_v25, %v3068_v19  ;;  %v2740_v54 = vpop.f32.mrb[101].mxu0  ;;  %3245 = vmatpush1.bf16.msra.mxu1 %v3102_v11  ;;  %4389 = vmatpush3.bf16.msra.mxu0 %v3095_v20  ;;  %v3030_v17 = vmul.f32 %v2738_v29, %v6694_v12  ;;  %v6698_v20 = vld [vmem:[#allocation44_spill] sm:$0xff]  ;;  %v6704_v11 = vld [vmem:[#allocation53_spill] sm:$0xff] }
 0x745   : > { %v3122_v23 = vpack.c.bf16 %v3065_v13, %v3062_v35  ;;  %v2742_v15 = vpop.f32.mrb[102].mxu0  ;;  %v3031_v22 = vmul.f32 %v2740_v54, %v6696_v6 }
 0x746   : > { %v3033_v36 = vmul.f32 %v2742_v15, %v6695_v5  ;;  %v2744_v1 = vpop.f32.mrb[103].mxu0 }
 0x747   : > { %v3034_v18 = vmul.f32 %v2744_v1, %v6697_v38  ;;  %v4586_v8 = vpop.f32.mrb[96].mxu1  ;;  %4390 = vmatprep.subr.bf16.mxu0 %v3122_v23  ;;  %v6711_v23 = vld [vmem:[#allocation60_spill] sm:$0xff] }
 0x748   : > { %v3105_v59 = vpack.c.bf16 %v3033_v36, %v3030_v17  ;;  %v2973_v41 = vpop.f32.mrb[97].mxu1  ;;  %4391 = vmatpush3.bf16.msra.mxu0 %v3098_v30  ;;  %v3080_v56 = vmul.f32 %v4586_v8, %v6698_v20  ;;  %v6702_v30 = vld [vmem:[#allocation55_spill] sm:$0xff]  ;;  %v6712_v17 = vld [vmem:[#allocation61_spill] sm:$0xff]  ;;  %v6713_v36 = vld [vmem:[#allocation62_spill] sm:$0xff] }
 0x749   : > { %v3106_v2 = vpack.c.bf16 %v3034_v18, %v3031_v22  ;;  %v4587_v40 = vpop.f32.mrb[98].mxu1  ;;  %4392 = vmatprep.subr.bf16.mxu0 %v3125_v57  ;;  %v3074_v53 = vmul.f32 %v2973_v41, %v6700_v58 }
 0x74a   : > { %v3083_v31 = vmul.f32 %v4587_v40, %v6699_v4  ;;  %v2976_v3 = vpop.f32.mrb[99].mxu1 }
 0x74b   : > { %v3077_v34 = vmul.f32 %v2976_v3, %v6701_v27  ;;  %v2748_v9 = vpop.f32.mrb[104].mxu0  ;;  %3246 = vmatprep.subr.bf16.mxu1 %v3106_v2  ;;  %v6715_v2 = vld [vmem:[#allocation64_spill] sm:$0xff] }
 0x74c   : > { %v3131_v26 = vpack.c.bf16 %v3083_v31, %v3080_v56  ;;  %v2750_v10 = vpop.f32.mrb[105].mxu0  ;;  %3247 = vmatpush1.bf16.msra.mxu1 %v3105_v59  ;;  %4393 = vmatpush3.bf16.msra.mxu0 %v3101_v0  ;;  %v3036_v32 = vmul.f32 %v2748_v9, %v6702_v30  ;;  %v6714_v59 = vld [vmem:[#allocation67_spill] sm:$0xff]  ;;  %v6716_v56 = vld [vmem:[#allocation65_spill] sm:$0xff]  ;;  %v6717_v31 = vld [vmem:[#allocation66_spill] sm:$0xff] }
 0x74d   : > { %v3128_v46 = vpack.c.bf16 %v3077_v34, %v3074_v53  ;;  %v2752_v33 = vpop.f32.mrb[106].mxu0  ;;  %v3037_v55 = vmul.f32 %v2750_v10, %v6704_v11 }
 0x74e   : > { %v3039_v28 = vmul.f32 %v2752_v33, %v6703_v47  ;;  %v2754_v48 = vpop.f32.mrb[107].mxu0 }
 0x74f   : > { %v3040_v39 = vmul.f32 %v2754_v48, %v6705_v44  ;;  %4394 = vmatprep.subr.bf16.mxu0 %v3128_v46  ;;  %v6719_v46 = vld [vmem:[#allocation68_spill] sm:$0xff] }
 0x750   : > { %v3108_v63 = vpack.c.bf16 %v3039_v28, %v3036_v32  ;;  %4395 = vmatpush3.bf16.msra.mxu0 %v3104_v60  ;;  %v6720_v32 = vld [vmem:[#allocation69_spill] sm:$0xff]  ;;  %v6721_v28 = vld [vmem:[#allocation70_spill] sm:$0xff] }
 0x751   : > { %v3109_v19 = vpack.c.bf16 %v3040_v39, %v3037_v55  ;;  %4396 = vmatprep.subr.bf16.mxu0 %v3131_v26  ;;  %v6718_v26 = vld [vmem:[#allocation71_spill] sm:$0xff] }
 0x753   : > { %v2758_v51 = vpop.f32.mrb[108].mxu0  ;;  %3248 = vmatprep.subr.bf16.mxu1 %v3109_v19  ;;  %v6722_v19 = vld [vmem:[#allocation75_spill] sm:$0xff] }
 0x754   : > { %v2760_v62 = vpop.f32.mrb[109].mxu0  ;;  %3249 = vmatpush1.bf16.msra.mxu1 %v3108_v63  ;;  %4397 = vmatpush3.bf16.msra.mxu0 %v3107_v37  ;;  %v3042_v25 = vmul.f32 %v2758_v51, %v6706_v50 }
 0x755   : > { %v2762_v0 = vpop.f32.mrb[110].mxu0  ;;  %v3043_v13 = vmul.f32 %v2760_v62, %v6708_v52  ;;  %v6723_v62 = vld [vmem:[#allocation72_spill] sm:$0xff] }
 0x756   : > { %v3045_v24 = vmul.f32 %v2762_v0, %v6707_v16  ;;  %v2764_v35 = vpop.f32.mrb[111].mxu0 }
 0x757   : > { %v3046_v61 = vmul.f32 %v2764_v35, %v6709_v7  ;;  %3308 = vmatmul.mubr.bf16.vlgmr.msra.gmra.mrb[144].mxu0 %v5918_v45 }
 0x758   : > { %v3111_v60 = vpack.c.bf16 %v3045_v24, %v3042_v25  ;;  %v6724_v25 = vld [vmem:[#allocation73_spill] sm:$0xff]  ;;  %v6725_v24 = vld [vmem:[#allocation74_spill] sm:$0xff] }
 0x759   : > { %v3112_v29 = vpack.c.bf16 %v3046_v61, %v3043_v13 }
 0x75b   : > { %v2768_v57 = vpop.f32.mrb[112].mxu0  ;;  %3250 = vmatprep.subr.bf16.mxu1 %v3112_v29  ;;  %v6726_v29 = vld [vmem:[#allocation79_spill] sm:$0xff] }
 0x75c   : > { %v2770_v54 = vpop.f32.mrb[113].mxu0  ;;  %3251 = vmatpush1.bf16.msra.mxu1 %v3111_v60  ;;  %v3048_v37 = vmul.f32 %v2768_v57, %v6710_v14 }
 0x75d   : > { %v2772_v21 = vpop.f32.mrb[114].mxu0  ;;  %v3049_v5 = vmul.f32 %v2770_v54, %v6712_v17  ;;  %v6727_v54 = vld [vmem:[#allocation76_spill] sm:$0xff] }
 0x75e   : > { %v3051_v15 = vmul.f32 %v2772_v21, %v6711_v23  ;;  %v2774_v12 = vpop.f32.mrb[115].mxu0 }
 0x75f   : > { %v3052_v1 = vmul.f32 %v2774_v12, %v6713_v36 }
 0x760   : > { %v3114_v6 = vpack.c.bf16 %v3051_v15, %v3048_v37  ;;  %v6728_v37 = vld [vmem:[#allocation77_spill] sm:$0xff]  ;;  %v6729_v15 = vld [vmem:[#allocation78_spill] sm:$0xff] }
 0x761   : > { %v3115_v22 = vpack.c.bf16 %v3052_v1, %v3049_v5 }
 0x763   : > { %v2778_v38 = vpop.f32.mrb[116].mxu0  ;;  %3252 = vmatprep.subr.bf16.mxu1 %v3115_v22  ;;  %v6730_v22 = vld [vmem:[#allocation83_spill] sm:$0xff] }
 0x764   : > { %v2780_v18 = vpop.f32.mrb[117].mxu0  ;;  %3253 = vmatpush1.bf16.msra.mxu1 %v3114_v6  ;;  %v3054_v41 = vmul.f32 %v2778_v38, %v6714_v59 }
 0x765   : > { %v2782_v8 = vpop.f32.mrb[118].mxu0  ;;  %v3055_v4 = vmul.f32 %v2780_v18, %v6716_v56  ;;  %v6731_v18 = vld [vmem:[#allocation80_spill] sm:$0xff] }
 0x766   : > { %v3057_v40 = vmul.f32 %v2782_v8, %v6715_v2  ;;  %v2784_v20 = vpop.f32.mrb[119].mxu0 }
 0x767   : > { %v3058_v3 = vmul.f32 %v2784_v20, %v6717_v31 }
 0x768   : > { %v3117_v58 = vpack.c.bf16 %v3057_v40, %v3054_v41  ;;  %v6732_v41 = vld [vmem:[#allocation81_spill] sm:$0xff]  ;;  %v6733_v40 = vld [vmem:[#allocation82_spill] sm:$0xff] }
 0x769   : > { %v3118_v53 = vpack.c.bf16 %v3058_v3, %v3055_v4 }
 0x76b   : > { %v2788_v27 = vpop.f32.mrb[120].mxu0  ;;  %3254 = vmatprep.subr.bf16.mxu1 %v3118_v53 }
 0x76c   : > { %v2790_v34 = vpop.f32.mrb[121].mxu0  ;;  %3255 = vmatpush1.bf16.msra.mxu1 %v3117_v58  ;;  %v3060_v10 = vmul.f32 %v2788_v27, %v6718_v26 }
 0x76d   : > { %v2792_v9 = vpop.f32.mrb[122].mxu0  ;;  %v3061_v47 = vmul.f32 %v2790_v34, %v6720_v32 }
 0x76e   : > { %v3063_v33 = vmul.f32 %v2792_v9, %v6719_v46  ;;  %v2794_v30 = vpop.f32.mrb[123].mxu0 }
 0x76f   : > { %v3064_v48 = vmul.f32 %v2794_v30, %v6721_v28 }
 0x770   : > { %v3120_v11 = vpack.c.bf16 %v3063_v33, %v3060_v10  ;;  %v3222_v10 = vld [vmem:[#allocation4 + $0x10] sm:$0xff]  ;;  %v3225_v33 = vld [vmem:[#allocation4 + $0x28] sm:$0xff] }
 0x771   : > { %v3121_v55 = vpack.c.bf16 %v3064_v48, %v3061_v47 }
 0x773   : > { %v2798_v44 = vpop.f32.mrb[124].mxu0  ;;  %3256 = vmatprep.subr.bf16.mxu1 %v3121_v55 }
 0x774   : > { %v2800_v39 = vpop.f32.mrb[125].mxu0  ;;  %3257 = vmatpush1.bf16.msra.mxu1 %v3120_v11  ;;  %v3066_v51 = vmul.f32 %v2798_v44, %v6722_v19  ;;  %v3223_v19 = vld [vmem:[#allocation4 + $0x18] sm:$0xff] }
 0x775   : > { %v2802_v63 = vpop.f32.mrb[126].mxu0  ;;  %v3067_v16 = vmul.f32 %v2800_v39, %v6724_v25 }
 0x776   : > { %v3069_v0 = vmul.f32 %v2802_v63, %v6723_v62  ;;  %v2804_v50 = vpop.f32.mrb[127].mxu0  ;;  %v3220_v63 = vld [vmem:[#allocation4] sm:$0xff] }
 0x777   : > { %v3070_v35 = vmul.f32 %v2804_v50, %v6725_v24  ;;  %v3224_v62 = vld [vmem:[#allocation4 + $0x20] sm:$0xff] }
 0x778   : > { %v3123_v52 = vpack.c.bf16 %v3069_v0, %v3066_v51 }
 0x779   : > { %v3124_v13 = vpack.c.bf16 %v3070_v35, %v3067_v16 }
 0x77b   : > { %v2808_v7 = vpop.f32.mrb[128].mxu0  ;;  %3258 = vmatprep.subr.bf16.mxu1 %v3124_v13 }
 0x77c   : > { %v2810_v61 = vpop.f32.mrb[129].mxu0  ;;  %3259 = vmatpush1.bf16.msra.mxu1 %v3123_v52  ;;  %v3072_v57 = vmul.f32 %v2808_v7, %v6726_v29  ;;  %v3338_v29 = vunpack.c.l.bf16 (!%p4274_p10), %v5940_v49 }
 0x77d   : > { %v2812_v60 = vpop.f32.mrb[130].mxu0  ;;  %v3073_v23 = vmul.f32 %v2810_v61, %v6728_v37  ;;  %v5066_v37 = vmov (!%p4274_p10), 0.0  }
 0x77e   : > { %v3075_v21 = vmul.f32 %v2812_v60, %v6727_v54  ;;  %v2814_v14 = vpop.f32.mrb[131].mxu0  ;;  %v3332_v54 = vld [vmem:[#allocation3] sm:$0xff] (!%p4274_p10)  ;;  %3420 = vmatprep.mubr.f32.mxu0 (!%p4274_p10), %v5066_v37 }
 0x77f   : > { %v3076_v12 = vmul.f32 %v2814_v14, %v6729_v15  ;;  %v3530_v14 = vld [vmem:[%s6734_s23] sm:$0xff] (!%p4274_p10) }
 0x780   : > { %v3126_v17 = vpack.c.bf16 %v3075_v21, %v3072_v57  ;;  %v3339_v57 = vunpack.c.h.bf16 (!%p4274_p10), %v5940_v49  ;;  %v3333_v21 = vld [vmem:[#allocation3 + $0x8] sm:$0xff] (!%p4274_p10)  ;;  %v3625_v49 = vld [vmem:[%s6736_s2 + $0x8] sm:$0xff] (!%p4274_p10) }
 0x781   : > { %v3127_v5 = vpack.c.bf16 %v3076_v12, %v3073_v23  ;;  %v3334_v23 = vadd.f32 (!%p4274_p10), 1e-16, %v3332_v54  ;;  %v3335_v15 = vadd.f32 (!%p4274_p10), 1e-16, %v3333_v21  ;;  %v3531_v12 = vld [vmem:[%s6735_s6 + $0x8] sm:$0xff] (!%p4274_p10) }
 0x782   : > { %v3750_v54 = vld [vmem:[%s5294_s21 + $0x8] sm:$0xff] (!%p4274_p10) }
 0x783   : > { %v2818_v36 = vpop.f32.mrb[132].mxu0  ;;  %3260 = vmatprep.subr.bf16.mxu1 %v3127_v5  ;;  %v4606_v5 = vpack.c.bf16 (!%p4274_p10), %v3531_v12, %v3530_v14  ;;  %4915 = vrcp.f32 (!%p4274_p10), %v3334_v23 }
 0x784   : > { %v2820_v1 = vpop.f32.mrb[133].mxu0  ;;  %3261 = vmatpush1.bf16.msra.mxu1 %v3126_v17  ;;  %v3078_v38 = vmul.f32 %v2818_v36, %v6730_v22  ;;  %v3342_v17 = vcombine.high (!%p4274_p10), %v3338_v29, %v3338_v29  ;;  %v3627_v36 = vld [vmem:[%s6736_s2 + $0x18] sm:$0xff] (!%p4274_p10)  ;;  %4917 = vrcp.f32 (!%p4274_p10), %v3335_v15  ;;  %v3626_v22 = vld [vmem:[%s6736_s2 + $0x10] sm:$0xff] (!%p4274_p10) }
 0x785   : > { %v2822_v6 = vpop.f32.mrb[134].mxu0  ;;  %v3079_v2 = vmul.f32 %v2820_v1, %v6732_v41  ;;  %v4610_v1 = vpack.c.bf16 (!%p4274_p10), %v3627_v36, %v3625_v49 }
 0x786   : > { %v3081_v8 = vmul.f32 %v2822_v6, %v6731_v18  ;;  %v2824_v59 = vpop.f32.mrb[135].mxu0  ;;  %4275 = vmatprep.subr.msk.mxu0 (!%p4274_p10), %vm3349_vm0, %v3342_v17  ;;  %v3624_v6 = vld [vmem:[%s6736_s2] sm:$0xff] (!%p4274_p10)  ;;  %v3631_v18 = vld [vmem:[%s6736_s2 + $0x38] sm:$0xff] (!%p4274_p10) }
 0x787   : > { %v3082_v20 = vmul.f32 %v2824_v59, %v6733_v40  ;;  %4276 = vmatpush1.msk.msra.mxu0 (!%p4274_p10), %vm3349_vm0, %v3338_v29  ;;  %v3528_v59 = vld [vmem:[%s5289_s9] sm:$0xff] (!%p4274_p10)  ;;  %v4612_v41 = vpack.c.bf16 (!%p4274_p10), %v3626_v22, %v3624_v6 }
 0x788   : > { %v3129_v56 = vpack.c.bf16 %v3081_v8, %v3078_v38  ;;  %4611 = vmatprep.subr.bf16.mxu0 (!%p4274_p10), %v4610_v1  ;;  %v3629_v38 = vld [vmem:[%s6736_s2 + $0x28] sm:$0xff] (!%p4274_p10) }
 0x789   : > { %v3130_v4 = vpack.c.bf16 %v3082_v20, %v3079_v2  ;;  %v4614_v40 = vpack.c.bf16 (!%p4274_p10), %v3631_v18, %v3629_v38  ;;  %v3628_v20 = vld [vmem:[%s6736_s2 + $0x20] sm:$0xff] (!%p4274_p10) }
 0x78b   : > { %v3170_v31 = vpop.f32.mrb[136].mxu0  ;;  %3262 = vmatprep.subr.bf16.mxu1 %v3130_v4  ;;  %v3633_v4 = vld [vmem:[%s6736_s2 + $0x48] sm:$0xff] (!%p4274_p10) }
 0x78c   : > { %v3172_v3 = vpop.f32.mrb[137].mxu0  ;;  %3263 = vmatpush1.bf16.msra.mxu1 %v3129_v56  ;;  %v3226_v51 = vmul.f32 %v3220_v63, %v3170_v31  ;;  %v3630_v56 = vld [vmem:[%s6736_s2 + $0x30] sm:$0xff] (!%p4274_p10)  ;;  %v3635_v31 = vld [vmem:[%s6736_s2 + $0x58] sm:$0xff] (!%p4274_p10) }
 0x78d   : > { %v3174_v58 = vpop.f32.mrb[138].mxu0  ;;  %4594 = vmatprep.subr.msk.mxu1 (!%p4274_p10), %vm3349_vm0, %v3339_v57  ;;  %v4916_v8 = vpop.eup (!%p4274_p10), %4915  ;;  %v3647_v63 = vld [vmem:[%s6736_s2 + $0xb8] sm:$0xff] (!%p4274_p10) }
 0x78e   : > { %v3176_v53 = vpop.f32.mrb[139].mxu0  ;;  %v3229_v25 = vmul.f32 %v3223_v19, %v3174_v58  ;;  %v4918_v2 = vpop.eup (!%p4274_p10), %4917  ;;  %4277 = vmatmul.mubr.msk.f32.vlgmr.msra.gmra.mrb[0].mxu0 (!%p4274_p10), %vm2393_vm12, %v4916_v8  ;;  %v4616_v58 = vpack.c.bf16 (!%p4274_p10), %v3630_v56, %v3628_v20  ;;  %v3644_v19 = vld [vmem:[%s6736_s2 + $0xa0] sm:$0xff] (!%p4274_p10) }
 0x78f   : > { %3265 = vmatmul.mubr.bf16.vlgmr.msra.gmra.mrb[100].mxu1 %v5918_v45  ;;  %v3221_v45 = vld [vmem:[#allocation4 + $0x8] sm:$0xff]  ;;  %v3230_v35 = vmul.f32 %v3224_v62, %v3176_v53  ;;  %3426 = vmatprep.mubr.f32.mxu0 (!%p4274_p10), %v5066_v37  ;;  %v4618_v53 = vpack.c.bf16 (!%p4274_p10), %v3635_v31, %v3633_v4 }
 0x790   : > { %v3227_v0 = vmul.f32 %v3221_v45, %v3172_v3  ;;  %4595 = vmatpush3.msk.msra.mxu1 (!%p4274_p10), %vm3349_vm0, %v3339_v57  ;;  %4596 = vmatprep.mubr.msk.f32.mxu1 (!%p4274_p10), %vm2393_vm12, %v4916_v8  ;;  %v3529_v3 = vld [vmem:[%s5289_s9 + $0x8] sm:$0xff] (!%p4274_p10)  ;;  %v3749_v57 = vld [vmem:[%s5294_s21] sm:$0xff] (!%p4274_p10) }
 0x791   : > { %4607 = vmatprep.subr.bf16.mxu1 (!%p4274_p10), %v4606_v5  ;;  %4613 = vmatpush1.bf16.msra.mxu0 (!%p4274_p10), %v4612_v41 }
 0x792   : > { %4278 = vmatmul.mubr.msk.f32.gmra.mrb[2].mxu0 (!%p4274_p10), %vm2393_vm12, %v4918_v2  ;;  %4615 = vmatprep.subr.bf16.mxu0 (!%p4274_p10), %v4614_v40 }
 0x793   : > { %v3213_v27 = vpop.f32.mrb[140].mxu0  ;;  %3732 = vmatprep.mubr.f32.mxu0 (!%p4274_p10), %v5066_v37  ;;  %3751 = vxpose.xlu0.b32.start [1/2] (short) (narrow) (!%p4274_p10), %v3749_v57, 8 }
 0x794   : > { %v4592_v34 = vpop.f32.mrb[141].mxu0  ;;  %v3228_v32 = vmul.f32 %v3222_v10, %v3213_v27  ;;  %v3632_v27 = vld [vmem:[%s6736_s2 + $0x40] sm:$0xff] (!%p4274_p10) }
 0x795   : > { %v3216_v9 = vpop.f32.mrb[142].mxu0  ;;  %v3634_v34 = vld [vmem:[%s6736_s2 + $0x50] sm:$0xff] (!%p4274_p10)  ;;  %4617 = vmatpush1.bf16.msra.mxu0 (!%p4274_p10), %v4616_v58  ;;  %v4284_v58 = vld [vmem:[%s6737_s24] ss:$0 sm:$0xff] (!%p4274_p10) }
 0x796   : > { %v4593_v26 = vpop.f32.mrb[143].mxu0  ;;  %v3231_v11 = vmul.f32 %v3225_v33, %v3216_v9  ;;  %v3637_v9 = vld [vmem:[%s6736_s2 + $0x68] sm:$0xff] (!%p4274_p10)  ;;  %v4620_v10 = vpack.c.bf16 (!%p4274_p10), %v3634_v34, %v3632_v27  ;;  %4619 = vmatprep.subr.bf16.mxu0 (!%p4274_p10), %v4618_v53  ;;  %v3636_v33 = vld [vmem:[%s6736_s2 + $0x60] sm:$0xff] (!%p4274_p10) }
 0x797   : > { %4597 = vmatmul.mubr.msk.f32.vlgmr.msra.gmra.mrb[0].mxu1 (!%p4274_p10), %vm2393_vm12, %v4918_v2  ;;  %v3639_v26 = vld [vmem:[%s6736_s2 + $0x78] sm:$0xff] (!%p4274_p10)  ;;  %3752 = vxpose.xlu0.b32.end [2/2] (short) (narrow) (!%p4274_p10), %v3750_v54, 8 }
 0x798   : > { %4609 = vmatpush3.bf16.msra.mxu1 (!%p4274_p10), %v4606_v5  ;;  %4603 = vmatprep.mubr.msk.f32.mxu1 (!%p4274_p10), %vm1619_vm4, %v3528_v59 }
 0x799   : > { %4621 = vmatpush1.bf16.msra.mxu0 (!%p4274_p10), %v4620_v10 }
 0x79b   : > { %4604 = vmatmul.mubr.msk.f32.vlgmr.msra.gmra.mrb[2].mxu1 (!%p4274_p10), %vm1619_vm4, %v3529_v3 }
 0x79c   : > { %3850 = vmatprep.mubr.f32.mxu1 (!%p4274_p10), %v5066_v37 }
 0x82a   : > { %v4398_v46 = vpop.f32.mrb[144].mxu0 }
 0x82b   : > { %v4399_v30 = vpop.f32.mrb[145].mxu0 }
 0x82c   : > { %v4400_v47 = vadd.f32 %v4399_v30, %v4398_v46  ;;  %v4401_v28 = vpop.f32.mrb[146].mxu0  ;;  %v4622_v46 = vpack.c.bf16 (!%p4274_p10), %v3639_v26, %v3637_v9  ;;  %v3638_v30 = vld [vmem:[%s6736_s2 + $0x70] sm:$0xff] (!%p4274_p10) }
 0x82d   : > { %v4402_v48 = vpop.f32.mrb[147].mxu0 }
 0x82e   : > { %v3318_v55 = vadd.f32 %v4400_v47, %v3228_v32  ;;  %v4403_v44 = vadd.f32 %v4402_v48, %v4401_v28  ;;  %v3641_v32 = vld [vmem:[%s6736_s2 + $0x88] sm:$0xff] (!%p4274_p10)  ;;  %v3643_v47 = vld [vmem:[%s6736_s2 + $0x98] sm:$0xff] (!%p4274_p10)  ;;  %v4624_v28 = vpack.c.bf16 (!%p4274_p10), %v3638_v30, %v3636_v33  ;;  %4623 = vmatprep.subr.bf16.mxu0 (!%p4274_p10), %v4622_v46  ;;  %v3656_v46 = vld [vmem:[%s6738_s28] sm:$0x3] (!%p4274_p10) }
 0x82f   : > { %v4626_v48 = vpack.c.bf16 (!%p4274_p10), %v3643_v47, %v3641_v32  ;;  %v3661_v33 = vrot.slane (!%p4274_p10), %v3656_v46, %v5471_v43  ;;  %v3665_v32 = vrot.slane (!%p4274_p10), %v3656_v46, %v5469_v42  ;;  %v3874_v43 = vld [vmem:[%s6740_s12 + $0x88] sm:$0xff] (!%p4274_p10)  ;;  %v3872_v46 = vld [vmem:[%s6740_s12 + $0x78] sm:$0xff] (!%p4274_p10) }
 0x830   : > { %3324 = vst [vmem:[#allocation4 + $0x10] sm:$0xff] %v3318_v55  ;;  %v3321_v39 = vadd.f32 %v4403_v44, %v3231_v11  ;;  %v3640_v11 = vld [vmem:[%s6736_s2 + $0x80] sm:$0xff] (!%p4274_p10)  ;;  %v3642_v55 = vld [vmem:[%s6736_s2 + $0x90] sm:$0xff] (!%p4274_p10)  ;;  %4625 = vmatpush1.bf16.msra.mxu0 (!%p4274_p10), %v4624_v28 }
 0x831   : > { %v4628_v44 = vpack.c.bf16 (!%p4274_p10), %v3642_v55, %v3640_v11  ;;  %4627 = vmatprep.subr.bf16.mxu0 (!%p4274_p10), %v4626_v48 }
 0x832   : > { %3327 = vst [vmem:[#allocation4 + $0x28] sm:$0xff] %v3321_v39  ;;  %v3645_v39 = vld [vmem:[%s6736_s2 + $0xa8] sm:$0xff] (!%p4274_p10) }
 0x833   : > { %v4630_v45 = vpack.c.bf16 (!%p4274_p10), %v3647_v63, %v3645_v39 }
 0x834   : > { %4629 = vmatpush1.bf16.msra.mxu0 (!%p4274_p10), %v4628_v44 }
 0x835   : > { %4631 = vmatprep.subr.bf16.mxu0 (!%p4274_p10), %v4630_v45  ;;  %v3873_v45 = vld [vmem:[%s6739_s13 + $0x80] sm:$0xff] (!%p4274_p10) }
 0x837   : > { %v3510_v15 = vld [vmem:[#allocation4 + $0x10] sm:$0xff] (!%p4274_p10) }
 0x839   : > { %v3513_v8 = vld [vmem:[#allocation4 + $0x28] sm:$0xff] (!%p4274_p10) }
 0x861   : > { %v3422_v23 = vpop.f32.mrb[0].mxu0 (!%p4274_p10) }
 0x862   : > { %v3266_v50 = vpop.f32.mrb[100].mxu1  ;;  %3331 = sbr.rel (%p4274_p10) target bundleno = 2827 (0xb0b), region = 130  ;;  %v3424_v17 = vpop.f32.mrb[1].mxu0 (!%p4274_p10) }
 0x863   : > { %v3316_v16 = vadd.f32 %v3266_v50, %v3226_v51  ;;  %v3268_v24 = vpop.f32.mrb[101].mxu1  ;;  %v3646_v51 = vld [vmem:[%s6736_s2 + $0xb0] sm:$0xff] (!%p4274_p10)  ;;  %v3651_v50 = vld [vmem:[%s6736_s2 + $0xd8] sm:$0xff] (!%p4274_p10) }
 0x864   : > { %v3317_v52 = vadd.f32 %v3268_v24, %v3227_v0  ;;  %v3270_v13 = vpop.f32.mrb[102].mxu1  ;;  %v4632_v62 = vpack.c.bf16 (!%p4274_p10), %v3646_v51, %v3644_v19  ;;  %v3649_v0 = vld [vmem:[%s6736_s2 + $0xc8] sm:$0xff] (!%p4274_p10)  ;;  %v3650_v24 = vld [vmem:[%s6736_s2 + $0xd0] sm:$0xff] (!%p4274_p10) }
 0x865   : > { %3322 = vst [vmem:[#allocation4] sm:$0xff] %v3316_v16  ;;  %v3319_v7 = vadd.f32 %v3270_v13, %v3229_v25  ;;  %v3272_v61 = vpop.f32.mrb[103].mxu1  ;;  %v4634_v25 = vpack.c.bf16 (!%p4274_p10), %v3651_v50, %v3649_v0  ;;  %v3648_v16 = vld [vmem:[%s6736_s2 + $0xc0] sm:$0xff] (!%p4274_p10)  ;;  %v3655_v13 = vld [vmem:[%s6736_s2 + $0xf8] sm:$0xff] (!%p4274_p10)  ;;  %v3428_v18 = vpop.f32.mrb[2].mxu0 (!%p4274_p10)  ;;  %v4646_v0 = vpack.c.bf16 (!%p4274_p10), %v3874_v43, %v3873_v45 }
 0x866   : > { %3323 = vst [vmem:[#allocation4 + $0x8] sm:$0xff] %v3317_v52  ;;  %v3320_v60 = vadd.f32 %v3272_v61, %v3230_v35  ;;  %4633 = vmatpush1.bf16.msra.mxu0 (!%p4274_p10), %v4632_v62  ;;  %v4636_v35 = vpack.c.bf16 (!%p4274_p10), %v3650_v24, %v3648_v16  ;;  %v3653_v52 = vld [vmem:[%s6736_s2 + $0xe8] sm:$0xff] (!%p4274_p10)  ;;  %v3652_v61 = vld [vmem:[%s6736_s2 + $0xe0] sm:$0xff] (!%p4274_p10)  ;;  %v3430_v41 = vpop.f32.mrb[3].mxu0 (!%p4274_p10)  ;;  %v3875_v16 = vld [vmem:[%s6740_s12 + $0x90] sm:$0xff] (!%p4274_p10) }
 0x867   : > { %3325 = vst [vmem:[#allocation4 + $0x18] sm:$0xff] %v3319_v7  ;;  %4635 = vmatprep.subr.bf16.mxu0 (!%p4274_p10), %v4634_v25  ;;  %v4638_v7 = vpack.c.bf16 (!%p4274_p10), %v3655_v13, %v3653_v52  ;;  %v3857_v50 = vld [vmem:[%s6740_s12] sm:$0xff] (!%p4274_p10)  ;;  %v3858_v25 = vld [vmem:[%s6740_s12 + $0x8] sm:$0xff] (!%p4274_p10)  ;;  %v3876_v24 = vld [vmem:[%s6740_s12 + $0x98] sm:$0xff] (!%p4274_p10) }
 0x868   : > { %3326 = vst [vmem:[#allocation4 + $0x20] sm:$0xff] %v3320_v60  ;;  %v3654_v60 = vld [vmem:[%s6736_s2 + $0xf0] sm:$0xff] (!%p4274_p10)  ;;  %v4648_v52 = vpack.c.bf16 (!%p4274_p10), %v3858_v25, %v3857_v50  ;;  %v4650_v13 = vpack.c.bf16 (!%p4274_p10), %v3876_v24, %v3875_v16 }
 0x869   : > { %v4640_v29 = vpack.c.bf16 %v3654_v60, %v3652_v61  ;;  %v3860_v61 = vld [vmem:[%s6740_s12 + $0x18] sm:$0xff]  ;;  %v3877_v60 = vld [vmem:[%s6740_s12 + $0xa0] sm:$0xff] }
 0x86a   : > { %4637 = vmatpush1.bf16.msra.mxu0 %v4636_v35  ;;  %v4598_v5 = vpop.f32.mrb[0].mxu1  ;;  %v3767_v35 = vpop.trf.xlu0 }
 0x86b   : > { %4639 = vmatprep.subr.bf16.mxu0 %v4638_v7  ;;  %v3499_v36 = vpop.f32.mrb[1].mxu1  ;;  %v3519_v4 = vmul.f32 %v4598_v5, %v3513_v8  ;;  %v3859_v7 = vld [vmem:[%s6740_s12 + $0x10] sm:$0xff] }
 0x86c   : > { %v3508_v21 = vld [vmem:[#allocation4] sm:$0xff]  ;;  %v3516_v6 = vmul.f32 %v3510_v15, %v3499_v36  ;;  %v4652_v57 = vpack.c.bf16 %v3860_v61, %v3859_v7  ;;  %v3880_v15 = vld [vmem:[%s6740_s12 + $0xb8] sm:$0xff]  ;;  %v3863_v5 = vld [vmem:[%s6740_s12 + $0x30] sm:$0xff] }
 0x86d   : > { %v3509_v14 = vld [vmem:[#allocation4 + $0x8] sm:$0xff]  ;;  %v3514_v12 = vmul.f32 %v3508_v21, %v3422_v23  ;;  %v3861_v21 = vld [vmem:[%s6740_s12 + $0x20] sm:$0xff]  ;;  %v3879_v23 = vld [vmem:[%s6740_s12 + $0xb0] sm:$0xff] }
 0x86e   : > { %4641 = vmatpush1.bf16.msra.mxu0 %v4640_v29  ;;  %v3515_v49 = vmul.f32 %v3509_v14, %v3424_v17  ;;  %v3511_v1 = vld [vmem:[#allocation4 + $0x18] sm:$0xff]  ;;  %v4605_v2 = vpop.f32.mrb[2].mxu1  ;;  %v3878_v29 = vld [vmem:[%s6740_s12 + $0xa8] sm:$0xff]  ;;  %v4658_v17 = vpack.c.bf16 %v3880_v15, %v3879_v23  ;;  %v3881_v36 = vld [vmem:[%s6740_s12 + $0xc0] sm:$0xff] }
 0x86f   : > { %v3512_v22 = vld [vmem:[#allocation4 + $0x20] sm:$0xff]  ;;  %v3517_v59 = vmul.f32 %v3511_v1, %v3428_v18  ;;  %v3604_v56 = vpop.f32.mrb[3].mxu1  ;;  %v4654_v54 = vpack.c.bf16 %v3878_v29, %v3877_v60  ;;  %v3862_v14 = vld [vmem:[%s6740_s12 + $0x28] sm:$0xff]  ;;  %v3883_v8 = vld [vmem:[%s6740_s12 + $0xd0] sm:$0xff] }
 0x870   : > { %v3522_v38 = vadd.f32 %v3515_v49, %v3514_v12  ;;  %v3518_v20 = vmul.f32 %v3512_v22, %v3430_v41  ;;  %v4656_v12 = vpack.c.bf16 %v3862_v14, %v3861_v21  ;;  %v3864_v49 = vld [vmem:[%s6740_s12 + $0x38] sm:$0xff]  ;;  %v3882_v1 = vld [vmem:[%s6740_s12 + $0xc8] sm:$0xff] }
 0x871   : > { %v4662_v22 = vpack.c.bf16 %v3882_v1, %v3881_v36  ;;  %v3866_v18 = vld [vmem:[%s6740_s12 + $0x48] sm:$0xff] }
 0x872   : > { %v3524_v40 = vadd.f32 %v3522_v38, %v3516_v6  ;;  %v3523_v31 = vadd.f32 %v3518_v20, %v3517_v59  ;;  %v4660_v6 = vpack.c.bf16 %v3864_v49, %v3863_v5  ;;  %v3865_v38 = vld [vmem:[%s6740_s12 + $0x40] sm:$0xff]  ;;  %v3884_v59 = vld [vmem:[%s6740_s12 + $0xd8] sm:$0xff] }
 0x873   : > { %v4664_v41 = vpack.c.bf16 %v3866_v18, %v3865_v38  ;;  %v3868_v20 = vld [vmem:[%s6740_s12 + $0x58] sm:$0xff] }
 0x874   : > { %v3526_v3 = vmul.f32 0.33333334, %v3524_v40  ;;  %v3525_v53 = vadd.f32 %v3523_v31, %v3519_v4  ;;  %v3867_v40 = vld [vmem:[%s6740_s12 + $0x50] sm:$0xff]  ;;  %v3886_v4 = vld [vmem:[%s6740_s12 + $0xe8] sm:$0xff] }
 0x875   : > { %v4668_v31 = vpack.c.bf16 %v3868_v20, %v3867_v40 }
 0x876   : > { %v3613_v27 = vadd.f32 %v3604_v56, %v3526_v3  ;;  %v3527_v34 = vmul.f32 0.33333334, %v3525_v53  ;;  %v3885_v56 = vld [vmem:[%s6740_s12 + $0xe0] sm:$0xff]  ;;  %v3870_v53 = vld [vmem:[%s6740_s12 + $0x68] sm:$0xff] }
 0x877   : > { %v4670_v3 = vpack.c.bf16 %v3886_v4, %v3885_v56 }
 0x878   : > { %v3622_v9 = vadd.f32 %v4284_v58, %v3613_v27  ;;  %v3614_v26 = vadd.f32 %v4605_v2, %v3527_v34  ;;  %v4666_v2 = vpack.c.bf16 %v3884_v59, %v3883_v8  ;;  %v3887_v27 = vld [vmem:[%s6740_s12 + $0xf0] sm:$0xff]  ;;  %v3888_v34 = vld [vmem:[%s6740_s12 + $0xf8] sm:$0xff] }
 0x87a   : > { %3733 = vmatmul.mubr.f32.vlgmr.msra.gmra.mrb[4].mxu0 %v3622_v9  ;;  %v3623_v10 = vadd.f32 %v4284_v58, %v3614_v26  ;;  %v3869_v58 = vld [vmem:[%s6740_s12 + $0x60] sm:$0xff]  ;;  %v4674_v26 = vpack.c.bf16 %v3888_v34, %v3887_v27 }
 0x87b   : > { %3738 = vmatprep.mubr.f32.mxu0 %v5066_v37  ;;  %v4672_v9 = vpack.c.bf16 %v3870_v53, %v3869_v58 }
 0x87e   : > { %3739 = vmatmul.mubr.f32.gmra.mrb[6].mxu0 %v3623_v10  ;;  %v3871_v10 = vld [vmem:[%s6740_s12 + $0x70] sm:$0xff] }
 0x94d   : > { %v3734_v30 = vpop.f32.mrb[4].mxu0 }
 0x94e   : > { %v3736_v47 = vpop.f32.mrb[5].mxu0  ;;  %v3735_v28 = vadd.f32 %v3734_v30, %v3661_v33 }
 0x94f   : > { %v3737_v48 = vadd.f32 %v3736_v47, %v3665_v32 }
 0x950   : > { %v3745_v63 = vmax.f32 %v3735_v28, 0.0 }
 0x951   : > { %v3740_v11 = vpop.f32.mrb[6].mxu0  ;;  %v3746_v19 = vmax.f32 %v3737_v48, 0.0 }
 0x952   : > { %v3741_v55 = vadd.f32 %v3740_v11, %v3661_v33  ;;  %v3742_v44 = vpop.f32.mrb[7].mxu0  ;;  %v4676_v33 = vpack.c.bf16 %v3872_v46, %v3871_v10 }
 0x953   : > { %v3743_v39 = vadd.f32 %v3742_v44, %v3665_v32 }
 0x954   : > { %v3747_v37 = vmax.f32 %v3741_v55, 0.0 }
 0x955   : > { %v3748_v51 = vmax.f32 %v3743_v39, 0.0 }
 0x956   : > { %v4644_v42 = vpack.c.bf16 %v3747_v37, %v3745_v63 }
 0x957   : > { %v4642_v62 = vpack.c.bf16 %v3748_v51, %v3746_v19 }
 0x959   : > { %4643 = vmatprep.subr.bf16.mxu1 %v4642_v62 }
 0x95a   : > { %4645 = vmatpush1.bf16.msra.mxu1 %v4644_v42 }
 0x95b   : > { %4647 = vmatprep.subr.bf16.mxu1 %v4646_v0 }
 0x95d   : > { %4285 = vmatmul.mubr.msk.f32.vlgmr.msra.gmra.mrb[4].mxu1 %vm1619_vm4, %v3767_v35 }
 0x95e   : > { %4649 = vmatpush3.bf16.msra.mxu1 %v4648_v52 }
 0x95f   : > { %4651 = vmatprep.subr.bf16.mxu1 %v4650_v13 }
 0x962   : > { %4653 = vmatpush3.bf16.msra.mxu1 %v4652_v57 }
 0x963   : > { %4655 = vmatprep.subr.bf16.mxu1 %v4654_v54 }
 0x966   : > { %4657 = vmatpush3.bf16.msra.mxu1 %v4656_v12 }
 0x967   : > { %4659 = vmatprep.subr.bf16.mxu1 %v4658_v17 }
 0x96a   : > { %4661 = vmatpush3.bf16.msra.mxu1 %v4660_v6 }
 0x96b   : > { %4663 = vmatprep.subr.bf16.mxu1 %v4662_v22 }
 0x96e   : > { %4665 = vmatpush3.bf16.msra.mxu1 %v4664_v41 }
 0x96f   : > { %4667 = vmatprep.subr.bf16.mxu1 %v4666_v2 }
 0x972   : > { %4669 = vmatpush3.bf16.msra.mxu1 %v4668_v31 }
 0x973   : > { %4671 = vmatprep.subr.bf16.mxu1 %v4670_v3 }
 0x976   : > { %4673 = vmatpush3.bf16.msra.mxu1 %v4672_v9 }
 0x977   : > { %4675 = vmatprep.subr.bf16.mxu1 %v4674_v26 }
 0x97a   : > { %4677 = vmatpush3.bf16.msra.mxu1 %v4676_v33 }
 0xa30   : > { %v3852_v30 = vpop.f32.mrb[4].mxu1 }
 0xa31   : > { %v3854_v32 = vpop.f32.mrb[5].mxu1 }
 0xa32   : > { %3953 = vmatprep.mubr.f32.mxu1 %v3854_v32 }
 0xa33   : > { %3954 = vmatmul.mubr.f32.vlgmr.msra.gmra.mrb[6].mxu1 %v3852_v30 }
 0xb06   : > { %v4443_v47 = vpop.f32.mrb[6].mxu1 }
 0xb07   : > { %v4444_v28 = vpop.f32.mrb[7].mxu1 }
 0xb08   : > { %v4445_v48 = vadd.f32 %v4444_v28, %v4443_v47 }
 0xb0a   : > { %3960 = vst.msk [vmem:[%s703_s15] sm:$0x3] %vm3959_vm1, %v4445_v48 }
 0xb0b PF: > { %s4287_s27 = sshll.u32 %s5043_s26, 5  ;;  %s6741_s0 = sld [smem:[#allocation97_spill]] }
 0xb0c   : > { %s3975_s13 = sshll.u32 %s703_s15, 4  ;;  %s6742_s16 = sand.u32 1, %s5023_s3   ;;  %s3976_s13 = int_to_ptr.vmem [resolvable:$true] %s3975_s13 }
 0xb0d   : > { %s3962_s11 = scalar_lea.sflag [#allocation10], %s6742_s16  ;;  %s4943_s20 = scalar_lea.vmem %s3976_s13, 32 }
 0xb0e   : > { %p4944_p11 = scmp.ne.s32.totalorder %s3976_s13, %s4943_s20  ;;  %s5067_s19 = smov [#allocation9]  }
 0xb0f   : > { %s4947_s9 = sshll.u32 %s5067_s19, 4  ;;  %s4948_s9 = int_to_ptr.vmem [resolvable:$false] %s4947_s9 }
 0xb10   : > { %p4945_p12 = pnand %p4944_p11, %p5243_p5  ;;  %s4949_s30 = scalar_lea.vmem %s4948_s9, 64 }
 0xb11   : > { %s6421_s22 = scalar_lea.hbm %s6741_s0, %s4287_s27  ;;  %p4950_p0 = scmp.lt.s32.totalorder %s3976_s13, %s4948_s9 }
 0xb12   : > { %p4946_p13 = pneg %p4945_p12  ;;  %p4951_p1 = scmp.lt.s32.totalorder %s4949_s30, %s4943_s20 }
 0xb14   : > { %p4952_p2 = por %p4951_p1, %p4950_p0 }
 0xb16   : > { %p4953_p3 = pnand %p4952_p2, %p4946_p13 }
 0xb18   : > { %4956 = shalt.err (!%p4953_p3)
}
 0xb19   : > { %s4957_s15 = scalar_lea.hbm %s6421_s22, 32  ;;  %s4961_s18 = scalar_lea.hbm %s6741_s0, 128 }
 0xb1a   : > { %p4958_p4 = scmp.ne.s32.totalorder %s6421_s22, %s4957_s15  ;;  %p4962_p9 = scmp.lt.u32.totalorder %s6421_s22, %s6741_s0 }
 0xb1b   : > { %p4963_p10 = scmp.lt.u32.totalorder %s4961_s18, %s4957_s15  ;;  %p4965_p12 = scmp.lt.u32.totalorder %s4957_s15, %s6421_s22 }
 0xb1c   : > { %p4959_p6 = pnand %p4958_p4, %p5243_p5 }
 0xb1d   : > { %p4964_p11 = por %p4963_p10, %p4962_p9 }
 0xb1e   : > { %p4960_p7 = pneg %p4959_p6 }
 0xb1f   : > { %p4966_p13 = por %p4965_p12, %p4964_p11 }
 0xb21   : > { %p4967_p0 = pnand %p4966_p13, %p4960_p7 }
 0xb23   : > { %4970 = shalt.err (!%p4967_p0)
}
 0xb24   : > { %4779 = dma.vmem_to_hbm [thread:$0]  (%p5243_p5), %s3976_s13, 32, %s6421_s22, %s3962_s11  }
 0xb25 PF: > { %p4785_p1 = scmp.ge.s32.totalorder %s5055_s29, 2  ;;  %s3987_s24 = sand.u32 1, %s5019_s1  }
 0xb26   : > { %s3988_s27 = scalar_lea.sflag [#allocation10], %s3987_s24 }
 0xb27   : > { %p4782_p2 = pnand %p4785_p1, %p5252_p8 }
 0xb29   : > { %5014 = dma.done.wait (!%p4782_p2), %s3988_s27, 32  }
 0xb2a   : > { %5016 = vsyncadd (!%p4782_p2), %s3988_s27, 4294967264  ;;  %s41_s29 = sadd.s32 1, %s5055_s29   ;;  %s6744_s25 = sld [smem:[#allocation13_spill]] }
 0xb2b   : > { %p38_p3 = scmp.ge.s32.totalorder %s41_s29, 10   ;;  %s6745_s23 = sld [smem:[#allocation19_spill]] }
 0xb2c   : > { %s6746_s13 = sld [smem:[#allocation14_spill]]  ;;  %s6747_s24 = sld [smem:[#allocation21_spill]] }
 0xb2d   : > { %s6748_s14 = sld [smem:[#allocation15_spill]]  ;;  %s6749_s26 = sld [smem:[#allocation16_spill]] }
 0xb2e   : > { %s6750_s27 = sld [smem:[#allocation17_spill]]  ;;  %s6751_s28 = sld [smem:[#allocation18_spill]] }
 0xb2f   : > { %s6752_s1 = smov %s5023_s3  ;;  %40 = sbr.rel (!%p38_p3) target bundleno = 41 (0x29), region = 182 }
 0xb30   : > { %s6753_s3 = smov %s6744_s25 }
 0xb33   : > { %s6754_s25 = smov %s6748_s14 }
 0xb36   :  { %3993 = vsyncpa [#allocation10], 1 }
 0xb37   :  { %3995 = vsyncpa [#allocation10 + $0x1], 1 }

</bundles_post_ra>
